<compile_context>
chip_gen: v7x
topology: tpu7x:2x2x1
jax: 0.10.0
libtpu: 0.0.40
codegen_flags: <defaults>
</compile_context>

<pallas_src>
import jax
import jax.numpy as jnp
from jax.experimental import pallas as pl
from jax.experimental.pallas import tpu as pltpu

# Left zero-pad (columns) of the conv2 staging scratch.  8 keeps the interior store
# sublane-tile-aligned for f32; conv2's 3x3 taps only consume one zero column/row on
# each side of the image, the rest is alignment padding.
_PAD = 8


# ----------------------------------------------------------------------------
# Fused kernel: dwconv(low) -> upsample-as-matmul -> dwconv(high) -> conv1(1x1)
#               -> conv2(3x3 via im2col) -> ChannelAttention -> conv3(1x1)
# ----------------------------------------------------------------------------

def _integration_kernel(xlp_ref, xhp_ref, dw1w_ref, dw1b_ref, dw2w_ref, dw2b_ref,
                        up_ref, w1_ref, b1_ref, w2_ref, b2_ref,
                        caw1_ref, caw2_ref, w3_ref, b3_ref,
                        o_ref, pad_ref):
    _, hp2, wp2, C = xlp_ref.shape
    h, w = hp2 - 2, wp2 - 2
    _, Hp2, Wp2, _ = xhp_ref.shape
    H, W = Hp2 - 2, Wp2 - 2

    # ---- dw_conv1 on the low-res branch (VPU; channels lane-dense) ----
    xl = xlp_ref[0]                                          # (h+2, w+2, C) f32
    acc_l = jnp.zeros((h, w, C), jnp.float32)
    for k in range(9):
        ky, kx = k // 3, k % 3
        acc_l = acc_l + xl[ky:ky + h, kx:kx + w, :] * dw1w_ref[k]
    low = (acc_l + dw1b_ref[...]).reshape(h * w, C)          # (h*w, C)

    # ---- bilinear upsample (align_corners=False) as one MXU matmul ----
    # TODO(synk): at large resolutions switch to separable (H,h)/(W,w) interpolation
    # matrices (the dense matrix is O(HW*hw) and would overflow v7x's 64 MiB VMEM).
    up = jnp.dot(up_ref[...], low.astype(jnp.bfloat16),
                 preferred_element_type=jnp.float32)         # (H*W, C)

    # ---- dw_conv2 on the high-res branch ----
    xh = xhp_ref[0]                                          # (H+2, W+2, C) f32
    acc_h = jnp.zeros((H, W, C), jnp.float32)
    for k in range(9):
        ky, kx = k // 3, k % 3
        acc_h = acc_h + xh[ky:ky + H, kx:kx + W, :] * dw2w_ref[k]
    high = (acc_h + dw2b_ref[...]).reshape(H * W, C)         # (H*W, C)

    # ---- conv1 1x1 over concat([low_up, high], channel): single K=2C MXU matmul ----
    cat = jnp.concatenate([up.astype(jnp.bfloat16), high.astype(jnp.bfloat16)],
                          axis=-1)                           # (H*W, 2C) bf16
    t1 = jnp.dot(cat, w1_ref[...], preferred_element_type=jnp.float32) + b1_ref[...]

    # ---- stage conv1 output into a zero-padded VMEM scratch (no HBM roundtrip) ----
    pad_ref[...] = jnp.zeros_like(pad_ref)
    for i in range(H):   # per-row stores: outer-dim offset + tile-aligned sublane slice
        pad_ref[1 + i, _PAD:_PAD + W, :] = t1[i * W:(i + 1) * W, :]

    # ---- conv2 3x3 as one im2col (H*W, 9C) @ (9C, C) MXU matmul ----
    xp = pad_ref[...]                                        # (H+2, 2*_PAD+W, C) f32
    cols = []
    for k in range(9):
        ky, kx = k // 3, k % 3
        sl = xp[ky:ky + H, _PAD - 1 + kx:_PAD - 1 + kx + W, :].reshape(H * W, C)
        cols.append(sl.astype(jnp.bfloat16))
    im2col = jnp.concatenate(cols, axis=-1)                  # (H*W, 9C) bf16
    y = jnp.dot(im2col, w2_ref[...], preferred_element_type=jnp.float32) + b2_ref[...]

    # ---- ChannelAttention: global average pool + two bias-free FCs + sigmoid gate ----
    pooled = jnp.mean(y, axis=0, keepdims=True)              # (1, C)
    hid = jnp.maximum(jnp.dot(pooled, caw1_ref[...],
                              preferred_element_type=jnp.float32), 0.0)
    att = jax.nn.sigmoid(jnp.dot(hid, caw2_ref[...],
                                 preferred_element_type=jnp.float32))  # (1, C)
    y = y * att

    # ---- conv3 1x1, then emit channel-major so the host output is already NCHW ----
    out = (jnp.dot(y.astype(jnp.bfloat16), w3_ref[...],
                   preferred_element_type=jnp.float32) + b3_ref[...])  # (H*W, C)
    o_ref[0] = jnp.transpose(out, (1, 0))                    # (C, H*W)


# ----------------------------------------------------------------------------
# Host-side helpers
# ----------------------------------------------------------------------------

def _interp_matrix(out_size, in_size):
    # 1-D weights of F.interpolate(mode='bilinear', align_corners=False) as a matrix.
    scale = in_size / out_size
    src = (jnp.arange(out_size, dtype=jnp.float32) + 0.5) * scale - 0.5
    src = jnp.maximum(src, 0.0)
    i0 = jnp.minimum(jnp.floor(src).astype(jnp.int32), in_size - 1)
    i1 = jnp.minimum(i0 + 1, in_size - 1)
    t = src - i0.astype(jnp.float32)
    rows = jnp.arange(out_size)
    m = jnp.zeros((out_size, in_size), jnp.float32)
    m = m.at[rows, i0].add(1.0 - t)
    m = m.at[rows, i1].add(t)
    return m


def integration_forward(x_low, x_high, p):
    """x_low: (B, C, h, w) NCHW, x_high: (B, C, H, W) NCHW -> (B, C, H, W)."""
    B, C, h, w = x_low.shape
    H, W = x_high.shape[2], x_high.shape[3]

    # NHWC (channels in the lane dim) + spatial zero-pads for the depthwise 3x3 convs.
    xl_pad = jnp.pad(jnp.transpose(x_low, (0, 2, 3, 1)),
                     ((0, 0), (1, 1), (1, 1), (0, 0)))
    xh_pad = jnp.pad(jnp.transpose(x_high, (0, 2, 3, 1)),
                     ((0, 0), (1, 1), (1, 1), (0, 0)))

    # Dense (H*W, h*w) bilinear matrix -> upsample becomes one MXU matmul.
    up_mat = jnp.einsum('ip,jq->ijpq', _interp_matrix(H, h), _interp_matrix(W, w)
                        ).reshape(H * W, h * w).astype(jnp.bfloat16)

    # TODO(synk): on v7x with B == 1, add a second parallel grid axis over halo'd
    # row-blocks so both TensorCores are used (B = 2 here already feeds both).
    out = pl.pallas_call(
        _integration_kernel,
        grid=(B,),
        in_specs=[
            pl.BlockSpec((1, h + 2, w + 2, C), lambda b: (b, 0, 0, 0)),
            pl.BlockSpec((1, H + 2, W + 2, C), lambda b: (b, 0, 0, 0)),
            pl.BlockSpec((9, 1, 1, C), lambda b: (0, 0, 0, 0)),
            pl.BlockSpec((1, 1, C), lambda b: (0, 0, 0)),
            pl.BlockSpec((9, 1, 1, C), lambda b: (0, 0, 0, 0)),
            pl.BlockSpec((1, 1, C), lambda b: (0, 0, 0)),
            pl.BlockSpec((H * W, h * w), lambda b: (0, 0)),
            pl.BlockSpec((2 * C, C), lambda b: (0, 0)),
            pl.BlockSpec((1, C), lambda b: (0, 0)),
            pl.BlockSpec((9 * C, C), lambda b: (0, 0)),
            pl.BlockSpec((1, C), lambda b: (0, 0)),
            pl.BlockSpec((C, C // 16), lambda b: (0, 0)),
            pl.BlockSpec((C // 16, C), lambda b: (0, 0)),
            pl.BlockSpec((C, C), lambda b: (0, 0)),
            pl.BlockSpec((1, C), lambda b: (0, 0)),
        ],
        out_specs=pl.BlockSpec((1, C, H * W), lambda b: (b, 0, 0)),
        out_shape=jax.ShapeDtypeStruct((B, C, H * W), jnp.float32),
        scratch_shapes=[pltpu.VMEM((H + 2, 2 * _PAD + W, C), jnp.float32)],
        compiler_params=pltpu.CompilerParams(dimension_semantics=("parallel",)),
    )(xl_pad, xh_pad, p['dw1_w'], p['dw1_b'], p['dw2_w'], p['dw2_b'],
      up_mat, p['w1'], p['b1'], p['w2'], p['b2'],
      p['ca_w1'], p['ca_w2'], p['w3'], p['b3'])

    # (B, C, H*W) -> (B, C, H, W): pure reshape, no transpose (NCHW emitted in-kernel).
    return out.reshape(B, C, H, W)


# ----------------------------------------------------------------------------
# Parameters: raw params in PyTorch layout -> packed kernel layout
# ----------------------------------------------------------------------------

def init_raw_params(key, C):
    Cr = C // 16
    ks = jax.random.split(key, 12)

    def lin(k, shape, scale=0.05):
        return scale * jax.random.normal(k, shape, jnp.float32)

    return {
        'dw1_w': lin(ks[0], (C, 1, 3, 3), 0.2), 'dw1_b': lin(ks[1], (C,), 0.1),
        'dw2_w': lin(ks[2], (C, 1, 3, 3), 0.2), 'dw2_b': lin(ks[3], (C,), 0.1),
        'conv1_w': lin(ks[4], (C, 2 * C, 1, 1)), 'conv1_b': lin(ks[5], (C,), 0.1),
        'conv2_w': lin(ks[6], (C, C, 3, 3)), 'conv2_b': lin(ks[7], (C,), 0.1),
        'conv3_w': lin(ks[8], (C, C, 1, 1)), 'conv3_b': lin(ks[9], (C,), 0.1),
        'ca_w1': lin(ks[10], (Cr, C, 1, 1), 0.1),    # bias=False in reference
        'ca_w2': lin(ks[11], (C, Cr, 1, 1), 0.1),    # bias=False in reference
    }


def pack_params(raw):
    C = raw['dw1_w'].shape[0]

    def dw_pack(wt):   # (C,1,3,3) -> (9,1,1,C), tap-major (ky*3+kx), channels in lanes
        return jnp.transpose(wt.reshape(C, 9), (1, 0)).reshape(9, 1, 1, C)

    w1_full = jnp.transpose(raw['conv1_w'][:, :, 0, 0], (1, 0))                 # (2C, C)
    w2_full = jnp.transpose(raw['conv2_w'], (2, 3, 1, 0)).reshape(9 * C, C)     # (9C, C)
    return {
        'dw1_w': dw_pack(raw['dw1_w']), 'dw1_b': raw['dw1_b'].reshape(1, 1, C),
        'dw2_w': dw_pack(raw['dw2_w']), 'dw2_b': raw['dw2_b'].reshape(1, 1, C),
        'w1': w1_full.astype(jnp.bfloat16),            # rows [0:C) = low, [C:2C) = high
        'b1': raw['conv1_b'].reshape(1, C),
        'w2': w2_full.astype(jnp.bfloat16),            # im2col layout, tap-major
        'b2': raw['conv2_b'].reshape(1, C),
        'ca_w1': jnp.transpose(raw['ca_w1'][:, :, 0, 0], (1, 0)),        # (C, C//16)
        'ca_w2': jnp.transpose(raw['ca_w2'][:, :, 0, 0], (1, 0)),        # (C//16, C)
        'w3': jnp.transpose(raw['conv3_w'][:, :, 0, 0], (1, 0)).astype(jnp.bfloat16),
        'b3': raw['conv3_b'].reshape(1, C),
    }


# ----------------------------------------------------------------------------
# Pure-JAX reference (f32) for a loose numerical sanity check
# ----------------------------------------------------------------------------

def reference_forward(x_low, x_high, raw):
    dn = ('NCHW', 'OIHW', 'NCHW')

    def conv(x, w, b=None, groups=1):
        pad = 'SAME' if w.shape[-1] == 3 else 'VALID'
        y = jax.lax.conv_general_dilated(x, w, (1, 1), pad,
                                         dimension_numbers=dn,
                                         feature_group_count=groups)
        return y if b is None else y + b.reshape(1, -1, 1, 1)

    B, C, h, w = x_low.shape
    H, W = x_high.shape[2], x_high.shape[3]
    lo = conv(x_low, raw['dw1_w'], raw['dw1_b'], groups=C)
    lo = jnp.einsum('bchw,Hh,Ww->bcHW', lo, _interp_matrix(H, h), _interp_matrix(W, w))
    hi = conv(x_high, raw['dw2_w'], raw['dw2_b'], groups=C)
    x = jnp.concatenate([lo, hi], axis=1)
    x = conv(x, raw['conv1_w'], raw['conv1_b'])
    x = conv(x, raw['conv2_w'], raw['conv2_b'])
    pooled = x.mean(axis=(2, 3), keepdims=True)
    att = jax.nn.sigmoid(conv(jnp.maximum(conv(pooled, raw['ca_w1']), 0.0), raw['ca_w2']))
    x = x * att
    return conv(x, raw['conv3_w'], raw['conv3_b'])


if __name__ == "__main__":
    key = jax.random.PRNGKey(0)
    B, C = 2, 128          # C multiple of 128 -> lane-dense channels; C//16 = 8
    h, w = 8, 8            # low-res branch
    H, W = 16, 16          # high-res branch (output resolution)

    k1, k2, kp = jax.random.split(key, 3)
    x_low = jax.random.normal(k1, (B, C, h, w), jnp.float32)
    x_high = jax.random.normal(k2, (B, C, H, W), jnp.float32)
    raw = init_raw_params(kp, C)
    packed = pack_params(raw)

    out = jax.jit(integration_forward)(x_low, x_high, packed)
    out = jax.block_until_ready(out)

    assert out.shape == (B, C, H, W) and out.dtype == jnp.float32
    assert bool(jnp.all(jnp.isfinite(out)))

    ref = reference_forward(x_low, x_high, raw)
    err = float(jnp.max(jnp.abs(out - ref)))
    assert err < 0.1, f"max abs error vs reference too large: {err}"

    print("KERNEL_OK")
</pallas_src>

<mosaic_0001>
module attributes {stable_mosaic.version = 11 : i64} {
  func.func private @main(%arg0: i32) attributes {dimension_semantics = [#tpu.dimension_semantics<core_parallel>], iteration_bounds = array<i64: 2>, tpu.core_type = #tpu.core_type<sc_scalar_subcore>, window_params = []} {
    return
  }
}

module attributes {stable_mosaic.version = 11 : i64} {
  func.func private @main(%arg0: i32) attributes {dimension_semantics = [#tpu.dimension_semantics<core_parallel>], iteration_bounds = array<i64: 2>, tpu.core_type = #tpu.core_type<sc_scalar_subcore>, window_params = []} {
    return
  }
}

module attributes {stable_mosaic.version = 11 : i64} {
  func.func @_integration_kernel(%arg0: i32, %arg1: memref<1x10x10x128xf32, #tpu.memory_space<vmem>>, %arg2: memref<1x18x18x128xf32, #tpu.memory_space<vmem>>, %arg3: memref<9x1x1x128xf32, #tpu.memory_space<vmem>>, %arg4: memref<1x1x128xf32, #tpu.memory_space<vmem>>, %arg5: memref<9x1x1x128xf32, #tpu.memory_space<vmem>>, %arg6: memref<1x1x128xf32, #tpu.memory_space<vmem>>, %arg7: memref<256x64xbf16, #tpu.memory_space<vmem>>, %arg8: memref<256x128xbf16, #tpu.memory_space<vmem>>, %arg9: memref<1x128xf32, #tpu.memory_space<vmem>>, %arg10: memref<1152x128xbf16, #tpu.memory_space<vmem>>, %arg11: memref<1x128xf32, #tpu.memory_space<vmem>>, %arg12: memref<128x8xf32, #tpu.memory_space<vmem>>, %arg13: memref<8x128xf32, #tpu.memory_space<vmem>>, %arg14: memref<128x128xbf16, #tpu.memory_space<vmem>>, %arg15: memref<1x128xf32, #tpu.memory_space<vmem>>, %arg16: memref<1x128x256xf32, #tpu.memory_space<vmem>>, %arg17: memref<18x32x128xf32, #tpu.memory_space<vmem>>) attributes {dimension_semantics = [#tpu.dimension_semantics<parallel>], iteration_bounds = array<i64: 2>, scalar_prefetch = 0 : i64, scratch_operands = 1 : i64, tpu.core_type = #tpu.core_type<tc>, window_params = [{transform_indices = @transform_0, window_bounds = array<i64: 1, 10, 10, 128>}, {transform_indices = @transform_1, window_bounds = array<i64: 1, 18, 18, 128>}, {pipeline_mode = #tpu.pipeline_mode<synchronous>, transform_indices = @transform_2, window_bounds = array<i64: 9, 1, 1, 128>}, {pipeline_mode = #tpu.pipeline_mode<synchronous>, transform_indices = @transform_3, window_bounds = array<i64: 1, 1, 128>}, {pipeline_mode = #tpu.pipeline_mode<synchronous>, transform_indices = @transform_4, window_bounds = array<i64: 9, 1, 1, 128>}, {pipeline_mode = #tpu.pipeline_mode<synchronous>, transform_indices = @transform_5, window_bounds = array<i64: 1, 1, 128>}, {pipeline_mode = #tpu.pipeline_mode<synchronous>, transform_indices = @transform_6, window_bounds = array<i64: 256, 64>}, {pipeline_mode = #tpu.pipeline_mode<synchronous>, transform_indices = @transform_7, window_bounds = array<i64: 256, 128>}, {pipeline_mode = #tpu.pipeline_mode<synchronous>, transform_indices = @transform_8, window_bounds = array<i64: 1, 128>}, {pipeline_mode = #tpu.pipeline_mode<synchronous>, transform_indices = @transform_9, window_bounds = array<i64: 1152, 128>}, {pipeline_mode = #tpu.pipeline_mode<synchronous>, transform_indices = @transform_10, window_bounds = array<i64: 1, 128>}, {pipeline_mode = #tpu.pipeline_mode<synchronous>, transform_indices = @transform_11, window_bounds = array<i64: 128, 8>}, {pipeline_mode = #tpu.pipeline_mode<synchronous>, transform_indices = @transform_12, window_bounds = array<i64: 8, 128>}, {pipeline_mode = #tpu.pipeline_mode<synchronous>, transform_indices = @transform_13, window_bounds = array<i64: 128, 128>}, {pipeline_mode = #tpu.pipeline_mode<synchronous>, transform_indices = @transform_14, window_bounds = array<i64: 1, 128>}, {transform_indices = @transform_15, window_bounds = array<i64: 1, 128, 256>}]} {
    %c0 = arith.constant 0 : index
    %c0_0 = arith.constant 0 : index
    %c0_1 = arith.constant 0 : index
    %c0_2 = arith.constant 0 : index
    %0 = vector.load %arg1[%c0, %c0_0, %c0_1, %c0_2] : memref<1x10x10x128xf32, #tpu.memory_space<vmem>>, vector<1x10x10x128xf32>
    %1 = vector.shape_cast %0 : vector<1x10x10x128xf32> to vector<10x10x128xf32>
    %cst = arith.constant 0.000000e+00 : f32
    %2 = vector.broadcast %cst : f32 to vector<8x8x128xf32>
    %3 = vector.extract_strided_slice %1 {offsets = [0, 0, 0], sizes = [8, 8, 128], strides = [1, 1, 1]} : vector<10x10x128xf32> to vector<8x8x128xf32>
    %c0_3 = arith.constant 0 : index
    %c0_4 = arith.constant 0 : index
    %c0_5 = arith.constant 0 : index
    %c0_6 = arith.constant 0 : index
    %4 = vector.load %arg3[%c0_3, %c0_4, %c0_5, %c0_6] : memref<9x1x1x128xf32, #tpu.memory_space<vmem>>, vector<1x1x1x128xf32>
    %5 = vector.shape_cast %4 : vector<1x1x1x128xf32> to vector<1x1x128xf32>
    %6 = vector.broadcast %5 : vector<1x1x128xf32> to vector<8x8x128xf32>
    %7 = arith.mulf %3, %6 : vector<8x8x128xf32>
    %8 = arith.addf %2, %7 : vector<8x8x128xf32>
    %9 = vector.extract_strided_slice %1 {offsets = [0, 1, 0], sizes = [8, 8, 128], strides = [1, 1, 1]} : vector<10x10x128xf32> to vector<8x8x128xf32>
    %c1 = arith.constant 1 : index
    %c0_7 = arith.constant 0 : index
    %c0_8 = arith.constant 0 : index
    %c0_9 = arith.constant 0 : index
    %10 = vector.load %arg3[%c1, %c0_7, %c0_8, %c0_9] : memref<9x1x1x128xf32, #tpu.memory_space<vmem>>, vector<1x1x1x128xf32>
    %11 = vector.shape_cast %10 : vector<1x1x1x128xf32> to vector<1x1x128xf32>
    %12 = vector.broadcast %11 : vector<1x1x128xf32> to vector<8x8x128xf32>
    %13 = arith.mulf %9, %12 : vector<8x8x128xf32>
    %14 = arith.addf %8, %13 : vector<8x8x128xf32>
    %15 = vector.extract_strided_slice %1 {offsets = [0, 2, 0], sizes = [8, 8, 128], strides = [1, 1, 1]} : vector<10x10x128xf32> to vector<8x8x128xf32>
    %c2 = arith.constant 2 : index
    %c0_10 = arith.constant 0 : index
    %c0_11 = arith.constant 0 : index
    %c0_12 = arith.constant 0 : index
    %16 = vector.load %arg3[%c2, %c0_10, %c0_11, %c0_12] : memref<9x1x1x128xf32, #tpu.memory_space<vmem>>, vector<1x1x1x128xf32>
    %17 = vector.shape_cast %16 : vector<1x1x1x128xf32> to vector<1x1x128xf32>
    %18 = vector.broadcast %17 : vector<1x1x128xf32> to vector<8x8x128xf32>
    %19 = arith.mulf %15, %18 : vector<8x8x128xf32>
    %20 = arith.addf %14, %19 : vector<8x8x128xf32>
    %21 = vector.extract_strided_slice %1 {offsets = [1, 0, 0], sizes = [8, 8, 128], strides = [1, 1, 1]} : vector<10x10x128xf32> to vector<8x8x128xf32>
    %c3 = arith.constant 3 : index
    %c0_13 = arith.constant 0 : index
    %c0_14 = arith.constant 0 : index
    %c0_15 = arith.constant 0 : index
    %22 = vector.load %arg3[%c3, %c0_13, %c0_14, %c0_15] : memref<9x1x1x128xf32, #tpu.memory_space<vmem>>, vector<1x1x1x128xf32>
    %23 = vector.shape_cast %22 : vector<1x1x1x128xf32> to vector<1x1x128xf32>
    %24 = vector.broadcast %23 : vector<1x1x128xf32> to vector<8x8x128xf32>
    %25 = arith.mulf %21, %24 : vector<8x8x128xf32>
    %26 = arith.addf %20, %25 : vector<8x8x128xf32>
    %27 = vector.extract_strided_slice %1 {offsets = [1, 1, 0], sizes = [8, 8, 128], strides = [1, 1, 1]} : vector<10x10x128xf32> to vector<8x8x128xf32>
    %c4 = arith.constant 4 : index
    %c0_16 = arith.constant 0 : index
    %c0_17 = arith.constant 0 : index
    %c0_18 = arith.constant 0 : index
    %28 = vector.load %arg3[%c4, %c0_16, %c0_17, %c0_18] : memref<9x1x1x128xf32, #tpu.memory_space<vmem>>, vector<1x1x1x128xf32>
    %29 = vector.shape_cast %28 : vector<1x1x1x128xf32> to vector<1x1x128xf32>
    %30 = vector.broadcast %29 : vector<1x1x128xf32> to vector<8x8x128xf32>
    %31 = arith.mulf %27, %30 : vector<8x8x128xf32>
    %32 = arith.addf %26, %31 : vector<8x8x128xf32>
    %33 = vector.extract_strided_slice %1 {offsets = [1, 2, 0], sizes = [8, 8, 128], strides = [1, 1, 1]} : vector<10x10x128xf32> to vector<8x8x128xf32>
    %c5 = arith.constant 5 : index
    %c0_19 = arith.constant 0 : index
    %c0_20 = arith.constant 0 : index
    %c0_21 = arith.constant 0 : index
    %34 = vector.load %arg3[%c5, %c0_19, %c0_20, %c0_21] : memref<9x1x1x128xf32, #tpu.memory_space<vmem>>, vector<1x1x1x128xf32>
    %35 = vector.shape_cast %34 : vector<1x1x1x128xf32> to vector<1x1x128xf32>
    %36 = vector.broadcast %35 : vector<1x1x128xf32> to vector<8x8x128xf32>
    %37 = arith.mulf %33, %36 : vector<8x8x128xf32>
    %38 = arith.addf %32, %37 : vector<8x8x128xf32>
    %39 = vector.extract_strided_slice %1 {offsets = [2, 0, 0], sizes = [8, 8, 128], strides = [1, 1, 1]} : vector<10x10x128xf32> to vector<8x8x128xf32>
    %c6 = arith.constant 6 : index
    %c0_22 = arith.constant 0 : index
    %c0_23 = arith.constant 0 : index
    %c0_24 = arith.constant 0 : index
    %40 = vector.load %arg3[%c6, %c0_22, %c0_23, %c0_24] : memref<9x1x1x128xf32, #tpu.memory_space<vmem>>, vector<1x1x1x128xf32>
    %41 = vector.shape_cast %40 : vector<1x1x1x128xf32> to vector<1x1x128xf32>
    %42 = vector.broadcast %41 : vector<1x1x128xf32> to vector<8x8x128xf32>
    %43 = arith.mulf %39, %42 : vector<8x8x128xf32>
    %44 = arith.addf %38, %43 : vector<8x8x128xf32>
    %45 = vector.extract_strided_slice %1 {offsets = [2, 1, 0], sizes = [8, 8, 128], strides = [1, 1, 1]} : vector<10x10x128xf32> to vector<8x8x128xf32>
    %c7 = arith.constant 7 : index
    %c0_25 = arith.constant 0 : index
    %c0_26 = arith.constant 0 : index
    %c0_27 = arith.constant 0 : index
    %46 = vector.load %arg3[%c7, %c0_25, %c0_26, %c0_27] : memref<9x1x1x128xf32, #tpu.memory_space<vmem>>, vector<1x1x1x128xf32>
    %47 = vector.shape_cast %46 : vector<1x1x1x128xf32> to vector<1x1x128xf32>
    %48 = vector.broadcast %47 : vector<1x1x128xf32> to vector<8x8x128xf32>
    %49 = arith.mulf %45, %48 : vector<8x8x128xf32>
    %50 = arith.addf %44, %49 : vector<8x8x128xf32>
    %51 = vector.extract_strided_slice %1 {offsets = [2, 2, 0], sizes = [8, 8, 128], strides = [1, 1, 1]} : vector<10x10x128xf32> to vector<8x8x128xf32>
    %c8 = arith.constant 8 : index
    %c0_28 = arith.constant 0 : index
    %c0_29 = arith.constant 0 : index
    %c0_30 = arith.constant 0 : index
    %52 = vector.load %arg3[%c8, %c0_28, %c0_29, %c0_30] : memref<9x1x1x128xf32, #tpu.memory_space<vmem>>, vector<1x1x1x128xf32>
    %53 = vector.shape_cast %52 : vector<1x1x1x128xf32> to vector<1x1x128xf32>
    %54 = vector.broadcast %53 : vector<1x1x128xf32> to vector<8x8x128xf32>
    %55 = arith.mulf %51, %54 : vector<8x8x128xf32>
    %56 = arith.addf %50, %55 : vector<8x8x128xf32>
    %c0_31 = arith.constant 0 : index
    %c0_32 = arith.constant 0 : index
    %c0_33 = arith.constant 0 : index
    %57 = vector.load %arg4[%c0_31, %c0_32, %c0_33] : memref<1x1x128xf32, #tpu.memory_space<vmem>>, vector<1x1x128xf32>
    %58 = vector.broadcast %57 : vector<1x1x128xf32> to vector<8x8x128xf32>
    %59 = arith.addf %56, %58 : vector<8x8x128xf32>
    %60 = vector.shape_cast %59 : vector<8x8x128xf32> to vector<64x128xf32>
    %c0_34 = arith.constant 0 : index
    %c0_35 = arith.constant 0 : index
    %61 = vector.load %arg7[%c0_34, %c0_35] : memref<256x64xbf16, #tpu.memory_space<vmem>>, vector<256x64xbf16>
    %62 = arith.truncf %60 : vector<64x128xf32> to vector<64x128xbf16>
    %cst_36 = arith.constant dense<0.000000e+00> : vector<256x128xf32>
    %63 = tpu.matmul %61, %62, %cst_36 {dimension_numbers = #tpu.dot_dimension_numbers<[1], [0], [0], [1], [0, 0, 1, 1], [], []>} : vector<256x64xbf16>, vector<64x128xbf16>, vector<256x128xf32> -> vector<256x128xf32>
    %c0_37 = arith.constant 0 : index
    %c0_38 = arith.constant 0 : index
    %c0_39 = arith.constant 0 : index
    %c0_40 = arith.constant 0 : index
    %64 = vector.load %arg2[%c0_37, %c0_38, %c0_39, %c0_40] : memref<1x18x18x128xf32, #tpu.memory_space<vmem>>, vector<1x18x18x128xf32>
    %65 = vector.shape_cast %64 : vector<1x18x18x128xf32> to vector<18x18x128xf32>
    %cst_41 = arith.constant 0.000000e+00 : f32
    %66 = vector.broadcast %cst_41 : f32 to vector<16x16x128xf32>
    %67 = vector.extract_strided_slice %65 {offsets = [0, 0, 0], sizes = [16, 16, 128], strides = [1, 1, 1]} : vector<18x18x128xf32> to vector<16x16x128xf32>
    %c0_42 = arith.constant 0 : index
    %c0_43 = arith.constant 0 : index
    %c0_44 = arith.constant 0 : index
    %c0_45 = arith.constant 0 : index
    %68 = vector.load %arg5[%c0_42, %c0_43, %c0_44, %c0_45] : memref<9x1x1x128xf32, #tpu.memory_space<vmem>>, vector<1x1x1x128xf32>
    %69 = vector.shape_cast %68 : vector<1x1x1x128xf32> to vector<1x1x128xf32>
    %70 = vector.broadcast %69 : vector<1x1x128xf32> to vector<16x16x128xf32>
    %71 = arith.mulf %67, %70 : vector<16x16x128xf32>
    %72 = arith.addf %66, %71 : vector<16x16x128xf32>
    %73 = vector.extract_strided_slice %65 {offsets = [0, 1, 0], sizes = [16, 16, 128], strides = [1, 1, 1]} : vector<18x18x128xf32> to vector<16x16x128xf32>
    %c1_46 = arith.constant 1 : index
    %c0_47 = arith.constant 0 : index
    %c0_48 = arith.constant 0 : index
    %c0_49 = arith.constant 0 : index
    %74 = vector.load %arg5[%c1_46, %c0_47, %c0_48, %c0_49] : memref<9x1x1x128xf32, #tpu.memory_space<vmem>>, vector<1x1x1x128xf32>
    %75 = vector.shape_cast %74 : vector<1x1x1x128xf32> to vector<1x1x128xf32>
    %76 = vector.broadcast %75 : vector<1x1x128xf32> to vector<16x16x128xf32>
    %77 = arith.mulf %73, %76 : vector<16x16x128xf32>
    %78 = arith.addf %72, %77 : vector<16x16x128xf32>
    %79 = vector.extract_strided_slice %65 {offsets = [0, 2, 0], sizes = [16, 16, 128], strides = [1, 1, 1]} : vector<18x18x128xf32> to vector<16x16x128xf32>
    %c2_50 = arith.constant 2 : index
    %c0_51 = arith.constant 0 : index
    %c0_52 = arith.constant 0 : index
    %c0_53 = arith.constant 0 : index
    %80 = vector.load %arg5[%c2_50, %c0_51, %c0_52, %c0_53] : memref<9x1x1x128xf32, #tpu.memory_space<vmem>>, vector<1x1x1x128xf32>
    %81 = vector.shape_cast %80 : vector<1x1x1x128xf32> to vector<1x1x128xf32>
    %82 = vector.broadcast %81 : vector<1x1x128xf32> to vector<16x16x128xf32>
    %83 = arith.mulf %79, %82 : vector<16x16x128xf32>
    %84 = arith.addf %78, %83 : vector<16x16x128xf32>
    %85 = vector.extract_strided_slice %65 {offsets = [1, 0, 0], sizes = [16, 16, 128], strides = [1, 1, 1]} : vector<18x18x128xf32> to vector<16x16x128xf32>
    %c3_54 = arith.constant 3 : index
    %c0_55 = arith.constant 0 : index
    %c0_56 = arith.constant 0 : index
    %c0_57 = arith.constant 0 : index
    %86 = vector.load %arg5[%c3_54, %c0_55, %c0_56, %c0_57] : memref<9x1x1x128xf32, #tpu.memory_space<vmem>>, vector<1x1x1x128xf32>
    %87 = vector.shape_cast %86 : vector<1x1x1x128xf32> to vector<1x1x128xf32>
    %88 = vector.broadcast %87 : vector<1x1x128xf32> to vector<16x16x128xf32>
    %89 = arith.mulf %85, %88 : vector<16x16x128xf32>
    %90 = arith.addf %84, %89 : vector<16x16x128xf32>
    %91 = vector.extract_strided_slice %65 {offsets = [1, 1, 0], sizes = [16, 16, 128], strides = [1, 1, 1]} : vector<18x18x128xf32> to vector<16x16x128xf32>
    %c4_58 = arith.constant 4 : index
    %c0_59 = arith.constant 0 : index
    %c0_60 = arith.constant 0 : index
    %c0_61 = arith.constant 0 : index
    %92 = vector.load %arg5[%c4_58, %c0_59, %c0_60, %c0_61] : memref<9x1x1x128xf32, #tpu.memory_space<vmem>>, vector<1x1x1x128xf32>
    %93 = vector.shape_cast %92 : vector<1x1x1x128xf32> to vector<1x1x128xf32>
    %94 = vector.broadcast %93 : vector<1x1x128xf32> to vector<16x16x128xf32>
    %95 = arith.mulf %91, %94 : vector<16x16x128xf32>
    %96 = arith.addf %90, %95 : vector<16x16x128xf32>
    %97 = vector.extract_strided_slice %65 {offsets = [1, 2, 0], sizes = [16, 16, 128], strides = [1, 1, 1]} : vector<18x18x128xf32> to vector<16x16x128xf32>
    %c5_62 = arith.constant 5 : index
    %c0_63 = arith.constant 0 : index
    %c0_64 = arith.constant 0 : index
    %c0_65 = arith.constant 0 : index
    %98 = vector.load %arg5[%c5_62, %c0_63, %c0_64, %c0_65] : memref<9x1x1x128xf32, #tpu.memory_space<vmem>>, vector<1x1x1x128xf32>
    %99 = vector.shape_cast %98 : vector<1x1x1x128xf32> to vector<1x1x128xf32>
    %100 = vector.broadcast %99 : vector<1x1x128xf32> to vector<16x16x128xf32>
    %101 = arith.mulf %97, %100 : vector<16x16x128xf32>
    %102 = arith.addf %96, %101 : vector<16x16x128xf32>
    %103 = vector.extract_strided_slice %65 {offsets = [2, 0, 0], sizes = [16, 16, 128], strides = [1, 1, 1]} : vector<18x18x128xf32> to vector<16x16x128xf32>
    %c6_66 = arith.constant 6 : index
    %c0_67 = arith.constant 0 : index
    %c0_68 = arith.constant 0 : index
    %c0_69 = arith.constant 0 : index
    %104 = vector.load %arg5[%c6_66, %c0_67, %c0_68, %c0_69] : memref<9x1x1x128xf32, #tpu.memory_space<vmem>>, vector<1x1x1x128xf32>
    %105 = vector.shape_cast %104 : vector<1x1x1x128xf32> to vector<1x1x128xf32>
    %106 = vector.broadcast %105 : vector<1x1x128xf32> to vector<16x16x128xf32>
    %107 = arith.mulf %103, %106 : vector<16x16x128xf32>
    %108 = arith.addf %102, %107 : vector<16x16x128xf32>
    %109 = vector.extract_strided_slice %65 {offsets = [2, 1, 0], sizes = [16, 16, 128], strides = [1, 1, 1]} : vector<18x18x128xf32> to vector<16x16x128xf32>
    %c7_70 = arith.constant 7 : index
    %c0_71 = arith.constant 0 : index
    %c0_72 = arith.constant 0 : index
    %c0_73 = arith.constant 0 : index
    %110 = vector.load %arg5[%c7_70, %c0_71, %c0_72, %c0_73] : memref<9x1x1x128xf32, #tpu.memory_space<vmem>>, vector<1x1x1x128xf32>
    %111 = vector.shape_cast %110 : vector<1x1x1x128xf32> to vector<1x1x128xf32>
    %112 = vector.broadcast %111 : vector<1x1x128xf32> to vector<16x16x128xf32>
    %113 = arith.mulf %109, %112 : vector<16x16x128xf32>
    %114 = arith.addf %108, %113 : vector<16x16x128xf32>
    %115 = vector.extract_strided_slice %65 {offsets = [2, 2, 0], sizes = [16, 16, 128], strides = [1, 1, 1]} : vector<18x18x128xf32> to vector<16x16x128xf32>
    %c8_74 = arith.constant 8 : index
    %c0_75 = arith.constant 0 : index
    %c0_76 = arith.constant 0 : index
    %c0_77 = arith.constant 0 : index
    %116 = vector.load %arg5[%c8_74, %c0_75, %c0_76, %c0_77] : memref<9x1x1x128xf32, #tpu.memory_space<vmem>>, vector<1x1x1x128xf32>
    %117 = vector.shape_cast %116 : vector<1x1x1x128xf32> to vector<1x1x128xf32>
    %118 = vector.broadcast %117 : vector<1x1x128xf32> to vector<16x16x128xf32>
    %119 = arith.mulf %115, %118 : vector<16x16x128xf32>
    %120 = arith.addf %114, %119 : vector<16x16x128xf32>
    %c0_78 = arith.constant 0 : index
    %c0_79 = arith.constant 0 : index
    %c0_80 = arith.constant 0 : index
    %121 = vector.load %arg6[%c0_78, %c0_79, %c0_80] : memref<1x1x128xf32, #tpu.memory_space<vmem>>, vector<1x1x128xf32>
    %122 = vector.broadcast %121 : vector<1x1x128xf32> to vector<16x16x128xf32>
    %123 = arith.addf %120, %122 : vector<16x16x128xf32>
    %124 = vector.shape_cast %123 : vector<16x16x128xf32> to vector<256x128xf32>
    %125 = arith.truncf %63 : vector<256x128xf32> to vector<256x128xbf16>
    %126 = arith.truncf %124 : vector<256x128xf32> to vector<256x128xbf16>
    %127 = tpu.concatenate %125, %126 in 1 : vector<256x128xbf16>, vector<256x128xbf16> -> vector<256x256xbf16>
    %c0_81 = arith.constant 0 : index
    %c0_82 = arith.constant 0 : index
    %128 = vector.load %arg8[%c0_81, %c0_82] : memref<256x128xbf16, #tpu.memory_space<vmem>>, vector<256x128xbf16>
    %cst_83 = arith.constant dense<0.000000e+00> : vector<256x128xf32>
    %129 = tpu.matmul %127, %128, %cst_83 {dimension_numbers = #tpu.dot_dimension_numbers<[1], [0], [0], [1], [0, 0, 1, 1], [], []>} : vector<256x256xbf16>, vector<256x128xbf16>, vector<256x128xf32> -> vector<256x128xf32>
    %c0_84 = arith.constant 0 : index
    %c0_85 = arith.constant 0 : index
    %130 = vector.load %arg9[%c0_84, %c0_85] : memref<1x128xf32, #tpu.memory_space<vmem>>, vector<1x128xf32>
    %131 = vector.broadcast %130 : vector<1x128xf32> to vector<256x128xf32>
    %132 = arith.addf %129, %131 : vector<256x128xf32>
    %cst_86 = arith.constant 0.000000e+00 : f32
    %133 = vector.broadcast %cst_86 : f32 to vector<18x32x128xf32>
    %c0_87 = arith.constant 0 : index
    %c0_88 = arith.constant 0 : index
    %c0_89 = arith.constant 0 : index
    %134 = vector.load %arg17[%c0_87, %c0_88, %c0_89] : memref<18x32x128xf32, #tpu.memory_space<vmem>>, vector<18x32x128xf32>
    tpu.vector_store %arg17[%c0_87, %c0_88, %c0_89], %133 {strides = array<i32>} : memref<18x32x128xf32, #tpu.memory_space<vmem>>, vector<18x32x128xf32>,
    %135 = vector.extract_strided_slice %132 {offsets = [0, 0], sizes = [16, 128], strides = [1, 1]} : vector<256x128xf32> to vector<16x128xf32>
    %c1_90 = arith.constant 1 : index
    %c8_91 = arith.constant 8 : index
    %c0_92 = arith.constant 0 : index
    %136 = vector.load %arg17[%c1_90, %c8_91, %c0_92] : memref<18x32x128xf32, #tpu.memory_space<vmem>>, vector<1x16x128xf32>
    %137 = vector.shape_cast %136 : vector<1x16x128xf32> to vector<16x128xf32>
    %138 = vector.shape_cast %135 : vector<16x128xf32> to vector<1x16x128xf32>
    tpu.vector_store %arg17[%c1_90, %c8_91, %c0_92], %138 {strides = array<i32>} : memref<18x32x128xf32, #tpu.memory_space<vmem>>, vector<1x16x128xf32>,
    %139 = vector.extract_strided_slice %132 {offsets = [16, 0], sizes = [16, 128], strides = [1, 1]} : vector<256x128xf32> to vector<16x128xf32>
    %c2_93 = arith.constant 2 : index
    %c8_94 = arith.constant 8 : index
    %c0_95 = arith.constant 0 : index
    %140 = vector.load %arg17[%c2_93, %c8_94, %c0_95] : memref<18x32x128xf32, #tpu.memory_space<vmem>>, vector<1x16x128xf32>
    %141 = vector.shape_cast %140 : vector<1x16x128xf32> to vector<16x128xf32>
    %142 = vector.shape_cast %139 : vector<16x128xf32> to vector<1x16x128xf32>
    tpu.vector_store %arg17[%c2_93, %c8_94, %c0_95], %142 {strides = array<i32>} : memref<18x32x128xf32, #tpu.memory_space<vmem>>, vector<1x16x128xf32>,
    %143 = vector.extract_strided_slice %132 {offsets = [32, 0], sizes = [16, 128], strides = [1, 1]} : vector<256x128xf32> to vector<16x128xf32>
    %c3_96 = arith.constant 3 : index
    %c8_97 = arith.constant 8 : index
    %c0_98 = arith.constant 0 : index
    %144 = vector.load %arg17[%c3_96, %c8_97, %c0_98] : memref<18x32x128xf32, #tpu.memory_space<vmem>>, vector<1x16x128xf32>
    %145 = vector.shape_cast %144 : vector<1x16x128xf32> to vector<16x128xf32>
    %146 = vector.shape_cast %143 : vector<16x128xf32> to vector<1x16x128xf32>
    tpu.vector_store %arg17[%c3_96, %c8_97, %c0_98], %146 {strides = array<i32>} : memref<18x32x128xf32, #tpu.memory_space<vmem>>, vector<1x16x128xf32>,
    %147 = vector.extract_strided_slice %132 {offsets = [48, 0], sizes = [16, 128], strides = [1, 1]} : vector<256x128xf32> to vector<16x128xf32>
    %c4_99 = arith.constant 4 : index
    %c8_100 = arith.constant 8 : index
    %c0_101 = arith.constant 0 : index
    %148 = vector.load %arg17[%c4_99, %c8_100, %c0_101] : memref<18x32x128xf32, #tpu.memory_space<vmem>>, vector<1x16x128xf32>
    %149 = vector.shape_cast %148 : vector<1x16x128xf32> to vector<16x128xf32>
    %150 = vector.shape_cast %147 : vector<16x128xf32> to vector<1x16x128xf32>
    tpu.vector_store %arg17[%c4_99, %c8_100, %c0_101], %150 {strides = array<i32>} : memref<18x32x128xf32, #tpu.memory_space<vmem>>, vector<1x16x128xf32>,
    %151 = vector.extract_strided_slice %132 {offsets = [64, 0], sizes = [16, 128], strides = [1, 1]} : vector<256x128xf32> to vector<16x128xf32>
    %c5_102 = arith.constant 5 : index
    %c8_103 = arith.constant 8 : index
    %c0_104 = arith.constant 0 : index
    %152 = vector.load %arg17[%c5_102, %c8_103, %c0_104] : memref<18x32x128xf32, #tpu.memory_space<vmem>>, vector<1x16x128xf32>
    %153 = vector.shape_cast %152 : vector<1x16x128xf32> to vector<16x128xf32>
    %154 = vector.shape_cast %151 : vector<16x128xf32> to vector<1x16x128xf32>
    tpu.vector_store %arg17[%c5_102, %c8_103, %c0_104], %154 {strides = array<i32>} : memref<18x32x128xf32, #tpu.memory_space<vmem>>, vector<1x16x128xf32>,
    %155 = vector.extract_strided_slice %132 {offsets = [80, 0], sizes = [16, 128], strides = [1, 1]} : vector<256x128xf32> to vector<16x128xf32>
    %c6_105 = arith.constant 6 : index
    %c8_106 = arith.constant 8 : index
    %c0_107 = arith.constant 0 : index
    %156 = vector.load %arg17[%c6_105, %c8_106, %c0_107] : memref<18x32x128xf32, #tpu.memory_space<vmem>>, vector<1x16x128xf32>
    %157 = vector.shape_cast %156 : vector<1x16x128xf32> to vector<16x128xf32>
    %158 = vector.shape_cast %155 : vector<16x128xf32> to vector<1x16x128xf32>
    tpu.vector_store %arg17[%c6_105, %c8_106, %c0_107], %158 {strides = array<i32>} : memref<18x32x128xf32, #tpu.memory_space<vmem>>, vector<1x16x128xf32>,
    %159 = vector.extract_strided_slice %132 {offsets = [96, 0], sizes = [16, 128], strides = [1, 1]} : vector<256x128xf32> to vector<16x128xf32>
    %c7_108 = arith.constant 7 : index
    %c8_109 = arith.constant 8 : index
    %c0_110 = arith.constant 0 : index
    %160 = vector.load %arg17[%c7_108, %c8_109, %c0_110] : memref<18x32x128xf32, #tpu.memory_space<vmem>>, vector<1x16x128xf32>
    %161 = vector.shape_cast %160 : vector<1x16x128xf32> to vector<16x128xf32>
    %162 = vector.shape_cast %159 : vector<16x128xf32> to vector<1x16x128xf32>
    tpu.vector_store %arg17[%c7_108, %c8_109, %c0_110], %162 {strides = array<i32>} : memref<18x32x128xf32, #tpu.memory_space<vmem>>, vector<1x16x128xf32>,
    %163 = vector.extract_strided_slice %132 {offsets = [112, 0], sizes = [16, 128], strides = [1, 1]} : vector<256x128xf32> to vector<16x128xf32>
    %c8_111 = arith.constant 8 : index
    %c8_112 = arith.constant 8 : index
    %c0_113 = arith.constant 0 : index
    %164 = vector.load %arg17[%c8_111, %c8_112, %c0_113] : memref<18x32x128xf32, #tpu.memory_space<vmem>>, vector<1x16x128xf32>
    %165 = vector.shape_cast %164 : vector<1x16x128xf32> to vector<16x128xf32>
    %166 = vector.shape_cast %163 : vector<16x128xf32> to vector<1x16x128xf32>
    tpu.vector_store %arg17[%c8_111, %c8_112, %c0_113], %166 {strides = array<i32>} : memref<18x32x128xf32, #tpu.memory_space<vmem>>, vector<1x16x128xf32>,
    %167 = vector.extract_strided_slice %132 {offsets = [128, 0], sizes = [16, 128], strides = [1, 1]} : vector<256x128xf32> to vector<16x128xf32>
    %c9 = arith.constant 9 : index
    %c8_114 = arith.constant 8 : index
    %c0_115 = arith.constant 0 : index
    %168 = vector.load %arg17[%c9, %c8_114, %c0_115] : memref<18x32x128xf32, #tpu.memory_space<vmem>>, vector<1x16x128xf32>
    %169 = vector.shape_cast %168 : vector<1x16x128xf32> to vector<16x128xf32>
    %170 = vector.shape_cast %167 : vector<16x128xf32> to vector<1x16x128xf32>
    tpu.vector_store %arg17[%c9, %c8_114, %c0_115], %170 {strides = array<i32>} : memref<18x32x128xf32, #tpu.memory_space<vmem>>, vector<1x16x128xf32>,
    %171 = vector.extract_strided_slice %132 {offsets = [144, 0], sizes = [16, 128], strides = [1, 1]} : vector<256x128xf32> to vector<16x128xf32>
    %c10 = arith.constant 10 : index
    %c8_116 = arith.constant 8 : index
    %c0_117 = arith.constant 0 : index
    %172 = vector.load %arg17[%c10, %c8_116, %c0_117] : memref<18x32x128xf32, #tpu.memory_space<vmem>>, vector<1x16x128xf32>
    %173 = vector.shape_cast %172 : vector<1x16x128xf32> to vector<16x128xf32>
    %174 = vector.shape_cast %171 : vector<16x128xf32> to vector<1x16x128xf32>
    tpu.vector_store %arg17[%c10, %c8_116, %c0_117], %174 {strides = array<i32>} : memref<18x32x128xf32, #tpu.memory_space<vmem>>, vector<1x16x128xf32>,
    %175 = vector.extract_strided_slice %132 {offsets = [160, 0], sizes = [16, 128], strides = [1, 1]} : vector<256x128xf32> to vector<16x128xf32>
    %c11 = arith.constant 11 : index
    %c8_118 = arith.constant 8 : index
    %c0_119 = arith.constant 0 : index
    %176 = vector.load %arg17[%c11, %c8_118, %c0_119] : memref<18x32x128xf32, #tpu.memory_space<vmem>>, vector<1x16x128xf32>
    %177 = vector.shape_cast %176 : vector<1x16x128xf32> to vector<16x128xf32>
    %178 = vector.shape_cast %175 : vector<16x128xf32> to vector<1x16x128xf32>
    tpu.vector_store %arg17[%c11, %c8_118, %c0_119], %178 {strides = array<i32>} : memref<18x32x128xf32, #tpu.memory_space<vmem>>, vector<1x16x128xf32>,
    %179 = vector.extract_strided_slice %132 {offsets = [176, 0], sizes = [16, 128], strides = [1, 1]} : vector<256x128xf32> to vector<16x128xf32>
    %c12 = arith.constant 12 : index
    %c8_120 = arith.constant 8 : index
    %c0_121 = arith.constant 0 : index
    %180 = vector.load %arg17[%c12, %c8_120, %c0_121] : memref<18x32x128xf32, #tpu.memory_space<vmem>>, vector<1x16x128xf32>
    %181 = vector.shape_cast %180 : vector<1x16x128xf32> to vector<16x128xf32>
    %182 = vector.shape_cast %179 : vector<16x128xf32> to vector<1x16x128xf32>
    tpu.vector_store %arg17[%c12, %c8_120, %c0_121], %182 {strides = array<i32>} : memref<18x32x128xf32, #tpu.memory_space<vmem>>, vector<1x16x128xf32>,
    %183 = vector.extract_strided_slice %132 {offsets = [192, 0], sizes = [16, 128], strides = [1, 1]} : vector<256x128xf32> to vector<16x128xf32>
    %c13 = arith.constant 13 : index
    %c8_122 = arith.constant 8 : index
    %c0_123 = arith.constant 0 : index
    %184 = vector.load %arg17[%c13, %c8_122, %c0_123] : memref<18x32x128xf32, #tpu.memory_space<vmem>>, vector<1x16x128xf32>
    %185 = vector.shape_cast %184 : vector<1x16x128xf32> to vector<16x128xf32>
    %186 = vector.shape_cast %183 : vector<16x128xf32> to vector<1x16x128xf32>
    tpu.vector_store %arg17[%c13, %c8_122, %c0_123], %186 {strides = array<i32>} : memref<18x32x128xf32, #tpu.memory_space<vmem>>, vector<1x16x128xf32>,
    %187 = vector.extract_strided_slice %132 {offsets = [208, 0], sizes = [16, 128], strides = [1, 1]} : vector<256x128xf32> to vector<16x128xf32>
    %c14 = arith.constant 14 : index
    %c8_124 = arith.constant 8 : index
    %c0_125 = arith.constant 0 : index
    %188 = vector.load %arg17[%c14, %c8_124, %c0_125] : memref<18x32x128xf32, #tpu.memory_space<vmem>>, vector<1x16x128xf32>
    %189 = vector.shape_cast %188 : vector<1x16x128xf32> to vector<16x128xf32>
    %190 = vector.shape_cast %187 : vector<16x128xf32> to vector<1x16x128xf32>
    tpu.vector_store %arg17[%c14, %c8_124, %c0_125], %190 {strides = array<i32>} : memref<18x32x128xf32, #tpu.memory_space<vmem>>, vector<1x16x128xf32>,
    %191 = vector.extract_strided_slice %132 {offsets = [224, 0], sizes = [16, 128], strides = [1, 1]} : vector<256x128xf32> to vector<16x128xf32>
    %c15 = arith.constant 15 : index
    %c8_126 = arith.constant 8 : index
    %c0_127 = arith.constant 0 : index
    %192 = vector.load %arg17[%c15, %c8_126, %c0_127] : memref<18x32x128xf32, #tpu.memory_space<vmem>>, vector<1x16x128xf32>
    %193 = vector.shape_cast %192 : vector<1x16x128xf32> to vector<16x128xf32>
    %194 = vector.shape_cast %191 : vector<16x128xf32> to vector<1x16x128xf32>
    tpu.vector_store %arg17[%c15, %c8_126, %c0_127], %194 {strides = array<i32>} : memref<18x32x128xf32, #tpu.memory_space<vmem>>, vector<1x16x128xf32>,
    %195 = vector.extract_strided_slice %132 {offsets = [240, 0], sizes = [16, 128], strides = [1, 1]} : vector<256x128xf32> to vector<16x128xf32>
    %c16 = arith.constant 16 : index
    %c8_128 = arith.constant 8 : index
    %c0_129 = arith.constant 0 : index
    %196 = vector.load %arg17[%c16, %c8_128, %c0_129] : memref<18x32x128xf32, #tpu.memory_space<vmem>>, vector<1x16x128xf32>
    %197 = vector.shape_cast %196 : vector<1x16x128xf32> to vector<16x128xf32>
    %198 = vector.shape_cast %195 : vector<16x128xf32> to vector<1x16x128xf32>
    tpu.vector_store %arg17[%c16, %c8_128, %c0_129], %198 {strides = array<i32>} : memref<18x32x128xf32, #tpu.memory_space<vmem>>, vector<1x16x128xf32>,
    %c0_130 = arith.constant 0 : index
    %c0_131 = arith.constant 0 : index
    %c0_132 = arith.constant 0 : index
    %199 = vector.load %arg17[%c0_130, %c0_131, %c0_132] : memref<18x32x128xf32, #tpu.memory_space<vmem>>, vector<18x32x128xf32>
    %200 = vector.extract_strided_slice %199 {offsets = [0, 7, 0], sizes = [16, 16, 128], strides = [1, 1, 1]} : vector<18x32x128xf32> to vector<16x16x128xf32>
    %201 = vector.shape_cast %200 : vector<16x16x128xf32> to vector<256x128xf32>
    %202 = arith.truncf %201 : vector<256x128xf32> to vector<256x128xbf16>
    %203 = vector.extract_strided_slice %199 {offsets = [0, 8, 0], sizes = [16, 16, 128], strides = [1, 1, 1]} : vector<18x32x128xf32> to vector<16x16x128xf32>
    %204 = vector.shape_cast %203 : vector<16x16x128xf32> to vector<256x128xf32>
    %205 = arith.truncf %204 : vector<256x128xf32> to vector<256x128xbf16>
    %206 = vector.extract_strided_slice %199 {offsets = [0, 9, 0], sizes = [16, 16, 128], strides = [1, 1, 1]} : vector<18x32x128xf32> to vector<16x16x128xf32>
    %207 = vector.shape_cast %206 : vector<16x16x128xf32> to vector<256x128xf32>
    %208 = arith.truncf %207 : vector<256x128xf32> to vector<256x128xbf16>
    %209 = vector.extract_strided_slice %199 {offsets = [1, 7, 0], sizes = [16, 16, 128], strides = [1, 1, 1]} : vector<18x32x128xf32> to vector<16x16x128xf32>
    %210 = vector.shape_cast %209 : vector<16x16x128xf32> to vector<256x128xf32>
    %211 = arith.truncf %210 : vector<256x128xf32> to vector<256x128xbf16>
    %212 = vector.extract_strided_slice %199 {offsets = [1, 8, 0], sizes = [16, 16, 128], strides = [1, 1, 1]} : vector<18x32x128xf32> to vector<16x16x128xf32>
    %213 = vector.shape_cast %212 : vector<16x16x128xf32> to vector<256x128xf32>
    %214 = arith.truncf %213 : vector<256x128xf32> to vector<256x128xbf16>
    %215 = vector.extract_strided_slice %199 {offsets = [1, 9, 0], sizes = [16, 16, 128], strides = [1, 1, 1]} : vector<18x32x128xf32> to vector<16x16x128xf32>
    %216 = vector.shape_cast %215 : vector<16x16x128xf32> to vector<256x128xf32>
    %217 = arith.truncf %216 : vector<256x128xf32> to vector<256x128xbf16>
    %218 = vector.extract_strided_slice %199 {offsets = [2, 7, 0], sizes = [16, 16, 128], strides = [1, 1, 1]} : vector<18x32x128xf32> to vector<16x16x128xf32>
    %219 = vector.shape_cast %218 : vector<16x16x128xf32> to vector<256x128xf32>
    %220 = arith.truncf %219 : vector<256x128xf32> to vector<256x128xbf16>
    %221 = vector.extract_strided_slice %199 {offsets = [2, 8, 0], sizes = [16, 16, 128], strides = [1, 1, 1]} : vector<18x32x128xf32> to vector<16x16x128xf32>
    %222 = vector.shape_cast %221 : vector<16x16x128xf32> to vector<256x128xf32>
    %223 = arith.truncf %222 : vector<256x128xf32> to vector<256x128xbf16>
    %224 = vector.extract_strided_slice %199 {offsets = [2, 9, 0], sizes = [16, 16, 128], strides = [1, 1, 1]} : vector<18x32x128xf32> to vector<16x16x128xf32>
    %225 = vector.shape_cast %224 : vector<16x16x128xf32> to vector<256x128xf32>
    %226 = arith.truncf %225 : vector<256x128xf32> to vector<256x128xbf16>
    %227 = tpu.concatenate %202, %205, %208, %211, %214, %217, %220, %223, %226 in 1 : vector<256x128xbf16>, vector<256x128xbf16>, vector<256x128xbf16>, vector<256x128xbf16>, vector<256x128xbf16>, vector<256x128xbf16>, vector<256x128xbf16>, vector<256x128xbf16>, vector<256x128xbf16> -> vector<256x1152xbf16>
    %c0_133 = arith.constant 0 : index
    %c0_134 = arith.constant 0 : index
    %228 = vector.load %arg10[%c0_133, %c0_134] : memref<1152x128xbf16, #tpu.memory_space<vmem>>, vector<1152x128xbf16>
    %cst_135 = arith.constant dense<0.000000e+00> : vector<256x128xf32>
    %229 = tpu.matmul %227, %228, %cst_135 {dimension_numbers = #tpu.dot_dimension_numbers<[1], [0], [0], [1], [0, 0, 1, 1], [], []>} : vector<256x1152xbf16>, vector<1152x128xbf16>, vector<256x128xf32> -> vector<256x128xf32>
    %c0_136 = arith.constant 0 : index
    %c0_137 = arith.constant 0 : index
    %230 = vector.load %arg11[%c0_136, %c0_137] : memref<1x128xf32, #tpu.memory_space<vmem>>, vector<1x128xf32>
    %231 = vector.broadcast %230 : vector<1x128xf32> to vector<256x128xf32>
    %232 = arith.addf %229, %231 : vector<256x128xf32>
    %cst_138 = arith.constant dense<0.000000e+00> : vector<128xf32>
    %233 = vector.multi_reduction <add>, %232, %cst_138 [0] : vector<256x128xf32> to vector<128xf32>
    %234 = vector.shape_cast %233 : vector<128xf32> to vector<1x128xf32>
    %cst_139 = arith.constant 2.560000e+02 : f32
    %235 = vector.broadcast %cst_139 : f32 to vector<1x128xf32>
    %236 = arith.divf %234, %235 : vector<1x128xf32>
    %c0_140 = arith.constant 0 : index
    %c0_141 = arith.constant 0 : index
    %237 = vector.load %arg12[%c0_140, %c0_141] : memref<128x8xf32, #tpu.memory_space<vmem>>, vector<128x8xf32>
    %cst_142 = arith.constant dense<0.000000e+00> : vector<1x8xf32>
    %238 = tpu.matmul %236, %237, %cst_142 {dimension_numbers = #tpu.dot_dimension_numbers<[1], [0], [0], [1], [0, 0, 1, 1], [], []>} : vector<1x128xf32>, vector<128x8xf32>, vector<1x8xf32> -> vector<1x8xf32>
    %cst_143 = arith.constant 0.000000e+00 : f32
    %239 = vector.broadcast %cst_143 : f32 to vector<1x8xf32>
    %240 = arith.maximumf %238, %239 : vector<1x8xf32>
    %c0_144 = arith.constant 0 : index
    %c0_145 = arith.constant 0 : index
    %241 = vector.load %arg13[%c0_144, %c0_145] : memref<8x128xf32, #tpu.memory_space<vmem>>, vector<8x128xf32>
    %cst_146 = arith.constant dense<0.000000e+00> : vector<1x128xf32>
    %242 = tpu.matmul %240, %241, %cst_146 {dimension_numbers = #tpu.dot_dimension_numbers<[1], [0], [0], [1], [0, 0, 1, 1], [], []>} : vector<1x8xf32>, vector<8x128xf32>, vector<1x128xf32> -> vector<1x128xf32>
    %243 = arith.negf %242 : vector<1x128xf32>
    %244 = math.exp %243 : vector<1x128xf32>
    %cst_147 = arith.constant 1.000000e+00 : f32
    %245 = vector.broadcast %cst_147 : f32 to vector<1x128xf32>
    %246 = arith.addf %245, %244 : vector<1x128xf32>
    %247 = arith.divf %245, %246 : vector<1x128xf32>
    %248 = vector.broadcast %247 : vector<1x128xf32> to vector<256x128xf32>
    %249 = arith.mulf %232, %248 : vector<256x128xf32>
    %250 = arith.truncf %249 : vector<256x128xf32> to vector<256x128xbf16>
    %c0_148 = arith.constant 0 : index
    %c0_149 = arith.constant 0 : index
    %251 = vector.load %arg14[%c0_148, %c0_149] : memref<128x128xbf16, #tpu.memory_space<vmem>>, vector<128x128xbf16>
    %cst_150 = arith.constant dense<0.000000e+00> : vector<256x128xf32>
    %252 = tpu.matmul %250, %251, %cst_150 {dimension_numbers = #tpu.dot_dimension_numbers<[1], [0], [0], [1], [0, 0, 1, 1], [], []>} : vector<256x128xbf16>, vector<128x128xbf16>, vector<256x128xf32> -> vector<256x128xf32>
    %c0_151 = arith.constant 0 : index
    %c0_152 = arith.constant 0 : index
    %253 = vector.load %arg15[%c0_151, %c0_152] : memref<1x128xf32, #tpu.memory_space<vmem>>, vector<1x128xf32>
    %254 = vector.broadcast %253 : vector<1x128xf32> to vector<256x128xf32>
    %255 = arith.addf %252, %254 : vector<256x128xf32>
    %256 = tpu.transpose %255, [1, 0] : vector<256x128xf32> -> vector<128x256xf32>
    %c0_153 = arith.constant 0 : index
    %c0_154 = arith.constant 0 : index
    %c0_155 = arith.constant 0 : index
    %257 = vector.load %arg16[%c0_153, %c0_154, %c0_155] : memref<1x128x256xf32, #tpu.memory_space<vmem>>, vector<1x128x256xf32>
    %258 = vector.shape_cast %257 : vector<1x128x256xf32> to vector<128x256xf32>
    %259 = vector.shape_cast %256 : vector<128x256xf32> to vector<1x128x256xf32>
    tpu.vector_store %arg16[%c0_153, %c0_154, %c0_155], %259 {strides = array<i32>} : memref<1x128x256xf32, #tpu.memory_space<vmem>>, vector<1x128x256xf32>,
    return
  }
  func.func @transform_0(%arg0: i32) -> (i32, i32, i32, i32) {
    %c0_i32 = arith.constant 0 : i32
    %c0_i32_0 = arith.constant 0 : i32
    %c0_i32_1 = arith.constant 0 : i32
    %c0_i32_2 = arith.constant 0 : i32
    return %arg0, %c0_i32, %c0_i32_0, %c0_i32_1 : i32, i32, i32, i32
  }
  func.func @transform_1(%arg0: i32) -> (i32, i32, i32, i32) {
    %c0_i32 = arith.constant 0 : i32
    %c0_i32_0 = arith.constant 0 : i32
    %c0_i32_1 = arith.constant 0 : i32
    %c0_i32_2 = arith.constant 0 : i32
    return %arg0, %c0_i32, %c0_i32_0, %c0_i32_1 : i32, i32, i32, i32
  }
  func.func @transform_2(%arg0: i32) -> (i32, i32, i32, i32) {
    %c0_i32 = arith.constant 0 : i32
    %c0_i32_0 = arith.constant 0 : i32
    %c0_i32_1 = arith.constant 0 : i32
    %c0_i32_2 = arith.constant 0 : i32
    %c0_i32_3 = arith.constant 0 : i32
    return %c0_i32, %c0_i32_0, %c0_i32_1, %c0_i32_2 : i32, i32, i32, i32
  }
  func.func @transform_3(%arg0: i32) -> (i32, i32, i32) {
    %c0_i32 = arith.constant 0 : i32
    %c0_i32_0 = arith.constant 0 : i32
    %c0_i32_1 = arith.constant 0 : i32
    %c0_i32_2 = arith.constant 0 : i32
    return %c0_i32, %c0_i32_0, %c0_i32_1 : i32, i32, i32
  }
  func.func @transform_4(%arg0: i32) -> (i32, i32, i32, i32) {
    %c0_i32 = arith.constant 0 : i32
    %c0_i32_0 = arith.constant 0 : i32
    %c0_i32_1 = arith.constant 0 : i32
    %c0_i32_2 = arith.constant 0 : i32
    %c0_i32_3 = arith.constant 0 : i32
    return %c0_i32, %c0_i32_0, %c0_i32_1, %c0_i32_2 : i32, i32, i32, i32
  }
  func.func @transform_5(%arg0: i32) -> (i32, i32, i32) {
    %c0_i32 = arith.constant 0 : i32
    %c0_i32_0 = arith.constant 0 : i32
    %c0_i32_1 = arith.constant 0 : i32
    %c0_i32_2 = arith.constant 0 : i32
    return %c0_i32, %c0_i32_0, %c0_i32_1 : i32, i32, i32
  }
  func.func @transform_6(%arg0: i32) -> (i32, i32) {
    %c0_i32 = arith.constant 0 : i32
    %c0_i32_0 = arith.constant 0 : i32
    %c0_i32_1 = arith.constant 0 : i32
    return %c0_i32, %c0_i32_0 : i32, i32
  }
  func.func @transform_7(%arg0: i32) -> (i32, i32) {
    %c0_i32 = arith.constant 0 : i32
    %c0_i32_0 = arith.constant 0 : i32
    %c0_i32_1 = arith.constant 0 : i32
    return %c0_i32, %c0_i32_0 : i32, i32
  }
  func.func @transform_8(%arg0: i32) -> (i32, i32) {
    %c0_i32 = arith.constant 0 : i32
    %c0_i32_0 = arith.constant 0 : i32
    %c0_i32_1 = arith.constant 0 : i32
    return %c0_i32, %c0_i32_0 : i32, i32
  }
  func.func @transform_9(%arg0: i32) -> (i32, i32) {
    %c0_i32 = arith.constant 0 : i32
    %c0_i32_0 = arith.constant 0 : i32
    %c0_i32_1 = arith.constant 0 : i32
    return %c0_i32, %c0_i32_0 : i32, i32
  }
  func.func @transform_10(%arg0: i32) -> (i32, i32) {
    %c0_i32 = arith.constant 0 : i32
    %c0_i32_0 = arith.constant 0 : i32
    %c0_i32_1 = arith.constant 0 : i32
    return %c0_i32, %c0_i32_0 : i32, i32
  }
  func.func @transform_11(%arg0: i32) -> (i32, i32) {
    %c0_i32 = arith.constant 0 : i32
    %c0_i32_0 = arith.constant 0 : i32
    %c0_i32_1 = arith.constant 0 : i32
    return %c0_i32, %c0_i32_0 : i32, i32
  }
  func.func @transform_12(%arg0: i32) -> (i32, i32) {
    %c0_i32 = arith.constant 0 : i32
    %c0_i32_0 = arith.constant 0 : i32
    %c0_i32_1 = arith.constant 0 : i32
    return %c0_i32, %c0_i32_0 : i32, i32
  }
  func.func @transform_13(%arg0: i32) -> (i32, i32) {
    %c0_i32 = arith.constant 0 : i32
    %c0_i32_0 = arith.constant 0 : i32
    %c0_i32_1 = arith.constant 0 : i32
    return %c0_i32, %c0_i32_0 : i32, i32
  }
  func.func @transform_14(%arg0: i32) -> (i32, i32) {
    %c0_i32 = arith.constant 0 : i32
    %c0_i32_0 = arith.constant 0 : i32
    %c0_i32_1 = arith.constant 0 : i32
    return %c0_i32, %c0_i32_0 : i32, i32
  }
  func.func @transform_15(%arg0: i32) -> (i32, i32, i32) {
    %c0_i32 = arith.constant 0 : i32
    %c0_i32_0 = arith.constant 0 : i32
    %c0_i32_1 = arith.constant 0 : i32
    return %arg0, %c0_i32, %c0_i32_0 : i32, i32, i32
  }
}

</mosaic_0001>

<bundles_post_ra>
// kernel: integration_forward.1
= control target key start
LH: loop header
LB: loop body
LE: loop exit
PB: predicated region body
PF: predicated region fallthrough
CT: control target
= control target key end

     0   :  { %s7451_s18 = smov 0   ;;  %s10594_s0 = inlined_call_operand.vmem [shape: f32[2,10,10,128], index: 0, kind: input, shape index: {}]   ;;  %s10595_s1 = inlined_call_operand.vmem [shape: f32[2,18,18,128], index: 1, kind: input, shape index: {}]   ;;  %s10596_s2 = inlined_call_operand.vmem [shape: f32[9,1,1,128], index: 2, kind: input, shape index: {}]   ;;  %s10597_s3 = inlined_call_operand.vmem [shape: f32[1,1,128], index: 3, kind: input, shape index: {}]   ;;  %s10598_s4 = inlined_call_operand.vmem [shape: f32[9,1,1,128], index: 4, kind: input, shape index: {}]   ;;  %s10599_s5 = inlined_call_operand.vmem [shape: f32[1,1,128], index: 5, kind: input, shape index: {}]   ;;  %s10600_s6 = inlined_call_operand.vmem [shape: bf16[256,64], index: 6, kind: input, shape index: {}]   ;;  %s10601_s7 = inlined_call_operand.vmem [shape: bf16[256,128], index: 7, kind: input, shape index: {}]   ;;  %s10602_s8 = inlined_call_operand.vmem [shape: f32[1,128], index: 8, kind: input, shape index: {}]   ;;  %s10603_s9 = inlined_call_operand.vmem [shape: bf16[1152,128], index: 9, kind: input, shape index: {}]   ;;  %s10604_s10 = inlined_call_operand.vmem [shape: f32[1,128], index: 10, kind: input, shape index: {}]   ;;  %s10605_s11 = inlined_call_operand.vmem [shape: f32[128,8], index: 11, kind: input, shape index: {}]   ;;  %s10606_s12 = inlined_call_operand.vmem [shape: f32[8,128], index: 12, kind: input, shape index: {}]   ;;  %s10607_s13 = inlined_call_operand.vmem [shape: bf16[128,128], index: 13, kind: input, shape index: {}]   ;;  %s10608_s14 = inlined_call_operand.vmem [shape: f32[1,128], index: 14, kind: input, shape index: {}]   ;;  %s10609_s15 = inlined_call_operand.vmem [shape: f32[2,128,256], index: 15, kind: output, shape index: {}]  }
   0x1 LB: > { %s6167_s19 = sadd.s32 4294967295, %s7366_s18   ;;  %p6171_p0 = scmp.ge.s32.totalorder %s7366_s18, 1  ;;  %s7366_s18 = sphi %s7451_s18, %s25_s18  }
   0x2   : > { %p447_p1 = scmp.lt.s32.totalorder %s7366_s18, 3 }
   0x4   : > { %p448_p2 = pnand %p6171_p0, %p447_p1 }
   0x5   : > { %p500_p3 = scmp.lt.s32.totalorder (!%p448_p2), %s6167_s19, 1  ;;  %v7224_v0 = vld [vmem:[%s10600_s6] sm:$0xff] (!%p448_p2)   ;;  %vm1220_vm0 = vcmask (!%p448_p2), 523264   ;;  %vm599_vm1 = vcmask (!%p448_p2), 1046528   ;;  %vm680_vm2 = vcmask (!%p448_p2), 1045504   ;;  %vm3794_vm3 = vcmask (!%p448_p2), 1040384  }
   0x6   : > { %451 = sbr.rel (%p448_p2) target bundleno = 2010 (0x7da), region = 80  ;;  %v7467_v1 = vld [vmem:[%s10596_s2] ss:$0 sm:$0xff] (!%p448_p2)  ;;  %7003 = vmatprep.mubr.msk.bf16.mxu0 (!%p448_p2), %vm1220_vm0, %v7224_v0  ;;  %v7474_v2 = vld [vmem:[%s10596_s2 + $0x1] ss:$0 sm:$0xff] (!%p448_p2)  ;;  %vm7370_vm4 = vmmov (!%p448_p2), 0  }
   0x7   : > { %v7479_v3 = vld [vmem:[%s10596_s2 + $0x2] ss:$0 sm:$0xff] (!%p448_p2)  ;;  %v7501_v16 = vld [vmem:[%s10596_s2 + $0x3] ss:$0 sm:$0xff] (!%p448_p2)  ;;  %v7508_v25 = vld [vmem:[%s10596_s2 + $0x4] ss:$0 sm:$0xff] (!%p448_p2) }
   0x8   : > { %v7518_v31 = vld [vmem:[%s10596_s2 + $0x5] ss:$0 sm:$0xff] (!%p448_p2)  ;;  %v7538_v45 = vld [vmem:[%s10596_s2 + $0x6] ss:$0 sm:$0xff] (!%p448_p2)  ;;  %v7544_v50 = vld [vmem:[%s10596_s2 + $0x7] ss:$0 sm:$0xff] (!%p448_p2) }
   0x9   : > { %v7551_v55 = vld [vmem:[%s10596_s2 + $0x8] ss:$0 sm:$0xff] (!%p448_p2)  ;;  %vm5640_vm5 = vcmask (!%p448_p2), 64512  }
   0xd   : > { %s10614_s19 = smov (!%p500_p3, %s6167_s19), 1 }
   0xe   : > { %s7211_s24 = smul.u32 160, %s10614_s19 }
   0xf   : > { %s7212_s20 = smul.u32 432, %s10614_s19 }
  0x10   : > { %s7484_s16 = scalar_lea.vmem %s10594_s0, %s7211_s24 }
  0x11   : > { %v516_v4 = vld [vmem:[%s7484_s16] sm:$0xff]  ;;  %v517_v5 = vld [vmem:[%s7484_s16 + $0x8] sm:$0x3]  ;;  %v518_v6 = vld [vmem:[%s7484_s16 + $0x10] sm:$0xff]  ;;  %s8007_s23 = scalar_lea.vmem %s10595_s1, %s7212_s20  ;;  %s6347_s20 = sshll.u32 %s10614_s19, 8 }
  0x12   : > { %v519_v7 = vld [vmem:[%s7484_s16 + $0x18] sm:$0x3]  ;;  %v543_v8 = vmul.f32 %v7467_v1, %v516_v4  ;;  %v544_v9 = vmul.f32 %v7467_v1, %v518_v6  ;;  %v567_v10 = vmul.f32 %v7474_v2, %v516_v4  ;;  %v568_v11 = vmul.f32 %v7474_v2, %v517_v5  ;;  %v7511_v26 = vld [vmem:[%s7484_s16 + $0x20] sm:$0xff]  ;;  %v7525_v36 = vld [vmem:[%s7484_s16 + $0x28] sm:$0x3]  ;;  %s10557_s24 = scalar_lea.vmem %s10609_s15, %s6347_s20 }
  0x13   : > { %v569_v12 = vmul.f32 %v7474_v2, %v518_v6  ;;  %v570_v13 = vmul.f32 %v7474_v2, %v519_v7  ;;  %v648_v14 = vmul.f32 %v7479_v3, %v516_v4  ;;  %v649_v15 = vmul.f32 %v7479_v3, %v517_v5  ;;  %v7554_v56 = vld [vmem:[%s7484_s16 + $0x30] sm:$0xff] }
  0x14   : > { %v600_v17 = vrot.slane %v567_v10, 1  ;;  %v601_v18 = vrot.slane %v568_v11, 1  ;;  %v650_v19 = vmul.f32 %v7479_v3, %v518_v6  ;;  %v651_v20 = vmul.f32 %v7479_v3, %v519_v7 }
  0x15   : > { %v603_v21 = vrot.slane %v569_v12, 1  ;;  %v604_v22 = vrot.slane %v570_v13, 1  ;;  %v681_v23 = vrot.slane %v648_v14, 2  ;;  %v682_v24 = vrot.slane %v649_v15, 2 }
  0x16   : > { %v602_v27 = vsel %vm599_vm1, %v600_v17, %v601_v18  ;;  %v684_v28 = vrot.slane %v650_v19, 2  ;;  %v685_v29 = vrot.slane %v651_v20, 2  ;;  %v729_v30 = vmul.f32 %v7501_v16, %v518_v6 }
  0x17   : > { %v605_v32 = vsel %vm599_vm1, %v603_v21, %v604_v22  ;;  %v632_v33 = vadd.f32 %v602_v27, %v543_v8  ;;  %v683_v34 = vsel %vm680_vm2, %v681_v23, %v682_v24  ;;  %v730_v35 = vmul.f32 %v7501_v16, %v7511_v26  ;;  %v7565_v8 = vld [vmem:[%s7484_s16 + $0x38] sm:$0x3] }
  0x18   : > { %v633_v37 = vadd.f32 %v605_v32, %v544_v9  ;;  %v686_v38 = vsel %vm680_vm2, %v684_v28, %v685_v29  ;;  %v753_v39 = vmul.f32 %v7508_v25, %v518_v6  ;;  %v754_v40 = vmul.f32 %v7508_v25, %v519_v7 }
  0x19   : > { %v713_v41 = vadd.f32 %v683_v34, %v632_v33  ;;  %v755_v42 = vmul.f32 %v7508_v25, %v7511_v26  ;;  %v756_v43 = vmul.f32 %v7508_v25, %v7525_v36  ;;  %v833_v44 = vmul.f32 %v7518_v31, %v518_v6 }
  0x1a   : > { %v714_v46 = vadd.f32 %v686_v38, %v633_v37  ;;  %v785_v47 = vrot.slane %v753_v39, 1  ;;  %v786_v48 = vrot.slane %v754_v40, 1  ;;  %v834_v49 = vmul.f32 %v7518_v31, %v519_v7  ;;  %v7590_v38 = vld [vmem:[%s10597_s3] ss:$0 sm:$0xff] }
  0x1b   : > { %v737_v51 = vadd.f32 %v729_v30, %v713_v41  ;;  %v788_v52 = vrot.slane %v755_v42, 1  ;;  %v789_v53 = vrot.slane %v756_v43, 1  ;;  %v835_v54 = vmul.f32 %v7518_v31, %v7511_v26 }
  0x1c   : > { %v738_v57 = vadd.f32 %v730_v35, %v714_v46  ;;  %v787_v58 = vsel %vm599_vm1, %v785_v47, %v786_v48  ;;  %v836_v59 = vmul.f32 %v7518_v31, %v7525_v36  ;;  %v865_v60 = vrot.slane %v833_v44, 2 }
  0x1d   : > { %v790_v61 = vsel %vm599_vm1, %v788_v52, %v789_v53  ;;  %v817_v62 = vadd.f32 %v787_v58, %v737_v51  ;;  %v866_v63 = vrot.slane %v834_v49, 2  ;;  %v868_v0 = vrot.slane %v835_v54, 2 }
  0x1e   : > { %v818_v4 = vadd.f32 %v790_v61, %v738_v57  ;;  %v869_v5 = vrot.slane %v836_v59, 2  ;;  %v913_v6 = vmul.f32 %v7538_v45, %v7511_v26  ;;  %v914_v7 = vmul.f32 %v7538_v45, %v7554_v56 }
  0x1f   : > { %v867_v9 = vsel %vm680_vm2, %v865_v60, %v866_v63  ;;  %v937_v10 = vmul.f32 %v7544_v50, %v7511_v26  ;;  %v938_v11 = vmul.f32 %v7544_v50, %v7525_v36  ;;  %v939_v12 = vmul.f32 %v7544_v50, %v7554_v56 }
  0x20   : > { %v870_v13 = vsel %vm680_vm2, %v868_v0, %v869_v5  ;;  %v897_v14 = vadd.f32 %v867_v9, %v817_v62  ;;  %v940_v15 = vmul.f32 %v7544_v50, %v7565_v8  ;;  %v1017_v17 = vmul.f32 %v7551_v55, %v7511_v26  ;;  %v7620_v5 = vld [vmem:[%s10601_s7 + $0x40] sm:$0xff]  }
  0x21   : > { %v898_v18 = vadd.f32 %v870_v13, %v818_v4  ;;  %v969_v19 = vrot.slane %v937_v10, 1  ;;  %v970_v20 = vrot.slane %v938_v11, 1  ;;  %v972_v21 = vrot.slane %v939_v12, 1  ;;  %v7632_v12 = vld [vmem:[%s10601_s7] sm:$0xff]   ;;  %7195 = vmatprep.subr.bf16.mxu1 %v7620_v5 }
  0x22   : > { %v921_v22 = vadd.f32 %v913_v6, %v897_v14  ;;  %v973_v23 = vrot.slane %v940_v15, 1  ;;  %v1018_v24 = vmul.f32 %v7551_v55, %v7525_v36  ;;  %v1019_v27 = vmul.f32 %v7551_v55, %v7554_v56  ;;  %v7623_v6 = vld [vmem:[%s7484_s16 + $0x40] sm:$0xff]  ;;  %7203 = vmatpush3.bf16.msra.mxu1 %v7632_v12 }
  0x23   : > { %v922_v28 = vadd.f32 %v914_v7, %v898_v18  ;;  %v971_v29 = vsel %vm599_vm1, %v969_v19, %v970_v20  ;;  %v1020_v30 = vmul.f32 %v7551_v55, %v7565_v8  ;;  %v1049_v32 = vrot.slane %v1017_v17, 2  ;;  %v7626_v7 = vld [vmem:[%s7484_s16 + $0x48] sm:$0x3] }
  0x24   : > { %v974_v33 = vsel %vm599_vm1, %v972_v21, %v973_v23  ;;  %v1001_v34 = vadd.f32 %v971_v29, %v921_v22  ;;  %v1050_v35 = vrot.slane %v1018_v24, 2  ;;  %v1052_v37 = vrot.slane %v1019_v27, 2  ;;  %v7639_v18 = vld [vmem:[%s10601_s7 + $0x48] sm:$0xff]  }
  0x25   : > { %v1002_v39 = vadd.f32 %v974_v33, %v922_v28  ;;  %v1053_v40 = vrot.slane %v1020_v30, 2  ;;  %v545_v41 = vmul.f32 %v7467_v1, %v7511_v26  ;;  %v546_v42 = vmul.f32 %v7467_v1, %v7554_v56  ;;  %7196 = vmatprep.subr.bf16.mxu1 %v7639_v18 }
  0x26   : > { %v1051_v43 = vsel %vm680_vm2, %v1049_v32, %v1050_v35  ;;  %v571_v44 = vmul.f32 %v7474_v2, %v7511_v26  ;;  %v572_v46 = vmul.f32 %v7474_v2, %v7525_v36  ;;  %v573_v47 = vmul.f32 %v7474_v2, %v7554_v56  ;;  %v7665_v35 = vld [vmem:[%s10601_s7 + $0x50] sm:$0xff]  }
  0x27   : > { %v1054_v48 = vsel %vm680_vm2, %v1052_v37, %v1053_v40  ;;  %v1081_v49 = vadd.f32 %v1051_v43, %v1001_v34  ;;  %v574_v51 = vmul.f32 %v7474_v2, %v7565_v8  ;;  %v652_v52 = vmul.f32 %v7479_v3, %v7511_v26  ;;  %v7660_v34 = vld [vmem:[%s10601_s7 + $0x8] sm:$0xff]  }
  0x28   : > { %v1082_v53 = vadd.f32 %v1054_v48, %v1002_v39  ;;  %v606_v54 = vrot.slane %v571_v44, 1  ;;  %v607_v57 = vrot.slane %v572_v46, 1  ;;  %v609_v58 = vrot.slane %v573_v47, 1  ;;  %7204 = vmatpush3.bf16.msra.mxu1 %v7660_v34  ;;  %v7680_v47 = vld [vmem:[%s7484_s16 + $0x58] sm:$0x3] }
  0x29   : > { %v1096_v59 = vadd.f32 %v7590_v38, %v1081_v49  ;;  %v610_v60 = vrot.slane %v574_v51, 1  ;;  %v653_v61 = vmul.f32 %v7479_v3, %v7525_v36  ;;  %v654_v62 = vmul.f32 %v7479_v3, %v7554_v56  ;;  %7197 = vmatprep.subr.bf16.mxu1 %v7665_v35 }
  0x2a   : > { %v1097_v63 = vadd.f32 %v7590_v38, %v1082_v53  ;;  %v608_v0 = vsel %vm599_vm1, %v606_v54, %v607_v57  ;;  %v655_v26 = vmul.f32 %v7479_v3, %v7565_v8  ;;  %v687_v4 = vrot.slane %v652_v52, 2 }
  0x2b   : > { %v611_v36 = vsel %vm599_vm1, %v609_v58, %v610_v60  ;;  %v634_v9 = vadd.f32 %v608_v0, %v545_v41  ;;  %v688_v10 = vrot.slane %v653_v61, 2  ;;  %v690_v11 = vrot.slane %v654_v62, 2  ;;  %v7689_v58 = vld [vmem:[%s10601_s7 + $0x10] sm:$0xff]  }
  0x2c   : > { %v1136_v13 = vpack.c.bf16 %v1097_v63, %v1096_v59  ;;  %v635_v14 = vadd.f32 %v611_v36, %v546_v42  ;;  %v691_v15 = vrot.slane %v655_v26, 2  ;;  %v731_v17 = vmul.f32 %v7501_v16, %v7554_v56  ;;  %v7671_v42 = vld [vmem:[%s7484_s16 + $0x50] sm:$0xff]  ;;  %v7694_v59 = vld [vmem:[%s10601_s7 + $0x58] sm:$0xff]   ;;  %7205 = vmatpush3.bf16.msra.mxu1 %v7689_v58 }
  0x2d   : > { %v689_v19 = vsel %vm680_vm2, %v687_v4, %v688_v10  ;;  %v732_v20 = vmul.f32 %v7501_v16, %v7623_v6  ;;  %v757_v21 = vmul.f32 %v7508_v25, %v7554_v56  ;;  %v758_v22 = vmul.f32 %v7508_v25, %v7565_v8  ;;  %7198 = vmatprep.subr.bf16.mxu1 %v7694_v59 }
  0x2e   : > { %6995 = vmatprep.subr.bf16.mxu0 %v1136_v13  ;;  %v692_v23 = vsel %vm680_vm2, %v690_v11, %v691_v15  ;;  %v715_v24 = vadd.f32 %v689_v19, %v634_v9  ;;  %v759_v27 = vmul.f32 %v7508_v25, %v7623_v6  ;;  %v760_v28 = vmul.f32 %v7508_v25, %v7626_v7 }
  0x2f   : > { %6996 = vmatpush3.bf16.msra.mxu0 %v1136_v13  ;;  %v716_v29 = vadd.f32 %v692_v23, %v635_v14  ;;  %v791_v30 = vrot.slane %v757_v21, 1  ;;  %v792_v32 = vrot.slane %v758_v22, 1  ;;  %v837_v33 = vmul.f32 %v7518_v31, %v7554_v56  ;;  %v7714_v14 = vld [vmem:[%s10601_s7 + $0x18] sm:$0xff]  }
  0x30   : > { %v739_v37 = vadd.f32 %v731_v17, %v715_v24  ;;  %v794_v39 = vrot.slane %v759_v27, 1  ;;  %v795_v40 = vrot.slane %v760_v28, 1  ;;  %v838_v41 = vmul.f32 %v7518_v31, %v7565_v8  ;;  %v7727_v27 = vld [vmem:[%s10601_s7 + $0x60] sm:$0xff]   ;;  %7206 = vmatpush3.bf16.msra.mxu1 %v7714_v14 }
  0x31   : > { %v740_v56 = vadd.f32 %v732_v20, %v716_v29  ;;  %v793_v43 = vsel %vm599_vm1, %v791_v30, %v792_v32  ;;  %v839_v44 = vmul.f32 %v7518_v31, %v7623_v6  ;;  %v840_v46 = vmul.f32 %v7518_v31, %v7626_v7  ;;  %7199 = vmatprep.subr.bf16.mxu1 %v7727_v27 }
  0x32   : > { %v796_v48 = vsel %vm599_vm1, %v794_v39, %v795_v40  ;;  %v819_v49 = vadd.f32 %v793_v43, %v739_v37  ;;  %v871_v51 = vrot.slane %v837_v33, 2  ;;  %v872_v8 = vrot.slane %v838_v41, 2  ;;  %v7733_v33 = vld [vmem:[%s10601_s7 + $0x20] sm:$0xff]  }
  0x33   : > { %v820_v52 = vadd.f32 %v796_v48, %v740_v56  ;;  %v874_v53 = vrot.slane %v839_v44, 2  ;;  %v875_v54 = vrot.slane %v840_v46, 2  ;;  %v915_v57 = vmul.f32 %v7538_v45, %v7623_v6  ;;  %v7741_v56 = vld [vmem:[%s10601_s7 + $0x68] sm:$0xff]  }
  0x34   : > { %v873_v60 = vsel %vm680_vm2, %v871_v51, %v872_v8  ;;  %v916_v61 = vmul.f32 %v7538_v45, %v7671_v42  ;;  %v941_v62 = vmul.f32 %v7544_v50, %v7623_v6  ;;  %v942_v63 = vmul.f32 %v7544_v50, %v7626_v7  ;;  %7207 = vmatpush3.bf16.msra.mxu1 %v7733_v33 }
  0x35   : > { %v876_v0 = vsel %vm680_vm2, %v874_v53, %v875_v54  ;;  %v899_v26 = vadd.f32 %v873_v60, %v819_v49  ;;  %v943_v4 = vmul.f32 %v7544_v50, %v7671_v42  ;;  %v944_v36 = vmul.f32 %v7544_v50, %v7680_v47  ;;  %7200 = vmatprep.subr.bf16.mxu1 %v7741_v56 }
  0x36   : > { %v900_v9 = vadd.f32 %v876_v0, %v820_v52  ;;  %v975_v10 = vrot.slane %v941_v62, 1  ;;  %v976_v11 = vrot.slane %v942_v63, 1  ;;  %v1021_v13 = vmul.f32 %v7551_v55, %v7623_v6 }
  0x37   : > { %v923_v15 = vadd.f32 %v915_v57, %v899_v26  ;;  %v978_v17 = vrot.slane %v943_v4, 1  ;;  %v979_v19 = vrot.slane %v944_v36, 1  ;;  %v1022_v20 = vmul.f32 %v7551_v55, %v7626_v7  ;;  %v7770_v4 = vld [vmem:[%s10601_s7 + $0x70] sm:$0xff]   ;;  %v7775_v36 = vld [vmem:[%s7484_s16 + $0x60] sm:$0xff] }
  0x38   : > { %v924_v21 = vadd.f32 %v916_v61, %v900_v9  ;;  %v977_v22 = vsel %vm599_vm1, %v975_v10, %v976_v11  ;;  %v1023_v23 = vmul.f32 %v7551_v55, %v7671_v42  ;;  %v1024_v24 = vmul.f32 %v7551_v55, %v7680_v47  ;;  %v7761_v61 = vld [vmem:[%s10601_s7 + $0x28] sm:$0xff]  }
  0x39   : > { %v980_v28 = vsel %vm599_vm1, %v978_v17, %v979_v19  ;;  %v1003_v29 = vadd.f32 %v977_v22, %v923_v15  ;;  %v1055_v30 = vrot.slane %v1021_v13, 2  ;;  %v1056_v32 = vrot.slane %v1022_v20, 2  ;;  %v7784_v20 = vld [vmem:[%s7484_s16 + $0x68] sm:$0x3]  ;;  %7208 = vmatpush3.bf16.msra.mxu1 %v7761_v61 }
  0x3a   : > { %v1004_v37 = vadd.f32 %v980_v28, %v924_v21  ;;  %v1058_v39 = vrot.slane %v1023_v23, 2  ;;  %v1059_v40 = vrot.slane %v1024_v24, 2  ;;  %v547_v41 = vmul.f32 %v7467_v1, %v7623_v6  ;;  %v7789_v24 = vld [vmem:[%s10601_s7 + $0x30] sm:$0xff]   ;;  %7201 = vmatprep.subr.bf16.mxu1 %v7770_v4 }
  0x3b   : > { %v1057_v43 = vsel %vm680_vm2, %v1055_v30, %v1056_v32  ;;  %v548_v44 = vmul.f32 %v7467_v1, %v7671_v42  ;;  %v575_v46 = vmul.f32 %v7474_v2, %v7623_v6  ;;  %v576_v48 = vmul.f32 %v7474_v2, %v7626_v7 }
  0x3c   : > { %v1060_v49 = vsel %vm680_vm2, %v1058_v39, %v1059_v40  ;;  %v1083_v51 = vadd.f32 %v1057_v43, %v1003_v29  ;;  %v577_v8 = vmul.f32 %v7474_v2, %v7671_v42  ;;  %v578_v52 = vmul.f32 %v7474_v2, %v7680_v47 }
  0x3d   : > { %v1084_v53 = vadd.f32 %v1060_v49, %v1004_v37  ;;  %v612_v54 = vrot.slane %v575_v46, 1  ;;  %v613_v57 = vrot.slane %v576_v48, 1  ;;  %v656_v60 = vmul.f32 %v7479_v3, %v7623_v6  ;;  %v7812_v49 = vld [vmem:[%s10601_s7 + $0x78] sm:$0xff]   ;;  %7209 = vmatpush3.bf16.msra.mxu1 %v7789_v24 }
  0x3e   : > { %v1098_v62 = vadd.f32 %v7590_v38, %v1083_v51  ;;  %v615_v63 = vrot.slane %v577_v8, 1  ;;  %v616_v0 = vrot.slane %v578_v52, 1  ;;  %v657_v26 = vmul.f32 %v7479_v3, %v7626_v7  ;;  %7202 = vmatprep.subr.bf16.mxu1 %v7812_v49 }
  0x3f   : > { %v1099_v6 = vadd.f32 %v7590_v38, %v1084_v53  ;;  %v614_v9 = vsel %vm599_vm1, %v612_v54, %v613_v57  ;;  %v658_v10 = vmul.f32 %v7479_v3, %v7671_v42  ;;  %v659_v11 = vmul.f32 %v7479_v3, %v7680_v47  ;;  %v7818_v54 = vld [vmem:[%s7484_s16 + $0x70] sm:$0xff] }
  0x40   : > { %v617_v7 = vsel %vm599_vm1, %v615_v63, %v616_v0  ;;  %v636_v13 = vadd.f32 %v614_v9, %v547_v41  ;;  %v693_v15 = vrot.slane %v656_v60, 2  ;;  %v694_v17 = vrot.slane %v657_v26, 2  ;;  %v7827_v63 = vld [vmem:[%s10601_s7 + $0x38] sm:$0xff]  }
  0x41   : > { %v1137_v19 = vpack.c.bf16 %v1099_v6, %v1098_v62  ;;  %v637_v21 = vadd.f32 %v617_v7, %v548_v44  ;;  %v696_v22 = vrot.slane %v658_v10, 2  ;;  %v697_v23 = vrot.slane %v659_v11, 2  ;;  %v7834_v9 = vld [vmem:[%s7484_s16 + $0x78] sm:$0x3]  ;;  %7210 = vmatpush3.bf16.msra.mxu1 %v7827_v63 }
  0x42   : > { %v695_v28 = vsel %vm680_vm2, %v693_v15, %v694_v17  ;;  %v733_v29 = vmul.f32 %v7501_v16, %v7671_v42  ;;  %v734_v30 = vmul.f32 %v7501_v16, %v7775_v36  ;;  %v761_v32 = vmul.f32 %v7508_v25, %v7671_v42 }
  0x43   : > { %6997 = vmatprep.subr.bf16.mxu0 %v1137_v19  ;;  %v698_v37 = vsel %vm680_vm2, %v696_v22, %v697_v23  ;;  %v717_v39 = vadd.f32 %v695_v28, %v636_v13  ;;  %v762_v40 = vmul.f32 %v7508_v25, %v7680_v47  ;;  %v763_v41 = vmul.f32 %v7508_v25, %v7775_v36 }
  0x44   : > { %6998 = vmatpush3.bf16.msra.mxu0 %v1137_v19  ;;  %v718_v43 = vadd.f32 %v698_v37, %v637_v21  ;;  %v764_v44 = vmul.f32 %v7508_v25, %v7784_v20  ;;  %v797_v46 = vrot.slane %v761_v32, 1  ;;  %v841_v48 = vmul.f32 %v7518_v31, %v7671_v42 }
  0x45   : > { %v741_v51 = vadd.f32 %v733_v29, %v717_v39  ;;  %v798_v8 = vrot.slane %v762_v40, 1  ;;  %v800_v52 = vrot.slane %v763_v41, 1  ;;  %v842_v53 = vmul.f32 %v7518_v31, %v7680_v47 }
  0x46   : > { %v742_v57 = vadd.f32 %v734_v30, %v718_v43  ;;  %v801_v60 = vrot.slane %v764_v44, 1  ;;  %v843_v42 = vmul.f32 %v7518_v31, %v7775_v36  ;;  %v844_v62 = vmul.f32 %v7518_v31, %v7784_v20 }
  0x47   : > { %v799_v47 = vsel %vm599_vm1, %v797_v46, %v798_v8  ;;  %v877_v0 = vrot.slane %v841_v48, 2  ;;  %v878_v26 = vrot.slane %v842_v53, 2  ;;  %v917_v6 = vmul.f32 %v7538_v45, %v7775_v36 }
  0x48   : > { %v802_v10 = vsel %vm599_vm1, %v800_v52, %v801_v60  ;;  %v821_v11 = vadd.f32 %v799_v47, %v741_v51  ;;  %v880_v7 = vrot.slane %v843_v42, 2  ;;  %v881_v13 = vrot.slane %v844_v62, 2 }
  0x49   : > { %v822_v15 = vadd.f32 %v802_v10, %v742_v57  ;;  %v879_v17 = vsel %vm680_vm2, %v877_v0, %v878_v26  ;;  %v918_v19 = vmul.f32 %v7538_v45, %v7818_v54  ;;  %v945_v21 = vmul.f32 %v7544_v50, %v7775_v36 }
  0x4a   : > { %v882_v22 = vsel %vm680_vm2, %v880_v7, %v881_v13  ;;  %v901_v23 = vadd.f32 %v879_v17, %v821_v11  ;;  %v946_v28 = vmul.f32 %v7544_v50, %v7784_v20  ;;  %v947_v29 = vmul.f32 %v7544_v50, %v7818_v54 }
  0x4b   : > { %v902_v30 = vadd.f32 %v882_v22, %v822_v15  ;;  %v948_v32 = vmul.f32 %v7544_v50, %v7834_v9  ;;  %v981_v37 = vrot.slane %v945_v21, 1  ;;  %v1025_v39 = vmul.f32 %v7551_v55, %v7775_v36 }
  0x4c   : > { %v925_v40 = vadd.f32 %v917_v6, %v901_v23  ;;  %v982_v41 = vrot.slane %v946_v28, 1  ;;  %v984_v43 = vrot.slane %v947_v29, 1  ;;  %v1026_v44 = vmul.f32 %v7551_v55, %v7784_v20 }
  0x4d   : > { %v926_v46 = vadd.f32 %v918_v19, %v902_v30  ;;  %v985_v48 = vrot.slane %v948_v32, 1  ;;  %v1027_v51 = vmul.f32 %v7551_v55, %v7818_v54  ;;  %v1028_v8 = vmul.f32 %v7551_v55, %v7834_v9 }
  0x4e   : > { %v983_v52 = vsel %vm599_vm1, %v981_v37, %v982_v41  ;;  %v1061_v53 = vrot.slane %v1025_v39, 2  ;;  %v1062_v57 = vrot.slane %v1026_v44, 2  ;;  %v549_v60 = vmul.f32 %v7467_v1, %v7775_v36  ;;  %v532_v37 = vld [vmem:[%s7484_s16 + $0x80] sm:$0xff]  ;;  %v533_v39 = vld [vmem:[%s7484_s16 + $0x88] sm:$0x3] }
  0x4f   : > { %v986_v42 = vsel %vm599_vm1, %v984_v43, %v985_v48  ;;  %v1005_v62 = vadd.f32 %v983_v52, %v925_v40  ;;  %v1064_v47 = vrot.slane %v1027_v51, 2  ;;  %v1065_v0 = vrot.slane %v1028_v8, 2 }
  0x50   : > { %v1006_v26 = vadd.f32 %v986_v42, %v926_v46  ;;  %v1063_v6 = vsel %vm680_vm2, %v1061_v53, %v1062_v57  ;;  %v550_v10 = vmul.f32 %v7467_v1, %v7818_v54  ;;  %v579_v11 = vmul.f32 %v7474_v2, %v7775_v36 }
  0x51   : > { %v1066_v7 = vsel %vm680_vm2, %v1064_v47, %v1065_v0  ;;  %v1085_v13 = vadd.f32 %v1063_v6, %v1005_v62  ;;  %v580_v15 = vmul.f32 %v7474_v2, %v7784_v20  ;;  %v581_v17 = vmul.f32 %v7474_v2, %v7818_v54 }
  0x52   : > { %v1086_v19 = vadd.f32 %v1066_v7, %v1006_v26  ;;  %v582_v21 = vmul.f32 %v7474_v2, %v7834_v9  ;;  %v618_v22 = vrot.slane %v579_v11, 1  ;;  %v660_v1 = vmul.f32 %v7479_v3, %v7775_v36 }
  0x53   : > { %v1100_v23 = vadd.f32 %v7590_v38, %v1085_v13  ;;  %v619_v28 = vrot.slane %v580_v15, 1  ;;  %v621_v29 = vrot.slane %v581_v17, 1  ;;  %v661_v30 = vmul.f32 %v7479_v3, %v7784_v20  ;;  %v535_v17 = vld [vmem:[%s7484_s16 + $0x98] sm:$0x3] }
  0x54   : > { %v1101_v32 = vadd.f32 %v7590_v38, %v1086_v19  ;;  %v622_v40 = vrot.slane %v582_v21, 1  ;;  %v662_v41 = vmul.f32 %v7479_v3, %v7818_v54  ;;  %v663_v2 = vmul.f32 %v7479_v3, %v7834_v9 }
  0x55   : > { %v620_v36 = vsel %vm599_vm1, %v618_v22, %v619_v28  ;;  %v699_v43 = vrot.slane %v660_v1, 2  ;;  %v700_v44 = vrot.slane %v661_v30, 2  ;;  %v735_v46 = vmul.f32 %v7501_v16, %v7818_v54 }
  0x56   : > { %v1138_v20 = vpack.c.bf16 %v1101_v32, %v1100_v23  ;;  %v623_v48 = vsel %vm599_vm1, %v621_v29, %v622_v40  ;;  %v638_v51 = vadd.f32 %v620_v36, %v549_v60  ;;  %v702_v8 = vrot.slane %v662_v41, 2  ;;  %v534_v60 = vld [vmem:[%s7484_s16 + $0x90] sm:$0xff] }
  0x57   : > { %v639_v52 = vadd.f32 %v623_v48, %v550_v10  ;;  %v701_v53 = vsel %vm680_vm2, %v699_v43, %v700_v44  ;;  %v703_v57 = vrot.slane %v663_v2, 2  ;;  %v736_v42 = vmul.f32 %v7501_v16, %v532_v37 }
  0x58   : > { %6999 = vmatprep.subr.bf16.mxu0 %v1138_v20  ;;  %v719_v3 = vadd.f32 %v701_v53, %v638_v51  ;;  %v765_v62 = vmul.f32 %v7508_v25, %v7818_v54  ;;  %v766_v47 = vmul.f32 %v7508_v25, %v7834_v9  ;;  %v767_v0 = vmul.f32 %v7508_v25, %v532_v37 }
  0x59   : > { %7000 = vmatpush3.bf16.msra.mxu0 %v1138_v20  ;;  %v704_v26 = vsel %vm680_vm2, %v702_v8, %v703_v57  ;;  %v768_v6 = vmul.f32 %v7508_v25, %v533_v39  ;;  %v845_v16 = vmul.f32 %v7518_v31, %v7818_v54  ;;  %v846_v10 = vmul.f32 %v7518_v31, %v7834_v9 }
  0x5a   : > { %v720_v11 = vadd.f32 %v704_v26, %v639_v52  ;;  %v743_v7 = vadd.f32 %v735_v46, %v719_v3  ;;  %v803_v13 = vrot.slane %v765_v62, 1  ;;  %v804_v15 = vrot.slane %v766_v47, 1 }
  0x5b   : > { %v806_v19 = vrot.slane %v767_v0, 1  ;;  %v807_v21 = vrot.slane %v768_v6, 1  ;;  %v847_v22 = vmul.f32 %v7518_v31, %v532_v37  ;;  %v848_v1 = vmul.f32 %v7518_v31, %v533_v39 }
  0x5c   : > { %v744_v23 = vadd.f32 %v736_v42, %v720_v11  ;;  %v805_v25 = vsel %vm599_vm1, %v803_v13, %v804_v15  ;;  %v883_v28 = vrot.slane %v845_v16, 2  ;;  %v884_v29 = vrot.slane %v846_v10, 2 }
  0x5d   : > { %v808_v54 = vsel %vm599_vm1, %v806_v19, %v807_v21  ;;  %v823_v30 = vadd.f32 %v805_v25, %v743_v7  ;;  %v886_v9 = vrot.slane %v847_v22, 2  ;;  %v887_v32 = vrot.slane %v848_v1, 2  ;;  %v7228_v1 = vld [vmem:[%s10600_s6 + $0x20] sm:$0xff]  }
  0x5e   : > { %v824_v40 = vadd.f32 %v808_v54, %v744_v23  ;;  %v885_v41 = vsel %vm680_vm2, %v883_v28, %v884_v29  ;;  %v919_v2 = vmul.f32 %v7538_v45, %v532_v37  ;;  %v920_v36 = vmul.f32 %v7538_v45, %v534_v60  ;;  %v8023_v28 = vld [vmem:[%s10598_s4 + $0x2] ss:$0 sm:$0xff]  ;;  %v8028_v29 = vld [vmem:[%s10598_s4] ss:$0 sm:$0xff] }
  0x5f   : > { %v888_v43 = vsel %vm680_vm2, %v886_v9, %v887_v32  ;;  %v903_v31 = vadd.f32 %v885_v41, %v823_v30  ;;  %v949_v44 = vmul.f32 %v7544_v50, %v532_v37  ;;  %v950_v46 = vmul.f32 %v7544_v50, %v533_v39 }
  0x60   : > { %v904_v20 = vadd.f32 %v888_v43, %v824_v40  ;;  %v951_v48 = vmul.f32 %v7544_v50, %v534_v60  ;;  %v952_v51 = vmul.f32 %v7544_v50, %v535_v17  ;;  %v1029_v8 = vmul.f32 %v7551_v55, %v532_v37 }
  0x61   : > { %v927_v52 = vadd.f32 %v919_v2, %v903_v31  ;;  %v987_v53 = vrot.slane %v949_v44, 1  ;;  %v988_v57 = vrot.slane %v950_v46, 1  ;;  %v1030_v42 = vmul.f32 %v7551_v55, %v533_v39  ;;  %v8036_v46 = vld [vmem:[%s8007_s23 + $0x18] sm:$0xff] }
  0x62   : > { %v928_v45 = vadd.f32 %v920_v36, %v904_v20  ;;  %v990_v3 = vrot.slane %v951_v48, 1  ;;  %v991_v62 = vrot.slane %v952_v51, 1  ;;  %v1031_v47 = vmul.f32 %v7551_v55, %v534_v60  ;;  %v8039_v20 = vld [vmem:[%s8007_s23 + $0x20] sm:$0xff]  ;;  %v8042_v48 = vld [vmem:[%s8007_s23 + $0x28] sm:$0x3] }
  0x63   : > { %v989_v0 = vsel %vm599_vm1, %v987_v53, %v988_v57  ;;  %v1032_v26 = vmul.f32 %v7551_v55, %v535_v17  ;;  %v1067_v6 = vrot.slane %v1029_v8, 2  ;;  %v1068_v16 = vrot.slane %v1030_v42, 2  ;;  %v7225_v55 = vld [vmem:[%s10600_s6 + $0x8] sm:$0xff]   ;;  %v7226_v17 = vld [vmem:[%s10600_s6 + $0x10] sm:$0xff]   ;;  %v8051_v42 = vld [vmem:[%s10598_s4 + $0x3] ss:$0 sm:$0xff] }
  0x64   : > { %v992_v50 = vsel %vm599_vm1, %v990_v3, %v991_v62  ;;  %v1007_v10 = vadd.f32 %v989_v0, %v927_v52  ;;  %v1070_v37 = vrot.slane %v1031_v47, 2  ;;  %v2059_v62 = vmul.f32 %v8051_v42, %v8036_v46 }
  0x65   : > { %v1008_v11 = vadd.f32 %v992_v50, %v928_v45  ;;  %v1069_v7 = vsel %vm680_vm2, %v1067_v6, %v1068_v16  ;;  %v1071_v13 = vrot.slane %v1032_v26, 2  ;;  %v8056_v45 = vld [vmem:[%s10598_s4 + $0x4] ss:$0 sm:$0xff]  ;;  %v2060_v47 = vmul.f32 %v8051_v42, %v8039_v20  ;;  %v8067_v26 = vld [vmem:[%s10598_s4 + $0x5] ss:$0 sm:$0xff] }
  0x66   : > { %v1087_v39 = vadd.f32 %v1069_v7, %v1007_v10  ;;  %v2131_v0 = vmul.f32 %v8056_v45, %v8036_v46  ;;  %v2132_v16 = vmul.f32 %v8056_v45, %v8039_v20  ;;  %v2133_v50 = vmul.f32 %v8056_v45, %v8042_v48 }
  0x67   : > { %v1072_v15 = vsel %vm680_vm2, %v1070_v37, %v1071_v13  ;;  %v2379_v10 = vmul.f32 %v8067_v26, %v8036_v46  ;;  %v2380_v7 = vmul.f32 %v8067_v26, %v8039_v20  ;;  %v2381_v13 = vmul.f32 %v8067_v26, %v8042_v48 }
  0x68   : > { %v1088_v19 = vadd.f32 %v1072_v15, %v1008_v11  ;;  %v1102_v60 = vadd.f32 %v7590_v38, %v1087_v39  ;;  %v2227_v11 = vrot.slane %v2131_v0, 1  ;;  %v2228_v15 = vrot.slane %v2132_v16, 1 }
  0x6a   : > { %v1103_v21 = vadd.f32 %v7590_v38, %v1088_v19  ;;  %v7227_v38 = vld [vmem:[%s10600_s6 + $0x18] sm:$0xff]   ;;  %v2230_v19 = vrot.slane %v2133_v50, 1  ;;  %v8140_v50 = vld [vmem:[%s10599_s5] ss:$0 sm:$0xff] }
  0x6c   : > { %v1139_v22 = vpack.c.bf16 %v1103_v21, %v1102_v60  ;;  %v2475_v60 = vrot.slane %v2379_v10, 2  ;;  %v8080_v21 = vld [vmem:[%s8007_s23 + $0x30] sm:$0xff] }
  0x6e   : > { %7001 = vmatprep.subr.bf16.mxu0 %v1139_v22 }
  0x6f   : > { %7002 = vmatpush3.bf16.msra.mxu0 %v1139_v22  ;;  %v8083_v22 = vld [vmem:[%s8007_s23 + $0x38] sm:$0xff] }
  0x70   : > { %6368 = vmatprep.subr.bf16.mxu0 %v7620_v5  ;;  %v7229_v5 = vld [vmem:[%s10600_s6 + $0x28] sm:$0xff]  }
  0x72   : > { %7004 = vmatmul.mubr.msk.bf16.vlgmr.msra.gmra.mrb[0].mxu0 %vm1220_vm0, %v7225_v55 }
  0x73   : > { %7007 = vmatprep.mubr.msk.bf16.mxu0 %vm1220_vm0, %v7226_v17  ;;  %6369 = vmatpush3.bf16.msra.mxu0 %v7632_v12  ;;  %v7230_v12 = vld [vmem:[%s10600_s6 + $0x30] sm:$0xff]   ;;  %v2476_v17 = vrot.slane %v2380_v7, 2  ;;  %v1814_v7 = vmul.f32 %v8023_v28, %v8036_v46 }
  0x74   : > { %6370 = vmatprep.subr.bf16.mxu0 %v7639_v18  ;;  %v7231_v18 = vld [vmem:[%s10600_s6 + $0x38] sm:$0xff]  }
  0x77   : > { %6371 = vmatpush3.bf16.msra.mxu0 %v7660_v34  ;;  %v7232_v34 = vld [vmem:[%s10600_s6 + $0x40] sm:$0xff]  }
  0x78   : > { %6372 = vmatprep.subr.bf16.mxu0 %v7665_v35  ;;  %v7233_v35 = vld [vmem:[%s10600_s6 + $0x48] sm:$0xff]  }
  0x7a   : > { %7008 = vmatmul.mubr.msk.bf16.gmra.mrb[4].mxu0 %vm1220_vm0, %v7227_v38  ;;  %v2478_v38 = vrot.slane %v2381_v13, 2  ;;  %v1815_v13 = vmul.f32 %v8023_v28, %v8039_v20 }
  0x7b   : > { %7011 = vmatprep.mubr.msk.bf16.mxu0 %vm1220_vm0, %v7228_v1  ;;  %6373 = vmatpush3.bf16.msra.mxu0 %v7689_v58  ;;  %v7234_v58 = vld [vmem:[%s10600_s6 + $0x50] sm:$0xff]   ;;  %v1493_v1 = vmul.f32 %v8028_v29, %v8036_v46 }
  0x7c   : > { %6374 = vmatprep.subr.bf16.mxu0 %v7694_v59  ;;  %v7235_v59 = vld [vmem:[%s10600_s6 + $0x58] sm:$0xff]  }
  0x7f   : > { %6375 = vmatpush3.bf16.msra.mxu0 %v7714_v14  ;;  %v7236_v14 = vld [vmem:[%s10600_s6 + $0x60] sm:$0xff]  }
  0x80   : > { %6376 = vmatprep.subr.bf16.mxu0 %v7727_v27  ;;  %v7237_v27 = vld [vmem:[%s10600_s6 + $0x68] sm:$0xff]  }
  0x82   : > { %7012 = vmatmul.mubr.msk.bf16.gmra.mrb[8].mxu0 %vm1220_vm0, %v7229_v5  ;;  %v8088_v5 = vld [vmem:[%s8007_s23 + $0x40] sm:$0x3] }
  0x83   : > { %7015 = vmatprep.mubr.msk.bf16.mxu0 %vm1220_vm0, %v7230_v12  ;;  %6377 = vmatpush3.bf16.msra.mxu0 %v7733_v33  ;;  %v7238_v33 = vld [vmem:[%s10600_s6 + $0x70] sm:$0xff]   ;;  %v2229_v12 = vsel %vm599_vm1, %v2227_v11, %v2228_v15 }
  0x84   : > { %6378 = vmatprep.subr.bf16.mxu0 %v7741_v56  ;;  %v7239_v56 = vld [vmem:[%s10600_s6 + $0x78] sm:$0xff]  }
  0x87   : > { %6379 = vmatpush3.bf16.msra.mxu0 %v7761_v61  ;;  %v1430_v61 = vld [vmem:[%s8007_s23] sm:$0xff] }
  0x88   : > { %6380 = vmatprep.subr.bf16.mxu0 %v7770_v4  ;;  %v1431_v4 = vld [vmem:[%s8007_s23 + $0x8] sm:$0xff]  ;;  %v1811_v54 = vmul.f32 %v8023_v28, %v1430_v61  ;;  %v1491_v32 = vmul.f32 %v8028_v29, %v1430_v61 }
  0x89   : > { %v1812_v30 = vmul.f32 %v8023_v28, %v1431_v4  ;;  %v1492_v40 = vmul.f32 %v8028_v29, %v1431_v4 }
  0x8a   : > { %7016 = vmatmul.mubr.msk.bf16.gmra.mrb[12].mxu0 %vm1220_vm0, %v7231_v18  ;;  %v1907_v43 = vrot.slane %v1811_v54, 2  ;;  %v2231_v18 = vsel %vm599_vm1, %v2228_v15, %v2230_v19  ;;  %v1816_v19 = vmul.f32 %v8023_v28, %v8042_v48 }
  0x8b   : > { %7019 = vmatprep.mubr.msk.bf16.mxu0 %vm1220_vm0, %v7232_v34  ;;  %6381 = vmatpush3.bf16.msra.mxu0 %v7789_v24  ;;  %v1432_v24 = vld [vmem:[%s8007_s23 + $0x10] sm:$0x3]  ;;  %v1908_v31 = vrot.slane %v1812_v30, 2  ;;  %v8095_v34 = vld [vmem:[%s10598_s4 + $0x6] ss:$0 sm:$0xff] }
  0x8c   : > { %6382 = vmatprep.subr.bf16.mxu0 %v7812_v49  ;;  %v8015_v49 = vld [vmem:[%s10598_s4 + $0x1] ss:$0 sm:$0xff]  ;;  %v1813_v9 = vmul.f32 %v8023_v28, %v1432_v24 }
  0x8d   : > { %v1564_v23 = vmul.f32 %v8015_v49, %v1431_v4  ;;  %v1565_v25 = vmul.f32 %v8015_v49, %v1432_v24  ;;  %v1909_v53 = vsel %vm680_vm2, %v1907_v43, %v1908_v31  ;;  %v2627_v4 = vmul.f32 %v8095_v34, %v8080_v21 }
  0x8e   : > { %v1910_v44 = vrot.slane %v1813_v9, 2  ;;  %v2628_v24 = vmul.f32 %v8095_v34, %v8083_v22 }
  0x8f   : > { %6383 = vmatpush3.bf16.msra.mxu0 %v7827_v63  ;;  %v1563_v63 = vmul.f32 %v8015_v49, %v1430_v61  ;;  %v1660_v2 = vrot.slane %v1564_v23, 1  ;;  %v1662_v36 = vrot.slane %v1565_v25, 1  ;;  %v8111_v61 = vld [vmem:[%s10598_s4 + $0x8] ss:$0 sm:$0xff] }
  0x90   : > { %v1911_v57 = vsel %vm680_vm2, %v1908_v31, %v1910_v44  ;;  %v2947_v9 = vmul.f32 %v8111_v61, %v8080_v21 }
  0x91   : > { %v1659_v41 = vrot.slane %v1563_v63, 1  ;;  %v1663_v8 = vsel %vm599_vm1, %v1660_v2, %v1662_v36 }
  0x92   : > { %7020 = vmatmul.mubr.msk.bf16.gmra.mrb[16].mxu0 %vm1220_vm0, %v7233_v35  ;;  %v1772_v3 = vadd.f32 %v1663_v8, %v1492_v40  ;;  %v8100_v35 = vld [vmem:[%s10598_s4 + $0x7] ss:$0 sm:$0xff]  ;;  %v3043_v44 = vrot.slane %v2947_v9, 2 }
  0x93   : > { %7023 = vmatprep.mubr.msk.bf16.mxu0 %vm1220_vm0, %v7234_v58  ;;  %v1661_v51 = vsel %vm599_vm1, %v1659_v41, %v1660_v2  ;;  %v1494_v58 = vmul.f32 %v8028_v29, %v8039_v20  ;;  %v2699_v63 = vmul.f32 %v8100_v35, %v8080_v21  ;;  %v2700_v23 = vmul.f32 %v8100_v35, %v8083_v22 }
  0x94   : > { %v1771_v52 = vadd.f32 %v1661_v51, %v1491_v32  ;;  %v2020_v37 = vadd.f32 %v1911_v57, %v1772_v3  ;;  %v2701_v30 = vmul.f32 %v8100_v35, %v8088_v5  ;;  %v2948_v41 = vmul.f32 %v8111_v61, %v8083_v22 }
  0x95   : > { %v2795_v32 = vrot.slane %v2699_v63, 1  ;;  %v2796_v40 = vrot.slane %v2700_v23, 1  ;;  %v2949_v2 = vmul.f32 %v8111_v61, %v8088_v5  ;;  %v8170_v63 = vld [vmem:[%s8007_s23 + $0x50] sm:$0xff] }
  0x96   : > { %v2019_v6 = vadd.f32 %v1909_v53, %v1771_v52  ;;  %v2092_v55 = vadd.f32 %v2060_v47, %v2020_v37  ;;  %v2798_v31 = vrot.slane %v2701_v30, 1  ;;  %v3044_v8 = vrot.slane %v2948_v41, 2 }
  0x97   : > { %v2797_v51 = vsel %vm599_vm1, %v2795_v32, %v2796_v40  ;;  %v3046_v52 = vrot.slane %v2949_v2, 2  ;;  %v1567_v53 = vmul.f32 %v8015_v49, %v8039_v20  ;;  %v2383_v32 = vmul.f32 %v8067_v26, %v8083_v22  ;;  %v8177_v2 = vld [vmem:[%s8007_s23 + $0x58] sm:$0x3] }
  0x98   : > { %v2091_v39 = vadd.f32 %v2059_v62, %v2019_v6  ;;  %v2799_v57 = vsel %vm599_vm1, %v2796_v40, %v2798_v31  ;;  %v1568_v62 = vmul.f32 %v8015_v49, %v8042_v48  ;;  %v3045_v6 = vsel %vm680_vm2, %v3043_v44, %v3044_v8 }
  0x99   : > { %v3047_v16 = vsel %vm680_vm2, %v3044_v8, %v3046_v52  ;;  %v1665_v10 = vrot.slane %v1567_v53, 1  ;;  %v2134_v48 = vmul.f32 %v8056_v45, %v8080_v21  ;;  %v2384_v40 = vmul.f32 %v8067_v26, %v8088_v5 }
  0x9a   : > { %7024 = vmatmul.mubr.msk.bf16.gmra.mrb[20].mxu0 %vm1220_vm0, %v7235_v59  ;;  %v1566_v59 = vmul.f32 %v8015_v49, %v8036_v46  ;;  %v1667_v11 = vrot.slane %v1568_v62, 1  ;;  %v1912_v46 = vrot.slane %v1814_v7, 2  ;;  %v2481_v8 = vrot.slane %v2383_v32, 2 }
  0x9b   : > { %7027 = vmatprep.mubr.msk.bf16.mxu0 %vm1220_vm0, %v7236_v14  ;;  %v2339_v14 = vadd.f32 %v2229_v12, %v2091_v39  ;;  %v2483_v52 = vrot.slane %v2384_v40, 2  ;;  %v2630_v53 = vmul.f32 %v8095_v34, %v8170_v63  ;;  %v1818_v32 = vmul.f32 %v8023_v28, %v8083_v22 }
  0x9c   : > { %v1664_v47 = vrot.slane %v1566_v59, 1  ;;  %v1915_v59 = vrot.slane %v1816_v19, 2  ;;  %v2952_v19 = vmul.f32 %v8111_v61, %v8177_v2  ;;  %v1819_v40 = vmul.f32 %v8023_v28, %v8088_v5 }
  0x9e   : > { %v1666_v15 = vsel %vm599_vm1, %v1664_v47, %v1665_v10  ;;  %v2703_v47 = vmul.f32 %v8100_v35, %v8170_v63 }
  0xa2   : > { %7028 = vmatmul.mubr.msk.bf16.gmra.mrb[24].mxu0 %vm1220_vm0, %v7237_v27  ;;  %v2340_v27 = vadd.f32 %v2231_v18, %v2092_v55  ;;  %v1913_v18 = vrot.slane %v1815_v13, 2  ;;  %v2801_v13 = vrot.slane %v2703_v47, 1  ;;  %v2138_v47 = vmul.f32 %v8056_v45, %v8170_v63 }
  0xa3   : > { %7031 = vmatprep.mubr.msk.bf16.mxu0 %vm1220_vm0, %v7238_v33  ;;  %v2477_v33 = vsel %vm680_vm2, %v2475_v60, %v2476_v17  ;;  %v2061_v60 = vmul.f32 %v8051_v42, %v8080_v21 }
  0xa4   : > { %v2587_v25 = vadd.f32 %v2477_v33, %v2339_v14  ;;  %v2062_v14 = vmul.f32 %v8051_v42, %v8083_v22  ;;  %v2136_v33 = vmul.f32 %v8056_v45, %v8088_v5 }
  0xa6   : > { %v2659_v36 = vadd.f32 %v2627_v4, %v2587_v25  ;;  %v1916_v4 = vsel %vm680_vm2, %v1913_v18, %v1915_v59  ;;  %v2235_v9 = vrot.slane %v2136_v33, 1  ;;  %v1496_v59 = vmul.f32 %v8028_v29, %v8083_v22 }
  0xa7   : > { %v1570_v33 = vmul.f32 %v8015_v49, %v8083_v22 }
  0xa8   : > { %v2907_v3 = vadd.f32 %v2797_v51, %v2659_v36 }
  0xaa   : > { %7032 = vmatmul.mubr.msk.bf16.gmra.mrb[28].mxu0 %vm1220_vm0, %v7239_v56  ;;  %v2479_v56 = vsel %vm680_vm2, %v2476_v17, %v2478_v38  ;;  %v3155_v37 = vadd.f32 %v3045_v6, %v2907_v3  ;;  %v1668_v17 = vsel %vm599_vm1, %v1665_v10, %v1667_v11  ;;  %v1773_v38 = vadd.f32 %v1666_v15, %v1493_v1 }
  0xab   : > { %v2588_v54 = vadd.f32 %v2479_v56, %v2340_v27  ;;  %v1774_v20 = vadd.f32 %v1668_v17, %v1494_v58  ;;  %v2135_v27 = vmul.f32 %v8056_v45, %v8083_v22  ;;  %v8163_v56 = vld [vmem:[%s8007_s23 + $0x48] sm:$0xff]  ;;  %v1914_v58 = vsel %vm680_vm2, %v1912_v46, %v1913_v18 }
  0xac   : > { %v3194_v55 = vadd.f32 %v8140_v50, %v3155_v37  ;;  %v2021_v23 = vadd.f32 %v1914_v58, %v1773_v38  ;;  %v2629_v44 = vmul.f32 %v8095_v34, %v8163_v56  ;;  %v2702_v62 = vmul.f32 %v8100_v35, %v8163_v56 }
  0xad   : > { %v2660_v43 = vadd.f32 %v2628_v24, %v2588_v54  ;;  %v2382_v24 = vmul.f32 %v8067_v26, %v8080_v21  ;;  %v2022_v25 = vadd.f32 %v1916_v4, %v1774_v20  ;;  %v2232_v54 = vrot.slane %v2134_v48, 1 }
  0xae   : > { %v2233_v30 = vrot.slane %v2135_v27, 1  ;;  %v2093_v36 = vadd.f32 %v2061_v60, %v2021_v23  ;;  %v2484_v6 = vsel %vm680_vm2, %v2481_v8, %v2483_v52  ;;  %v2950_v10 = vmul.f32 %v8111_v61, %v8163_v56 }
  0xaf   : > { %v2908_v0 = vadd.f32 %v2799_v57, %v2660_v43  ;;  %v2480_v41 = vrot.slane %v2382_v24, 2  ;;  %v2094_v43 = vadd.f32 %v2062_v14, %v2022_v25  ;;  %v2800_v7 = vrot.slane %v2702_v62, 1 }
  0xb0   : > { %v2234_v31 = vsel %vm599_vm1, %v2232_v54, %v2233_v30  ;;  %v2236_v51 = vsel %vm599_vm1, %v2233_v30, %v2235_v9  ;;  %v2951_v15 = vmul.f32 %v8111_v61, %v8170_v63  ;;  %v3048_v60 = vrot.slane %v2950_v10, 2 }
  0xb1   : > { %v3156_v39 = vadd.f32 %v3047_v16, %v2908_v0  ;;  %v2341_v57 = vadd.f32 %v2234_v31, %v2093_v36  ;;  %v2342_v3 = vadd.f32 %v2236_v51, %v2094_v43  ;;  %v2482_v0 = vsel %vm680_vm2, %v2480_v41, %v2481_v8 }
  0xb2   : > { %v2704_v16 = vmul.f32 %v8100_v35, %v8177_v2  ;;  %v2802_v38 = vsel %vm599_vm1, %v2800_v7, %v2801_v13  ;;  %v1495_v46 = vmul.f32 %v8028_v29, %v8080_v21  ;;  %v3049_v20 = vrot.slane %v2951_v15, 2 }
  0xb3   : > { %v3195_v12 = vadd.f32 %v8140_v50, %v3156_v39  ;;  %v2589_v37 = vadd.f32 %v2482_v0, %v2341_v57  ;;  %v2590_v11 = vadd.f32 %v2484_v6, %v2342_v3  ;;  %v3051_v18 = vrot.slane %v2952_v19, 2 }
  0xb4   : > { %v2803_v39 = vrot.slane %v2704_v16, 1  ;;  %v1569_v27 = vmul.f32 %v8015_v49, %v8080_v21  ;;  %v1571_v4 = vmul.f32 %v8015_v49, %v8088_v5  ;;  %v1817_v24 = vmul.f32 %v8023_v28, %v8080_v21 }
  0xb5   : > { %v3242_v1 = vpack.c.bf16 %v3195_v12, %v3194_v55  ;;  %v2661_v55 = vadd.f32 %v2629_v44, %v2589_v37  ;;  %v2662_v17 = vadd.f32 %v2630_v53, %v2590_v11  ;;  %v3052_v58 = vsel %vm680_vm2, %v3049_v20, %v3051_v18  ;;  %v8244_v11 = vld [vmem:[%s8007_s23 + $0x60] sm:$0xff] }
  0xb6   : > { %v2804_v12 = vsel %vm599_vm1, %v2801_v13, %v2803_v39  ;;  %v1669_v54 = vrot.slane %v1569_v27, 1  ;;  %v1670_v30 = vrot.slane %v1570_v33, 1  ;;  %v1672_v9 = vrot.slane %v1571_v4, 1 }
  0xb7   : > { %3425 = vmatprep.mubr.bf16.mxu0 %v3242_v1  ;;  %v2909_v14 = vadd.f32 %v2802_v38, %v2661_v55  ;;  %v2910_v48 = vadd.f32 %v2804_v12, %v2662_v17  ;;  %v3050_v1 = vsel %vm680_vm2, %v3048_v60, %v3049_v20  ;;  %v1917_v41 = vrot.slane %v1817_v24, 2  ;;  %v8253_v38 = vld [vmem:[%s8007_s23 + $0x68] sm:$0xff] }
  0xb8   : > { %v1671_v21 = vsel %vm599_vm1, %v1669_v54, %v1670_v30  ;;  %v2063_v31 = vmul.f32 %v8051_v42, %v8163_v56  ;;  %v1673_v44 = vsel %vm599_vm1, %v1670_v30, %v1672_v9  ;;  %v1918_v22 = vrot.slane %v1818_v32, 2 }
  0xb9   : > { %v3157_v23 = vadd.f32 %v3050_v1, %v2909_v14  ;;  %v3158_v25 = vadd.f32 %v3052_v58, %v2910_v48  ;;  %v1775_v51 = vadd.f32 %v1671_v21, %v1495_v46  ;;  %v1920_v8 = vrot.slane %v1819_v40, 2 }
  0xba   : > { %v1776_v52 = vadd.f32 %v1673_v44, %v1496_v59  ;;  %v2064_v53 = vmul.f32 %v8051_v42, %v8170_v63  ;;  %v2137_v57 = vmul.f32 %v8056_v45, %v8163_v56  ;;  %v1919_v3 = vsel %vm680_vm2, %v1917_v41, %v1918_v22  ;;  %v8258_v59 = vld [vmem:[%s8007_s23 + $0x70] sm:$0x3] }
  0xbb   : > { %v8220_v36 = vadd.f32 %v8140_v50, %v3157_v23  ;;  %v8223_v43 = vadd.f32 %v8140_v50, %v3158_v25  ;;  %v1921_v62 = vsel %vm680_vm2, %v1918_v22, %v1920_v8  ;;  %v2139_v0 = vmul.f32 %v8056_v45, %v8177_v2 }
  0xbc   : > { %v2023_v6 = vadd.f32 %v1919_v3, %v1775_v51  ;;  %v2024_v16 = vadd.f32 %v1921_v62, %v1776_v52  ;;  %v2237_v10 = vrot.slane %v2137_v57, 1  ;;  %v2385_v37 = vmul.f32 %v8067_v26, %v8163_v56 }
  0xbd   : > { %v3243_v5 = vpack.c.bf16 %v8223_v43, %v8220_v36  ;;  %v2238_v7 = vrot.slane %v2138_v47, 1  ;;  %v2240_v13 = vrot.slane %v2139_v0, 1  ;;  %v2386_v39 = vmul.f32 %v8067_v26, %v8170_v63 }
  0xbe   : > { %v2387_v15 = vmul.f32 %v8067_v26, %v8177_v2  ;;  %v2095_v19 = vadd.f32 %v2063_v31, %v2023_v6  ;;  %v2096_v60 = vadd.f32 %v2064_v53, %v2024_v16  ;;  %v2485_v55 = vrot.slane %v2385_v37, 2  ;;  %v8287_v16 = vld [vmem:[%s8007_s23 + $0x78] sm:$0xff] }
  0xbf   : > { %v2631_v17 = vmul.f32 %v8095_v34, %v8244_v11  ;;  %v2239_v46 = vsel %vm599_vm1, %v2237_v10, %v2238_v7  ;;  %v2241_v12 = vsel %vm599_vm1, %v2238_v7, %v2240_v13  ;;  %v2486_v20 = vrot.slane %v2386_v39, 2 }
  0xc0   : > { %v2488_v18 = vrot.slane %v2387_v15, 2  ;;  %v2343_v14 = vadd.f32 %v2239_v46, %v2095_v19  ;;  %v2344_v48 = vadd.f32 %v2241_v12, %v2096_v60  ;;  %v2632_v27 = vmul.f32 %v8095_v34, %v8253_v38  ;;  %v8296_v19 = vld [vmem:[%s8007_s23 + $0x80] sm:$0xff] }
  0xc1   : > { %v2705_v33 = vmul.f32 %v8100_v35, %v8244_v11  ;;  %v2487_v1 = vsel %vm680_vm2, %v2485_v55, %v2486_v20  ;;  %v2706_v4 = vmul.f32 %v8100_v35, %v8253_v38  ;;  %v2707_v24 = vmul.f32 %v8100_v35, %v8258_v59 }
  0xc2   : > { %v2489_v58 = vsel %vm680_vm2, %v2486_v20, %v2488_v18  ;;  %v2591_v23 = vadd.f32 %v2487_v1, %v2343_v14  ;;  %v2953_v30 = vmul.f32 %v8111_v61, %v8244_v11  ;;  %v2954_v40 = vmul.f32 %v8111_v61, %v8253_v38 }
  0xc3   : > { %v2592_v25 = vadd.f32 %v2489_v58, %v2344_v48  ;;  %v2805_v54 = vrot.slane %v2705_v33, 1  ;;  %v2806_v9 = vrot.slane %v2706_v4, 1  ;;  %v2808_v32 = vrot.slane %v2707_v24, 1  ;;  %v8311_v48 = vld [vmem:[%s8007_s23 + $0x88] sm:$0x3] }
  0xc4   : > { %v2955_v41 = vmul.f32 %v8111_v61, %v8258_v59  ;;  %v2663_v21 = vadd.f32 %v2631_v17, %v2591_v23  ;;  %v3053_v44 = vrot.slane %v2953_v30, 2  ;;  %v1499_v51 = vmul.f32 %v8028_v29, %v8244_v11 }
  0xc5   : > { %v2664_v31 = vadd.f32 %v2632_v27, %v2592_v25  ;;  %v2807_v22 = vsel %vm599_vm1, %v2805_v54, %v2806_v9  ;;  %v2809_v8 = vsel %vm599_vm1, %v2806_v9, %v2808_v32  ;;  %v3054_v52 = vrot.slane %v2954_v40, 2  ;;  %v8326_v40 = vld [vmem:[%s8007_s23 + $0x90] sm:$0xff] }
  0xc6   : > { %v3056_v53 = vrot.slane %v2955_v41, 2  ;;  %v2911_v57 = vadd.f32 %v2807_v22, %v2663_v21  ;;  %v1500_v62 = vmul.f32 %v8028_v29, %v8253_v38  ;;  %v1575_v47 = vmul.f32 %v8015_v49, %v8244_v11 }
  0xc7   : > { %v2912_v3 = vadd.f32 %v2809_v8, %v2664_v31  ;;  %v3055_v0 = vsel %vm680_vm2, %v3053_v44, %v3054_v52  ;;  %v1576_v10 = vmul.f32 %v8015_v49, %v8253_v38  ;;  %v1577_v37 = vmul.f32 %v8015_v49, %v8258_v59 }
  0xc8   : > { %v3057_v6 = vsel %vm680_vm2, %v3054_v52, %v3056_v53  ;;  %v3159_v7 = vadd.f32 %v3055_v0, %v2911_v57  ;;  %v1679_v39 = vrot.slane %v1575_v47, 1  ;;  %v1823_v15 = vmul.f32 %v8023_v28, %v8244_v11  ;;  %v8340_v0 = vld [vmem:[%s8007_s23 + $0xa0] sm:$0x3] }
  0xc9   : > { %v3160_v13 = vadd.f32 %v3057_v6, %v2912_v3  ;;  %v1680_v60 = vrot.slane %v1576_v10, 1  ;;  %v1682_v55 = vrot.slane %v1577_v37, 1  ;;  %v1824_v17 = vmul.f32 %v8023_v28, %v8253_v38 }
  0xca   : > { %v1825_v46 = vmul.f32 %v8023_v28, %v8258_v59  ;;  %v8303_v12 = vadd.f32 %v8140_v50, %v3159_v7  ;;  %v1927_v18 = vrot.slane %v1823_v15, 2  ;;  %v2067_v14 = vmul.f32 %v8051_v42, %v8287_v16 }
  0xcb   : > { %v8306_v20 = vadd.f32 %v8140_v50, %v3160_v13  ;;  %v1681_v27 = vsel %vm599_vm1, %v1679_v39, %v1680_v60  ;;  %v1683_v33 = vsel %vm599_vm1, %v1680_v60, %v1682_v55  ;;  %v1928_v1 = vrot.slane %v1824_v17, 2 }
  0xcc   : > { %v1930_v58 = vrot.slane %v1825_v46, 2  ;;  %v1779_v24 = vadd.f32 %v1681_v27, %v1499_v51  ;;  %v1780_v23 = vadd.f32 %v1683_v33, %v1500_v62  ;;  %v2068_v25 = vmul.f32 %v8051_v42, %v8296_v19  ;;  %v8333_v51 = vld [vmem:[%s8007_s23 + $0x98] sm:$0xff] }
  0xcd   : > { %v3244_v4 = vpack.c.bf16 %v8306_v20, %v8303_v12  ;;  %v1929_v54 = vsel %vm680_vm2, %v1927_v18, %v1928_v1  ;;  %v2143_v9 = vmul.f32 %v8056_v45, %v8287_v16  ;;  %v2144_v32 = vmul.f32 %v8056_v45, %v8296_v19 }
  0xce   : > { %v1931_v30 = vsel %vm680_vm2, %v1928_v1, %v1930_v58  ;;  %v2027_v41 = vadd.f32 %v1929_v54, %v1779_v24  ;;  %v2145_v31 = vmul.f32 %v8056_v45, %v8311_v48  ;;  %v2391_v44 = vmul.f32 %v8067_v26, %v8287_v16 }
  0xcf   : > { %v2028_v21 = vadd.f32 %v1931_v30, %v1780_v23  ;;  %v2247_v22 = vrot.slane %v2143_v9, 1  ;;  %v2248_v8 = vrot.slane %v2144_v32, 1  ;;  %v2392_v52 = vmul.f32 %v8067_v26, %v8296_v19 }
  0xd0   : > { %v2393_v53 = vmul.f32 %v8067_v26, %v8311_v48  ;;  %v2099_v57 = vadd.f32 %v2067_v14, %v2027_v41  ;;  %v2250_v62 = vrot.slane %v2145_v31, 1  ;;  %v2495_v47 = vrot.slane %v2391_v44, 2 }
  0xd1   : > { %v2100_v3 = vadd.f32 %v2068_v25, %v2028_v21  ;;  %v2249_v6 = vsel %vm599_vm1, %v2247_v22, %v2248_v8  ;;  %v2496_v10 = vrot.slane %v2392_v52, 2  ;;  %v2635_v7 = vmul.f32 %v8095_v34, %v8326_v40 }
  0xd2   : > { %v2498_v37 = vrot.slane %v2393_v53, 2  ;;  %v2251_v13 = vsel %vm599_vm1, %v2248_v8, %v2250_v62  ;;  %v2347_v39 = vadd.f32 %v2249_v6, %v2099_v57  ;;  %v2636_v15 = vmul.f32 %v8095_v34, %v8333_v51 }
  0xd3   : > { %v2711_v60 = vmul.f32 %v8100_v35, %v8326_v40  ;;  %v2348_v55 = vadd.f32 %v2251_v13, %v2100_v3  ;;  %v2497_v17 = vsel %vm680_vm2, %v2495_v47, %v2496_v10  ;;  %v2712_v18 = vmul.f32 %v8100_v35, %v8333_v51 }
  0xd4   : > { %v2499_v46 = vsel %vm680_vm2, %v2496_v10, %v2498_v37  ;;  %v2595_v14 = vadd.f32 %v2497_v17, %v2347_v39  ;;  %v2713_v27 = vmul.f32 %v8100_v35, %v8340_v0  ;;  %v2959_v1 = vmul.f32 %v8111_v61, %v8326_v40 }
  0xd5   : > { %v2815_v33 = vrot.slane %v2711_v60, 1  ;;  %v2596_v58 = vadd.f32 %v2499_v46, %v2348_v55  ;;  %v2816_v24 = vrot.slane %v2712_v18, 1  ;;  %v2960_v23 = vmul.f32 %v8111_v61, %v8333_v51 }
  0xd6   : > { %v2961_v25 = vmul.f32 %v8111_v61, %v8340_v0  ;;  %v2667_v54 = vadd.f32 %v2635_v7, %v2595_v14  ;;  %v2818_v30 = vrot.slane %v2713_v27, 1  ;;  %v3063_v9 = vrot.slane %v2959_v1, 2 }
  0xd7   : > { %v1497_v32 = vmul.f32 %v8028_v29, %v8163_v56  ;;  %v2668_v41 = vadd.f32 %v2636_v15, %v2596_v58  ;;  %v2817_v21 = vsel %vm599_vm1, %v2815_v33, %v2816_v24  ;;  %v3064_v31 = vrot.slane %v2960_v23, 2 }
  0xd8   : > { %v3066_v44 = vrot.slane %v2961_v25, 2  ;;  %v2819_v22 = vsel %vm599_vm1, %v2816_v24, %v2818_v30  ;;  %v2915_v8 = vadd.f32 %v2817_v21, %v2667_v54  ;;  %v1498_v52 = vmul.f32 %v8028_v29, %v8170_v63 }
  0xd9   : > { %v1572_v53 = vmul.f32 %v8015_v49, %v8163_v56  ;;  %v2916_v57 = vadd.f32 %v2819_v22, %v2668_v41  ;;  %v3065_v3 = vsel %vm680_vm2, %v3063_v9, %v3064_v31  ;;  %v1573_v47 = vmul.f32 %v8015_v49, %v8170_v63 }
  0xda   : > { %v3067_v62 = vsel %vm680_vm2, %v3064_v31, %v3066_v44  ;;  %v3163_v6 = vadd.f32 %v3065_v3, %v2915_v8  ;;  %v1574_v10 = vmul.f32 %v8015_v49, %v8177_v2  ;;  %v1820_v7 = vmul.f32 %v8023_v28, %v8163_v56 }
  0xdb   : > { %v1674_v37 = vrot.slane %v1572_v53, 1  ;;  %v3164_v13 = vadd.f32 %v3067_v62, %v2916_v57  ;;  %v1675_v39 = vrot.slane %v1573_v47, 1  ;;  %v1821_v15 = vmul.f32 %v8023_v28, %v8170_v63 }
  0xdc   : > { %v1822_v60 = vmul.f32 %v8023_v28, %v8177_v2  ;;  %v3202_v55 = vadd.f32 %v8140_v50, %v3163_v6  ;;  %v1677_v17 = vrot.slane %v1574_v10, 1  ;;  %v1922_v46 = vrot.slane %v1820_v7, 2 }
  0xdd   : > { %v2065_v18 = vmul.f32 %v8051_v42, %v8244_v11  ;;  %v3203_v14 = vadd.f32 %v8140_v50, %v3164_v13  ;;  %v1676_v27 = vsel %vm599_vm1, %v1674_v37, %v1675_v39  ;;  %v1923_v56 = vrot.slane %v1821_v15, 2 }
  0xde   : > { %v1925_v33 = vrot.slane %v1822_v60, 2  ;;  %v1678_v1 = vsel %vm599_vm1, %v1675_v39, %v1677_v17  ;;  %v1777_v58 = vadd.f32 %v1676_v27, %v1497_v32  ;;  %v2066_v63 = vmul.f32 %v8051_v42, %v8253_v38 }
  0xdf   : > { %v2140_v2 = vmul.f32 %v8056_v45, %v8244_v11  ;;  %v3246_v24 = vpack.c.bf16 %v3203_v14, %v3202_v55  ;;  %v1778_v23 = vadd.f32 %v1678_v1, %v1498_v52  ;;  %v1924_v25 = vsel %vm680_vm2, %v1922_v46, %v1923_v56 }
  0xe0   : > { %v1926_v54 = vsel %vm680_vm2, %v1923_v56, %v1925_v33  ;;  %v2025_v30 = vadd.f32 %v1924_v25, %v1777_v58  ;;  %v2141_v9 = vmul.f32 %v8056_v45, %v8253_v38  ;;  %v2142_v41 = vmul.f32 %v8056_v45, %v8258_v59 }
  0xe1   : > { %v2242_v32 = vrot.slane %v2140_v2, 1  ;;  %3457 = vmatprep.mubr.bf16.mxu1 %v3246_v24  ;;  %v2026_v21 = vadd.f32 %v1926_v54, %v1778_v23  ;;  %v2388_v31 = vmul.f32 %v8067_v26, %v8244_v11  ;;  %v2389_v44 = vmul.f32 %v8067_v26, %v8253_v38 }
  0xe2   : > { %v2390_v22 = vmul.f32 %v8067_v26, %v8258_v59  ;;  %v2097_v8 = vadd.f32 %v2065_v18, %v2025_v30  ;;  %v2243_v52 = vrot.slane %v2141_v9, 1  ;;  %v2245_v53 = vrot.slane %v2142_v41, 1 }
  0xe3   : > { %v2633_v57 = vmul.f32 %v8095_v34, %v8287_v16  ;;  %v2098_v3 = vadd.f32 %v2066_v63, %v2026_v21  ;;  %v2490_v62 = vrot.slane %v2388_v31, 2  ;;  %v2491_v47 = vrot.slane %v2389_v44, 2 }
  0xe4   : > { %v2493_v6 = vrot.slane %v2390_v22, 2  ;;  %v2244_v10 = vsel %vm599_vm1, %v2242_v32, %v2243_v52  ;;  %v2246_v11 = vsel %vm599_vm1, %v2243_v52, %v2245_v53  ;;  %v2634_v38 = vmul.f32 %v8095_v34, %v8296_v19 }
  0xe5   : > { %v2708_v59 = vmul.f32 %v8100_v35, %v8287_v16  ;;  %v2345_v37 = vadd.f32 %v2244_v10, %v2097_v8  ;;  %v2346_v7 = vadd.f32 %v2246_v11, %v2098_v3  ;;  %v2492_v13 = vsel %vm680_vm2, %v2490_v62, %v2491_v47 }
  0xe6   : > { %v2494_v39 = vsel %vm680_vm2, %v2491_v47, %v2493_v6  ;;  %v2709_v15 = vmul.f32 %v8100_v35, %v8296_v19  ;;  %v2710_v60 = vmul.f32 %v8100_v35, %v8311_v48  ;;  %v2956_v17 = vmul.f32 %v8111_v61, %v8287_v16 }
  0xe7   : > { %v2810_v55 = vrot.slane %v2708_v59, 1  ;;  %v2593_v46 = vadd.f32 %v2492_v13, %v2345_v37  ;;  %v2594_v18 = vadd.f32 %v2494_v39, %v2346_v7  ;;  %v2957_v14 = vmul.f32 %v8111_v61, %v8296_v19 }
  0xe8   : > { %v2958_v27 = vmul.f32 %v8111_v61, %v8311_v48  ;;  %v2811_v56 = vrot.slane %v2709_v15, 1  ;;  %v2813_v33 = vrot.slane %v2710_v60, 1  ;;  %v3058_v1 = vrot.slane %v2956_v17, 2  ;;  %v8461_v15 = vld [vmem:[%s8007_s23 + $0xa8] sm:$0xff] }
  0xe9   : > { %v1501_v58 = vmul.f32 %v8028_v29, %v8287_v16  ;;  %v2665_v63 = vadd.f32 %v2633_v57, %v2593_v46  ;;  %v2666_v2 = vadd.f32 %v2634_v38, %v2594_v18  ;;  %v3059_v24 = vrot.slane %v2957_v14, 2 }
  0xea   : > { %v3061_v23 = vrot.slane %v2958_v27, 2  ;;  %v2812_v25 = vsel %vm599_vm1, %v2810_v55, %v2811_v56  ;;  %v2814_v54 = vsel %vm599_vm1, %v2811_v56, %v2813_v33  ;;  %v1502_v30 = vmul.f32 %v8028_v29, %v8296_v19  ;;  %v8470_v56 = vld [vmem:[%s8007_s23 + $0xb0] sm:$0xff] }
  0xeb   : > { %v1578_v9 = vmul.f32 %v8015_v49, %v8287_v16  ;;  %v2913_v41 = vadd.f32 %v2812_v25, %v2665_v63  ;;  %v2914_v32 = vadd.f32 %v2814_v54, %v2666_v2  ;;  %v3060_v21 = vsel %vm680_vm2, %v3058_v1, %v3059_v24  ;;  %v8481_v54 = vld [vmem:[%s8007_s23 + $0xb8] sm:$0x3] }
  0xec   : > { %v3062_v31 = vsel %vm680_vm2, %v3059_v24, %v3061_v23  ;;  %v1579_v44 = vmul.f32 %v8015_v49, %v8296_v19  ;;  %v1580_v22 = vmul.f32 %v8015_v49, %v8311_v48  ;;  %v1826_v52 = vmul.f32 %v8023_v28, %v8287_v16 }
  0xed   : > { %v1684_v8 = vrot.slane %v1578_v9, 1  ;;  %v3161_v53 = vadd.f32 %v3060_v21, %v2913_v41  ;;  %v3162_v57 = vadd.f32 %v3062_v31, %v2914_v32  ;;  %v1827_v3 = vmul.f32 %v8023_v28, %v8296_v19 }
  0xee   : > { %v1828_v62 = vmul.f32 %v8023_v28, %v8311_v48  ;;  %v1685_v47 = vrot.slane %v1579_v44, 1  ;;  %v1687_v6 = vrot.slane %v1580_v22, 1  ;;  %v1932_v10 = vrot.slane %v1826_v52, 2 }
  0xef   : > { %v2069_v11 = vmul.f32 %v8051_v42, %v8326_v40  ;;  %v8447_v38 = vadd.f32 %v8140_v50, %v3161_v53  ;;  %v8450_v16 = vadd.f32 %v8140_v50, %v3162_v57  ;;  %v1933_v59 = vrot.slane %v1827_v3, 2 }
  0xf0   : > { %v1935_v37 = vrot.slane %v1828_v62, 2  ;;  %v1686_v19 = vsel %vm599_vm1, %v1684_v8, %v1685_v47  ;;  %v1688_v7 = vsel %vm599_vm1, %v1685_v47, %v1687_v6  ;;  %v2070_v48 = vmul.f32 %v8051_v42, %v8333_v51 }
  0xf1   : > { %v2146_v13 = vmul.f32 %v8056_v45, %v8326_v40  ;;  %v3245_v39 = vpack.c.bf16 %v8450_v16, %v8447_v38  ;;  %v1781_v60 = vadd.f32 %v1686_v19, %v1501_v58  ;;  %v1782_v55 = vadd.f32 %v1688_v7, %v1502_v30 }
  0xf2   : > { %v1934_v17 = vsel %vm680_vm2, %v1932_v10, %v1933_v59  ;;  %v1936_v46 = vsel %vm680_vm2, %v1933_v59, %v1935_v37  ;;  %v2147_v18 = vmul.f32 %v8056_v45, %v8333_v51  ;;  %v2148_v14 = vmul.f32 %v8056_v45, %v8340_v0 }
  0xf3   : > { %v2252_v27 = vrot.slane %v2146_v13, 1  ;;  %v2029_v33 = vadd.f32 %v1934_v17, %v1781_v60  ;;  %v2030_v1 = vadd.f32 %v1936_v46, %v1782_v55  ;;  %v2394_v58 = vmul.f32 %v8067_v26, %v8326_v40 }
  0xf4   : > { %v2395_v63 = vmul.f32 %v8067_v26, %v8333_v51  ;;  %v2253_v2 = vrot.slane %v2147_v18, 1  ;;  %v2255_v24 = vrot.slane %v2148_v14, 1  ;;  %v2396_v23 = vmul.f32 %v8067_v26, %v8340_v0 }
  0xf5   : > { %v2637_v25 = vmul.f32 %v8095_v34, %v8461_v15  ;;  %v2101_v30 = vadd.f32 %v2069_v11, %v2029_v33  ;;  %v2102_v9 = vadd.f32 %v2070_v48, %v2030_v1  ;;  %v2500_v41 = vrot.slane %v2394_v58, 2 }
  0xf6   : > { %v2501_v32 = vrot.slane %v2395_v63, 2  ;;  %v2254_v21 = vsel %vm599_vm1, %v2252_v27, %v2253_v2  ;;  %v2256_v31 = vsel %vm599_vm1, %v2253_v2, %v2255_v24  ;;  %v2503_v44 = vrot.slane %v2396_v23, 2 }
  0xf7   : > { %v2638_v22 = vmul.f32 %v8095_v34, %v8470_v56  ;;  %v2349_v8 = vadd.f32 %v2254_v21, %v2101_v30  ;;  %v2350_v52 = vadd.f32 %v2256_v31, %v2102_v9  ;;  %v2714_v57 = vmul.f32 %v8100_v35, %v8461_v15 }
  0xf8   : > { %v2502_v53 = vsel %vm680_vm2, %v2500_v41, %v2501_v32  ;;  %v2504_v3 = vsel %vm680_vm2, %v2501_v32, %v2503_v44  ;;  %v2715_v62 = vmul.f32 %v8100_v35, %v8470_v56  ;;  %v2716_v47 = vmul.f32 %v8100_v35, %v8481_v54 }
  0xf9   : > { %v2962_v6 = vmul.f32 %v8111_v61, %v8461_v15  ;;  %v2597_v10 = vadd.f32 %v2502_v53, %v2349_v8  ;;  %v2598_v11 = vadd.f32 %v2504_v3, %v2350_v52  ;;  %v2820_v59 = vrot.slane %v2714_v57, 1 }
  0xfa   : > { %v2963_v37 = vmul.f32 %v8111_v61, %v8470_v56  ;;  %v2821_v19 = vrot.slane %v2715_v62, 1  ;;  %v2823_v7 = vrot.slane %v2716_v47, 1  ;;  %v2964_v48 = vmul.f32 %v8111_v61, %v8481_v54 }
  0xfb   : > { %v3068_v13 = vrot.slane %v2962_v6, 2  ;;  %v2669_v60 = vadd.f32 %v2637_v25, %v2597_v10  ;;  %v2670_v55 = vadd.f32 %v2638_v22, %v2598_v11  ;;  %v1503_v46 = vmul.f32 %v8028_v29, %v8326_v40 }
  0xfc   : > { %v3069_v17 = vrot.slane %v2963_v37, 2  ;;  %v2822_v18 = vsel %vm599_vm1, %v2820_v59, %v2821_v19  ;;  %v2824_v14 = vsel %vm599_vm1, %v2821_v19, %v2823_v7  ;;  %v3071_v27 = vrot.slane %v2964_v48, 2 }
  0xfd   : > { %v1504_v33 = vmul.f32 %v8028_v29, %v8333_v51  ;;  %v2917_v1 = vadd.f32 %v2822_v18, %v2669_v60  ;;  %v2918_v58 = vadd.f32 %v2824_v14, %v2670_v55  ;;  %v1581_v2 = vmul.f32 %v8015_v49, %v8326_v40  ;;  %v8556_v18 = vld [vmem:[%s8007_s23 + $0xd0] sm:$0x3] }
  0xfe   : > { %v3070_v63 = vsel %vm680_vm2, %v3068_v13, %v3069_v17  ;;  %v3072_v24 = vsel %vm680_vm2, %v3069_v17, %v3071_v27  ;;  %v1582_v23 = vmul.f32 %v8015_v49, %v8333_v51  ;;  %v1583_v25 = vmul.f32 %v8015_v49, %v8340_v0  ;;  %v8551_v13 = vld [vmem:[%s8007_s23 + $0xc8] sm:$0xff] }
  0xff   : > { %v1829_v30 = vmul.f32 %v8023_v28, %v8326_v40  ;;  %v3165_v9 = vadd.f32 %v3070_v63, %v2917_v1  ;;  %v3166_v29 = vadd.f32 %v3072_v24, %v2918_v58  ;;  %v1689_v41 = vrot.slane %v1581_v2, 1 }
 0x100   : > { %v1830_v32 = vmul.f32 %v8023_v28, %v8333_v51  ;;  %v1690_v21 = vrot.slane %v1582_v23, 1  ;;  %v1692_v31 = vrot.slane %v1583_v25, 1  ;;  %v1831_v44 = vmul.f32 %v8023_v28, %v8340_v0 }
 0x101   : > { %v1937_v22 = vrot.slane %v1829_v30, 2  ;;  %v8522_v8 = vadd.f32 %v8140_v50, %v3165_v9  ;;  %v8525_v49 = vadd.f32 %v8140_v50, %v3166_v29  ;;  %v2071_v52 = vmul.f32 %v8051_v42, %v8461_v15 }
 0x102   : > { %v1938_v40 = vrot.slane %v1830_v32, 2  ;;  %v1691_v53 = vsel %vm599_vm1, %v1689_v41, %v1690_v21  ;;  %v1693_v51 = vsel %vm599_vm1, %v1690_v21, %v1692_v31  ;;  %v1940_v57 = vrot.slane %v1831_v44, 2 }
 0x103   : > { %v2072_v28 = vmul.f32 %v8051_v42, %v8470_v56  ;;  %v3247_v0 = vpack.c.bf16 %v8525_v49, %v8522_v8  ;;  %v1783_v3 = vadd.f32 %v1691_v53, %v1503_v46  ;;  %v1784_v62 = vadd.f32 %v1693_v51, %v1504_v33  ;;  %v8544_v42 = vld [vmem:[%s8007_s23 + $0xc0] sm:$0xff] }
 0x104   : > { %v1939_v47 = vsel %vm680_vm2, %v1937_v22, %v1938_v40  ;;  %v1941_v6 = vsel %vm680_vm2, %v1938_v40, %v1940_v57  ;;  %v2149_v10 = vmul.f32 %v8056_v45, %v8461_v15  ;;  %v2150_v11 = vmul.f32 %v8056_v45, %v8470_v56 }
 0x105   : > { %v2151_v59 = vmul.f32 %v8056_v45, %v8481_v54  ;;  %v2031_v37 = vadd.f32 %v1939_v47, %v1783_v3  ;;  %v2032_v19 = vadd.f32 %v1941_v6, %v1784_v62  ;;  %v2397_v7 = vmul.f32 %v8067_v26, %v8461_v15  ;;  %v8583_v47 = vld [vmem:[%s10598_s4] ss:$0 sm:$0xff] }
 0x106   : > { %v2398_v48 = vmul.f32 %v8067_v26, %v8470_v56  ;;  %v2257_v60 = vrot.slane %v2149_v10, 1  ;;  %v2258_v55 = vrot.slane %v2150_v11, 1  ;;  %v2399_v46 = vmul.f32 %v8067_v26, %v8481_v54 }
 0x107   : > { %v2260_v17 = vrot.slane %v2151_v59, 1  ;;  %v2103_v45 = vadd.f32 %v2071_v52, %v2031_v37  ;;  %v2104_v14 = vadd.f32 %v2072_v28, %v2032_v19  ;;  %v2505_v27 = vrot.slane %v2397_v7, 2  ;;  %v8594_v19 = vld [vmem:[%s10598_s4 + $0x1] ss:$0 sm:$0xff] }
 0x108   : > { %v2506_v33 = vrot.slane %v2398_v48, 2  ;;  %v2259_v1 = vsel %vm599_vm1, %v2257_v60, %v2258_v55  ;;  %v2508_v63 = vrot.slane %v2399_v46, 2  ;;  %v2639_v2 = vmul.f32 %v8095_v34, %v8544_v42  ;;  %v8605_v46 = vld [vmem:[%s10598_s4 + $0x2] ss:$0 sm:$0xff] }
 0x109   : > { %v2261_v58 = vsel %vm599_vm1, %v2258_v55, %v2260_v17  ;;  %v2351_v24 = vadd.f32 %v2259_v1, %v2103_v45  ;;  %v2640_v26 = vmul.f32 %v8095_v34, %v8551_v13  ;;  %v2717_v9 = vmul.f32 %v8100_v35, %v8544_v42 }
 0x10a   : > { %v2352_v23 = vadd.f32 %v2261_v58, %v2104_v14  ;;  %v2507_v25 = vsel %vm680_vm2, %v2505_v27, %v2506_v33  ;;  %v2509_v30 = vsel %vm680_vm2, %v2506_v33, %v2508_v63  ;;  %v2718_v29 = vmul.f32 %v8100_v35, %v8551_v13 }
 0x10b   : > { %v2719_v41 = vmul.f32 %v8100_v35, %v8556_v18  ;;  %v2599_v32 = vadd.f32 %v2507_v25, %v2351_v24  ;;  %v2965_v31 = vmul.f32 %v8111_v61, %v8544_v42  ;;  %v2966_v44 = vmul.f32 %v8111_v61, %v8551_v13 }
 0x10c   : > { %v2600_v21 = vadd.f32 %v2509_v30, %v2352_v23  ;;  %v2825_v34 = vrot.slane %v2717_v9, 1  ;;  %v2826_v22 = vrot.slane %v2718_v29, 1  ;;  %v2967_v52 = vmul.f32 %v8111_v61, %v8556_v18 }
 0x10d   : > { %v2828_v40 = vrot.slane %v2719_v41, 1  ;;  %v2671_v53 = vadd.f32 %v2639_v2, %v2599_v32  ;;  %v3073_v57 = vrot.slane %v2965_v31, 2  ;;  %v3074_v28 = vrot.slane %v2966_v44, 2 }
 0x10e   : > { %v2672_v51 = vadd.f32 %v2640_v26, %v2600_v21  ;;  %v2827_v35 = vsel %vm599_vm1, %v2825_v34, %v2826_v22  ;;  %v3076_v62 = vrot.slane %v2967_v52, 2  ;;  %v1505_v6 = vmul.f32 %v8583_v47, %v8461_v15  ;;  %v8624_v26 = vld [vmem:[%s10598_s4 + $0x3] ss:$0 sm:$0xff]  ;;  %v8637_v21 = vld [vmem:[%s10598_s4 + $0x4] ss:$0 sm:$0xff]  ;;  %v8644_v34 = vld [vmem:[%s8007_s23 + $0xd8] sm:$0xff] }
 0x10f   : > { %v2829_v3 = vsel %vm599_vm1, %v2826_v22, %v2828_v40  ;;  %v2919_v10 = vadd.f32 %v2827_v35, %v2671_v53  ;;  %v3075_v61 = vsel %vm680_vm2, %v3073_v57, %v3074_v28  ;;  %v1506_v59 = vmul.f32 %v8583_v47, %v8470_v56  ;;  %v8651_v53 = vld [vmem:[%s10598_s4 + $0x5] ss:$0 sm:$0xff] }
 0x110   : > { %v2920_v11 = vadd.f32 %v2829_v3, %v2672_v51  ;;  %v3077_v37 = vsel %vm680_vm2, %v3074_v28, %v3076_v62  ;;  %v1584_v7 = vmul.f32 %v8594_v19, %v8461_v15  ;;  %v1585_v48 = vmul.f32 %v8594_v19, %v8470_v56  ;;  %v8656_v57 = vld [vmem:[%s8007_s23 + $0xe0] sm:$0xff] }
 0x111   : > { %v1586_v60 = vmul.f32 %v8594_v19, %v8481_v54  ;;  %v3167_v55 = vadd.f32 %v3075_v61, %v2919_v10  ;;  %v1832_v45 = vmul.f32 %v8605_v46, %v8461_v15  ;;  %v1833_v14 = vmul.f32 %v8605_v46, %v8470_v56 }
 0x112   : > { %v3168_v17 = vadd.f32 %v3077_v37, %v2920_v11  ;;  %v1694_v27 = vrot.slane %v1584_v7, 1  ;;  %v1695_v33 = vrot.slane %v1585_v48, 1  ;;  %v1834_v58 = vmul.f32 %v8605_v46, %v8481_v54 }
 0x113   : > { %v1697_v1 = vrot.slane %v1586_v60, 1  ;;  %v8614_v63 = vadd.f32 %v8140_v50, %v3167_v55  ;;  %v1942_v24 = vrot.slane %v1832_v45, 2  ;;  %v1943_v23 = vrot.slane %v1833_v14, 2  ;;  %v8669_v60 = vld [vmem:[%s10598_s4 + $0x6] ss:$0 sm:$0xff] }
 0x114   : > { %v8617_v2 = vadd.f32 %v8140_v50, %v3168_v17  ;;  %v1696_v15 = vsel %vm599_vm1, %v1694_v27, %v1695_v33  ;;  %v1945_v56 = vrot.slane %v1834_v58, 2  ;;  %v2073_v54 = vmul.f32 %v8624_v26, %v8544_v42  ;;  %v8679_v27 = vld [vmem:[%s10598_s4 + $0x7] ss:$0 sm:$0xff] }
 0x115   : > { %v1698_v25 = vsel %vm599_vm1, %v1695_v33, %v1697_v1  ;;  %v1785_v30 = vadd.f32 %v1696_v15, %v1505_v6  ;;  %v1944_v29 = vsel %vm680_vm2, %v1942_v24, %v1943_v23  ;;  %v2074_v32 = vmul.f32 %v8624_v26, %v8551_v13 }
 0x116   : > { %v3248_v50 = vpack.c.bf16 %v8617_v2, %v8614_v63  ;;  %v1786_v9 = vadd.f32 %v1698_v25, %v1506_v59  ;;  %v1946_v41 = vsel %vm680_vm2, %v1943_v23, %v1945_v56  ;;  %v2152_v31 = vmul.f32 %v8637_v21, %v8544_v42  ;;  %v8663_v59 = vld [vmem:[%s8007_s23 + $0xe8] sm:$0x3] }
 0x117   : > { %v2153_v44 = vmul.f32 %v8637_v21, %v8551_v13  ;;  %v2033_v22 = vadd.f32 %v1944_v29, %v1785_v30  ;;  %v2154_v52 = vmul.f32 %v8637_v21, %v8556_v18  ;;  %v2400_v51 = vmul.f32 %v8651_v53, %v8544_v42 }
 0x118   : > { %v2034_v40 = vadd.f32 %v1946_v41, %v1786_v9  ;;  %v2262_v28 = vrot.slane %v2152_v31, 1  ;;  %v2401_v3 = vmul.f32 %v8651_v53, %v8551_v13  ;;  %v2402_v62 = vmul.f32 %v8651_v53, %v8556_v18 }
 0x119   : > { %v2263_v35 = vrot.slane %v2153_v44, 1  ;;  %v2105_v6 = vadd.f32 %v2073_v54, %v2033_v22  ;;  %v2265_v11 = vrot.slane %v2154_v52, 1  ;;  %v2510_v61 = vrot.slane %v2400_v51, 2  ;;  %v8692_v54 = vld [vmem:[%s10598_s4 + $0x8] ss:$0 sm:$0xff] }
 0x11a   : > { %v2106_v10 = vadd.f32 %v2074_v32, %v2034_v40  ;;  %v2511_v7 = vrot.slane %v2401_v3, 2  ;;  %v2513_v48 = vrot.slane %v2402_v62, 2  ;;  %v2641_v55 = vmul.f32 %v8669_v60, %v8644_v34 }
 0x11b   : > { %v2264_v37 = vsel %vm599_vm1, %v2262_v28, %v2263_v35  ;;  %v2266_v17 = vsel %vm599_vm1, %v2263_v35, %v2265_v11  ;;  %v2642_v14 = vmul.f32 %v8669_v60, %v8656_v57  ;;  %v2720_v33 = vmul.f32 %v8679_v27, %v8644_v34 }
 0x11c   : > { %v2353_v45 = vadd.f32 %v2264_v37, %v2105_v6  ;;  %v2354_v1 = vadd.f32 %v2266_v17, %v2106_v10  ;;  %v2512_v58 = vsel %vm680_vm2, %v2510_v61, %v2511_v7  ;;  %v2514_v24 = vsel %vm680_vm2, %v2511_v7, %v2513_v48 }
 0x11d   : > { %v2721_v23 = vmul.f32 %v8679_v27, %v8656_v57  ;;  %v2722_v25 = vmul.f32 %v8679_v27, %v8663_v59  ;;  %v2830_v56 = vrot.slane %v2720_v33, 1  ;;  %v2968_v30 = vmul.f32 %v8692_v54, %v8644_v34 }
 0x11e   : > { %v2601_v15 = vadd.f32 %v2512_v58, %v2353_v45  ;;  %v2602_v9 = vadd.f32 %v2514_v24, %v2354_v1  ;;  %v2969_v41 = vmul.f32 %v8692_v54, %v8656_v57  ;;  %v2970_v32 = vmul.f32 %v8692_v54, %v8663_v59 }
 0x11f   : > { %v2831_v29 = vrot.slane %v2721_v23, 1  ;;  %v2833_v44 = vrot.slane %v2722_v25, 1  ;;  %v3078_v22 = vrot.slane %v2968_v30, 2  ;;  %v1507_v40 = vmul.f32 %v8583_v47, %v8544_v42  ;;  %v8725_v25 = vld [vmem:[%s10599_s5] ss:$0 sm:$0xff] }
 0x120   : > { %v2673_v31 = vadd.f32 %v2641_v55, %v2601_v15  ;;  %v2674_v52 = vadd.f32 %v2642_v14, %v2602_v9  ;;  %v3079_v28 = vrot.slane %v2969_v41, 2  ;;  %v3081_v35 = vrot.slane %v2970_v32, 2 }
 0x121   : > { %v2832_v51 = vsel %vm599_vm1, %v2830_v56, %v2831_v29  ;;  %v2834_v3 = vsel %vm599_vm1, %v2831_v29, %v2833_v44  ;;  %v1508_v6 = vmul.f32 %v8583_v47, %v8551_v13  ;;  %v1587_v10 = vmul.f32 %v8594_v19, %v8544_v42 }
 0x122   : > { %v2921_v62 = vadd.f32 %v2832_v51, %v2673_v31  ;;  %v2922_v11 = vadd.f32 %v2834_v3, %v2674_v52  ;;  %v3080_v61 = vsel %vm680_vm2, %v3078_v22, %v3079_v28  ;;  %v3082_v37 = vsel %vm680_vm2, %v3079_v28, %v3081_v35 }
 0x123   : > { %v1588_v7 = vmul.f32 %v8594_v19, %v8551_v13  ;;  %v1589_v17 = vmul.f32 %v8594_v19, %v8556_v18  ;;  %v1699_v45 = vrot.slane %v1587_v10, 1  ;;  %v1835_v14 = vmul.f32 %v8605_v46, %v8544_v42 }
 0x124   : > { %v3169_v55 = vadd.f32 %v3080_v61, %v2921_v62  ;;  %v3170_v1 = vadd.f32 %v3082_v37, %v2922_v11  ;;  %v1836_v24 = vmul.f32 %v8605_v46, %v8551_v13  ;;  %v1837_v23 = vmul.f32 %v8605_v46, %v8556_v18  ;;  %v8755_v61 = vld [vmem:[%s8007_s23 + $0xf8] sm:$0xff] }
 0x125   : > { %v1700_v58 = vrot.slane %v1588_v7, 1  ;;  %v1702_v30 = vrot.slane %v1589_v17, 1  ;;  %v1947_v42 = vrot.slane %v1835_v14, 2  ;;  %v2075_v9 = vmul.f32 %v8624_v26, %v8644_v34 }
 0x126   : > { %v8728_v56 = vadd.f32 %v8725_v25, %v3169_v55  ;;  %v8734_v41 = vadd.f32 %v8725_v25, %v3170_v1  ;;  %v1948_v32 = vrot.slane %v1836_v24, 2  ;;  %v1950_v52 = vrot.slane %v1837_v23, 2 }
 0x127   : > { %v1701_v18 = vsel %vm599_vm1, %v1699_v45, %v1700_v58  ;;  %v1703_v44 = vsel %vm599_vm1, %v1700_v58, %v1702_v30  ;;  %v2076_v3 = vmul.f32 %v8624_v26, %v8656_v57  ;;  %v2155_v11 = vmul.f32 %v8637_v21, %v8644_v34 }
 0x128   : > { %v1787_v22 = vadd.f32 %v1701_v18, %v1507_v40  ;;  %v3249_v51 = vpack.c.bf16 %v8734_v41, %v8728_v56  ;;  %v1788_v28 = vadd.f32 %v1703_v44, %v1508_v6  ;;  %v1949_v35 = vsel %vm680_vm2, %v1947_v42, %v1948_v32  ;;  %v8752_v6 = vld [vmem:[%s8007_s23 + $0xf0] sm:$0xff] }
 0x129   : > { %v1951_v62 = vsel %vm680_vm2, %v1948_v32, %v1950_v52  ;;  %v2156_v40 = vmul.f32 %v8637_v21, %v8656_v57  ;;  %v2157_v7 = vmul.f32 %v8637_v21, %v8663_v59  ;;  %v2404_v55 = vmul.f32 %v8651_v53, %v8656_v57  ;;  %v7273_v41 = vld [vmem:[%s10603_s9 + $0x90] sm:$0xff]  }
 0x12a   : > { %v2035_v10 = vadd.f32 %v1949_v35, %v1787_v22  ;;  %v2036_v37 = vadd.f32 %v1951_v62, %v1788_v28  ;;  %v2267_v36 = vrot.slane %v2155_v11, 1  ;;  %v1510_v12 = vmul.f32 %v8583_v47, %v8656_v57 }
 0x12b   : > { %v2268_v43 = vrot.slane %v2156_v40, 1  ;;  %v2270_v1 = vrot.slane %v2157_v7, 1  ;;  %v2516_v24 = vrot.slane %v2404_v55, 2  ;;  %v2971_v40 = vmul.f32 %v8692_v54, %v8752_v6 }
 0x12c   : > { %v2107_v45 = vadd.f32 %v2075_v9, %v2035_v10  ;;  %v2643_v9 = vmul.f32 %v8669_v60, %v8752_v6  ;;  %v2724_v10 = vmul.f32 %v8679_v27, %v8755_v61  ;;  %v1590_v20 = vmul.f32 %v8594_v19, %v8644_v34 }
 0x12d   : > { %v2269_v30 = vsel %vm599_vm1, %v2267_v36, %v2268_v43  ;;  %v2078_v38 = vmul.f32 %v8624_v26, %v8755_v61  ;;  %v2158_v49 = vmul.f32 %v8637_v21, %v8752_v6 }
 0x12e   : > { %v2355_v44 = vadd.f32 %v2269_v30, %v2107_v45  ;;  %v2836_v36 = vrot.slane %v2724_v10, 1 }
 0x145   : > { %v8712_v48 = vpop.f32.mrb[0].mxu0 }
 0x146   : > { %v1303_v33 = vpop.f32.mrb[1].mxu0 }
 0x147   : > { %v7006_v15 = vpop.f32.mrb[2].mxu0 }
 0x148   : > { %v3227_v29 = vpack.c.bf16 %v7006_v15, %v8712_v48  ;;  %v1306_v13 = vpop.f32.mrb[3].mxu0  ;;  %v2403_v48 = vmul.f32 %v8651_v53, %v8644_v34  ;;  %v8770_v15 = vld [vmem:[%s8007_s23 + $0x100] sm:$0x3] }
 0x149   : > { %v3226_v31 = vpack.c.bf16 %v1306_v13, %v1303_v33  ;;  %v2108_v33 = vadd.f32 %v2076_v3, %v2036_v37  ;;  %v2644_v13 = vmul.f32 %v8669_v60, %v8755_v61  ;;  %v2723_v3 = vmul.f32 %v8679_v27, %v8752_v6 }
 0x14a   : > { %v2515_v58 = vrot.slane %v2403_v48, 2  ;;  %v2725_v11 = vmul.f32 %v8679_v27, %v8770_v15  ;;  %v2972_v48 = vmul.f32 %v8692_v54, %v8755_v61  ;;  %v2973_v55 = vmul.f32 %v8692_v54, %v8770_v15 }
 0x14b   : > { %3426 = vmatmul.mubr.bf16.vlgmr.msra.gmra.mrb[32].mxu0 %v3226_v31  ;;  %v2271_v31 = vsel %vm599_vm1, %v2268_v43, %v2270_v1  ;;  %v2835_v7 = vrot.slane %v2723_v3, 1  ;;  %v1704_v3 = vrot.slane %v1590_v20, 1  ;;  %v1843_v56 = vmul.f32 %v8605_v46, %v8770_v15 }
 0x14c   : > { %3433 = vmatprep.mubr.bf16.mxu0 %v3243_v5  ;;  %v2405_v5 = vmul.f32 %v8651_v53, %v8663_v59  ;;  %v2517_v22 = vsel %vm680_vm2, %v2515_v58, %v2516_v24  ;;  %v2356_v28 = vadd.f32 %v2271_v31, %v2108_v33  ;;  %v2838_v43 = vrot.slane %v2725_v11, 1 }
 0x14d   : > { %v8763_v17 = vpop.f32.mrb[4].mxu0  ;;  %v2603_v62 = vadd.f32 %v2517_v22, %v2355_v44  ;;  %v3086_v1 = vrot.slane %v2973_v55, 2  ;;  %v1509_v58 = vmul.f32 %v8583_v47, %v8644_v34  ;;  %v2837_v30 = vsel %vm599_vm1, %v2835_v7, %v2836_v36 }
 0x14e   : > { %v1319_v14 = vpop.f32.mrb[5].mxu0  ;;  %v2518_v42 = vrot.slane %v2405_v5, 2  ;;  %v3083_v5 = vrot.slane %v2971_v40, 2  ;;  %v1838_v40 = vmul.f32 %v8605_v46, %v8644_v34  ;;  %v1840_v55 = vmul.f32 %v8605_v46, %v8663_v59 }
 0x14f   : > { %v8767_v23 = vpop.f32.mrb[6].mxu0  ;;  %v2675_v45 = vadd.f32 %v2643_v9, %v2603_v62  ;;  %v2077_v34 = vmul.f32 %v8624_v26, %v8752_v6 }
 0x150   : > { %v3229_v18 = vpack.c.bf16 %v8767_v23, %v8763_v17  ;;  %v1322_v32 = vpop.f32.mrb[7].mxu0  ;;  %v2519_v35 = vsel %vm680_vm2, %v2516_v24, %v2518_v42  ;;  %v2839_v42 = vsel %vm599_vm1, %v2836_v36, %v2838_v43  ;;  %v1952_v43 = vrot.slane %v1838_v40, 2  ;;  %v7258_v17 = vld [vmem:[%s10603_s9 + $0xc0] sm:$0xff]  }
 0x151   : > { %v3228_v52 = vpack.c.bf16 %v1322_v32, %v1319_v14  ;;  %v2604_v37 = vadd.f32 %v2519_v35, %v2356_v28  ;;  %v2923_v9 = vadd.f32 %v2837_v30, %v2675_v45  ;;  %v1591_v28 = vmul.f32 %v8594_v19, %v8656_v57  ;;  %6592 = vmatprep.subr.bf16.mxu1 %v7258_v17 }
 0x152   : > { %v1592_v35 = vmul.f32 %v8594_v19, %v8663_v59  ;;  %v2408_v40 = vmul.f32 %v8651_v53, %v8770_v15 }
 0x153   : > { %3434 = vmatmul.mubr.bf16.gmra.mrb[36].mxu0 %v3227_v29  ;;  %v2676_v33 = vadd.f32 %v2644_v13, %v2604_v37  ;;  %v3084_v29 = vrot.slane %v2972_v48, 2  ;;  %v1705_v37 = vrot.slane %v1591_v28, 1  ;;  %v1839_v48 = vmul.f32 %v8605_v46, %v8656_v57  ;;  %v8868_v28 = vld [vmem:[%s8007_s23 + $0x110] sm:$0xff] }
 0x154   : > { %3441 = vmatprep.mubr.bf16.mxu0 %v3244_v4  ;;  %v1707_v7 = vrot.slane %v1592_v35, 1  ;;  %v2727_v2 = vmul.f32 %v8679_v27, %v8868_v28 }
 0x155   : > { %v8797_v14 = vpop.f32.mrb[8].mxu0  ;;  %v2924_v32 = vadd.f32 %v2839_v42, %v2676_v33  ;;  %v3085_v13 = vsel %vm680_vm2, %v3083_v5, %v3084_v29  ;;  %v3087_v31 = vsel %vm680_vm2, %v3084_v29, %v3086_v1  ;;  %v1706_v57 = vsel %vm599_vm1, %v1704_v3, %v1705_v37 }
 0x156   : > { %v1335_v24 = vpop.f32.mrb[9].mxu0  ;;  %v3171_v10 = vadd.f32 %v3085_v13, %v2923_v9  ;;  %v1708_v59 = vsel %vm599_vm1, %v1705_v37, %v1707_v7  ;;  %v1955_v5 = vrot.slane %v1840_v55, 2  ;;  %v1789_v29 = vadd.f32 %v1706_v57, %v1509_v58  ;;  %v8861_v9 = vld [vmem:[%s8007_s23 + $0x108] sm:$0xff]  ;;  %v7257_v57 = vld [vmem:[%s10603_s9] sm:$0xff]  }
 0x157   : > { %v7014_v4 = vpop.f32.mrb[10].mxu0  ;;  %v3172_v11 = vadd.f32 %v3087_v31, %v2924_v32  ;;  %v1790_v1 = vadd.f32 %v1708_v59, %v1510_v12  ;;  %v2160_v42 = vmul.f32 %v8637_v21, %v8770_v15  ;;  %v2406_v12 = vmul.f32 %v8651_v53, %v8752_v6 }
 0x158   : > { %v3231_v44 = vpack.c.bf16 %v7014_v4, %v8797_v14  ;;  %v1338_v22 = vpop.f32.mrb[11].mxu0  ;;  %v8821_v45 = vadd.f32 %v8725_v25, %v3171_v10  ;;  %v2272_v32 = vrot.slane %v2158_v49, 1  ;;  %v2407_v31 = vmul.f32 %v8651_v53, %v8755_v61  ;;  %v8871_v10 = vld [vmem:[%s8007_s23 + $0x118] sm:$0x3] }
 0x159   : > { %v3230_v62 = vpack.c.bf16 %v1338_v22, %v1335_v24  ;;  %v8824_v36 = vadd.f32 %v8725_v25, %v3172_v11  ;;  %v2520_v37 = vrot.slane %v2406_v12, 2  ;;  %v2646_v59 = vmul.f32 %v8669_v60, %v8868_v28 }
 0x15a   : > { %v2521_v7 = vrot.slane %v2407_v31, 2  ;;  %v2726_v63 = vmul.f32 %v8679_v27, %v8861_v9  ;;  %v2975_v49 = vmul.f32 %v8692_v54, %v8868_v28  ;;  %v2841_v31 = vrot.slane %v2727_v2, 1  ;;  %v7264_v2 = vld [vmem:[%s10603_s9 + $0x58] sm:$0xff]  }
 0x15b   : > { %3442 = vmatmul.mubr.bf16.gmra.mrb[40].mxu0 %v3228_v52  ;;  %3458 = vmatmul.mubr.bf16.vlgmr.msra.gmra.mrb[0].mxu1 %v3230_v62  ;;  %v1953_v52 = vrot.slane %v1839_v48, 2  ;;  %v3250_v33 = vpack.c.bf16 %v8824_v36, %v8821_v45  ;;  %v2275_v62 = vrot.slane %v2160_v42, 1 }
 0x15c   : > { %3449 = vmatprep.mubr.bf16.mxu0 %v3245_v39  ;;  %3465 = vmatprep.mubr.bf16.mxu1 %v3247_v0  ;;  %v2159_v0 = vmul.f32 %v8637_v21, %v8755_v61 }
 0x15d   : > { %v8836_v14 = vpop.f32.mrb[12].mxu0  ;;  %v1954_v39 = vsel %vm680_vm2, %v1952_v43, %v1953_v52  ;;  %v1956_v8 = vsel %vm680_vm2, %v1953_v52, %v1955_v5  ;;  %v2645_v43 = vmul.f32 %v8669_v60, %v8861_v9  ;;  %v7259_v52 = vld [vmem:[%s10603_s9 + $0x80] sm:$0xff]   ;;  %v7260_v5 = vld [vmem:[%s10603_s9 + $0x48] sm:$0xff]  }
 0x15e   : > { %v8842_v16 = vpop.f32.mrb[13].mxu0  ;;  %v2037_v58 = vadd.f32 %v1954_v39, %v1789_v29  ;;  %v2038_v30 = vadd.f32 %v1956_v8, %v1790_v1  ;;  %v2273_v13 = vrot.slane %v2159_v0, 1  ;;  %v2974_v8 = vmul.f32 %v8692_v54, %v8861_v9  ;;  %6593 = vmatpush3.bf16.msra.mxu1 %v7259_v52 }
 0x15f   : > { %v8850_v24 = vpop.f32.mrb[14].mxu0  ;;  %v2976_v0 = vmul.f32 %v8692_v54, %v8871_v10 }
 0x160   : > { %v3233_v20 = vpack.c.bf16 %v8850_v24, %v8836_v14  ;;  %v8858_v4 = vpop.f32.mrb[15].mxu0  ;;  %v2109_v35 = vadd.f32 %v2077_v34, %v2037_v58  ;;  %v2110_v3 = vadd.f32 %v2078_v38, %v2038_v30  ;;  %v2274_v11 = vsel %vm599_vm1, %v2272_v32, %v2273_v13  ;;  %v7256_v34 = vld [vmem:[%s10603_s9 + $0x40] sm:$0xff]   ;;  %v7261_v58 = vld [vmem:[%s10603_s9 + $0x8] sm:$0xff]  }
 0x161   : > { %v3232_v22 = vpack.c.bf16 %v8858_v4, %v8842_v16  ;;  %v2276_v48 = vsel %vm599_vm1, %v2273_v13, %v2275_v62  ;;  %6480 = vmatprep.subr.bf16.mxu0 %v7256_v34  ;;  %v7266_v30 = vld [vmem:[%s10603_s9 + $0xc8] sm:$0xff]   ;;  %v2840_v13 = vrot.slane %v2726_v63, 1  ;;  %v1593_v63 = vmul.f32 %v8594_v19, %v8752_v6 }
 0x162   : > { %v2357_v55 = vadd.f32 %v2274_v11, %v2109_v35  ;;  %v2358_v23 = vadd.f32 %v2276_v48, %v2110_v3  ;;  %6481 = vmatpush3.bf16.msra.mxu0 %v7257_v57  ;;  %v3088_v11 = vrot.slane %v2974_v8, 2  ;;  %6594 = vmatprep.subr.bf16.mxu1 %v7266_v30  ;;  %v7267_v34 = vld [vmem:[%s10603_s9 + $0x88] sm:$0xff]   ;;  %v1594_v16 = vmul.f32 %v8594_v19, %v8755_v61 }
 0x163   : > { %3450 = vmatmul.mubr.bf16.gmra.mrb[44].mxu0 %v3229_v18  ;;  %3466 = vmatmul.mubr.bf16.gmra.mrb[4].mxu1 %v3231_v44  ;;  %v2522_v18 = vsel %vm680_vm2, %v2520_v37, %v2521_v7  ;;  %v2523_v44 = vrot.slane %v2408_v40, 2  ;;  %v3089_v40 = vrot.slane %v2975_v49, 2  ;;  %v2842_v48 = vsel %vm599_vm1, %v2840_v13, %v2841_v31  ;;  %v9042_v14 = vld [vmem:[%s8007_s23 + $0x128] sm:$0xff] }
 0x164   : > { %3473 = vmatprep.mubr.bf16.mxu1 %v3248_v50  ;;  %v2605_v1 = vadd.f32 %v2522_v18, %v2357_v55  ;;  %v2728_v50 = vmul.f32 %v8679_v27, %v8871_v10  ;;  %6482 = vmatprep.subr.bf16.mxu0 %v7260_v5  ;;  %v3091_v55 = vrot.slane %v2976_v0, 2  ;;  %v1511_v18 = vmul.f32 %v8583_v47, %v8752_v6 }
 0x165   : > { %v8903_v29 = vpop.f32.mrb[16].mxu0  ;;  %v2524_v39 = vsel %vm680_vm2, %v2521_v7, %v2523_v44  ;;  %v7263_v44 = vld [vmem:[%s10603_s9 + $0x10] sm:$0xff]   ;;  %v1595_v4 = vmul.f32 %v8594_v19, %v8770_v15  ;;  %v1709_v49 = vrot.slane %v1593_v63, 1  ;;  %v1842_v0 = vmul.f32 %v8605_v46, %v8755_v61  ;;  %6595 = vmatpush3.bf16.msra.mxu1 %v7267_v34 }
 0x166   : > { %v8911_v38 = vpop.f32.mrb[17].mxu0  ;;  %v2606_v12 = vadd.f32 %v2524_v39, %v2358_v23  ;;  %v2677_v32 = vadd.f32 %v2645_v43, %v2605_v1  ;;  %v2843_v62 = vrot.slane %v2728_v50, 1  ;;  %v7262_v43 = vld [vmem:[%s10603_s9 + $0x50] sm:$0xff]   ;;  %v3090_v23 = vsel %vm680_vm2, %v3088_v11, %v3089_v40  ;;  %6483 = vmatpush3.bf16.msra.mxu0 %v7261_v58 }
 0x167   : > { %v8926_v42 = vpop.f32.mrb[18].mxu0  ;;  %v3092_v5 = vsel %vm680_vm2, %v3089_v40, %v3091_v55  ;;  %v1512_v1 = vmul.f32 %v8583_v47, %v8755_v61  ;;  %6484 = vmatprep.subr.bf16.mxu0 %v7262_v43  ;;  %v1710_v58 = vrot.slane %v1594_v16, 1  ;;  %v1712_v30 = vrot.slane %v1595_v4, 1  ;;  %v7265_v61 = vld [vmem:[%s10603_s9 + $0x18] sm:$0xff]   ;;  %v7268_v43 = vld [vmem:[%s10603_s9 + $0x60] sm:$0xff]  }
 0x168   : > { %v3235_v35 = vpack.c.bf16 %v8926_v42, %v8903_v29  ;;  %v8930_v3 = vpop.f32.mrb[19].mxu0  ;;  %v2678_v7 = vadd.f32 %v2646_v59, %v2606_v12  ;;  %v2844_v57 = vsel %vm599_vm1, %v2841_v31, %v2843_v62  ;;  %v2925_v17 = vadd.f32 %v2842_v48, %v2677_v32  ;;  %v7271_v59 = vld [vmem:[%s10603_s9 + $0xd0] sm:$0xff]  }
 0x169   : > { %v3234_v37 = vpack.c.bf16 %v8930_v3, %v8911_v38  ;;  %6596 = vmatprep.subr.bf16.mxu1 %v7271_v59  ;;  %v1958_v13 = vrot.slane %v1842_v0, 2  ;;  %v1960_v31 = vrot.slane %v1843_v56, 2  ;;  %v2079_v62 = vmul.f32 %v8624_v26, %v8861_v9  ;;  %v7279_v56 = vld [vmem:[%s10603_s9 + $0xe0] sm:$0xff]  }
 0x16a   : > { %v2926_v52 = vadd.f32 %v2844_v57, %v2678_v7  ;;  %v3173_v50 = vadd.f32 %v3090_v23, %v2925_v17  ;;  %6485 = vmatpush3.bf16.msra.mxu0 %v7263_v44  ;;  %v1711_v7 = vsel %vm599_vm1, %v1709_v49, %v1710_v58  ;;  %v1713_v48 = vsel %vm599_vm1, %v1710_v58, %v1712_v30  ;;  %v7275_v44 = vld [vmem:[%s10603_s9 + $0xd8] sm:$0xff]  }
 0x16b   : > { %3474 = vmatmul.mubr.bf16.gmra.mrb[8].mxu1 %v3232_v22  ;;  %v1841_v22 = vmul.f32 %v8605_v46, %v8752_v6  ;;  %6486 = vmatprep.subr.bf16.mxu0 %v7264_v2  ;;  %v2080_v55 = vmul.f32 %v8624_v26, %v8868_v28  ;;  %v1791_v17 = vadd.f32 %v1711_v7, %v1511_v18  ;;  %v7269_v18 = vld [vmem:[%s10603_s9 + $0x20] sm:$0xff]  }
 0x16c   : > { %3481 = vmatprep.mubr.bf16.mxu1 %v3249_v51  ;;  %v3174_v39 = vadd.f32 %v3092_v5, %v2926_v52  ;;  %v8981_v51 = vadd.f32 %v8725_v25, %v3173_v50  ;;  %v1792_v23 = vadd.f32 %v1713_v48, %v1512_v1  ;;  %6597 = vmatpush3.bf16.msra.mxu1 %v7273_v41  ;;  %v7277_v1 = vld [vmem:[%s10603_s9 + $0x98] sm:$0xff]   ;;  %v9029_v2 = vld [vmem:[%s8007_s23 + $0x120] sm:$0xff]  ;;  %v9052_v41 = vld [vmem:[%s8007_s23 + $0x130] sm:$0x3] }
 0x16d   : > { %v8971_v8 = vpop.f32.mrb[20].mxu0  ;;  %v1957_v12 = vrot.slane %v1841_v22, 2  ;;  %v1961_v52 = vsel %vm680_vm2, %v1958_v13, %v1960_v31  ;;  %v2161_v5 = vmul.f32 %v8637_v21, %v8861_v9  ;;  %v2162_v63 = vmul.f32 %v8637_v21, %v8868_v28  ;;  %6598 = vmatprep.subr.bf16.mxu1 %v7275_v44  ;;  %v7281_v48 = vld [vmem:[%s10603_s9 + $0xa0] sm:$0xff]  }
 0x16e   : > { %v8983_v6 = vpop.f32.mrb[21].mxu0  ;;  %v8989_v15 = vadd.f32 %v8725_v25, %v3174_v39  ;;  %6487 = vmatpush3.bf16.msra.mxu0 %v7265_v61  ;;  %v2040_v16 = vadd.f32 %v1961_v52, %v1792_v23  ;;  %v2163_v4 = vmul.f32 %v8637_v21, %v8871_v10  ;;  %v2409_v22 = vmul.f32 %v8651_v53, %v8861_v9  ;;  %v7270_v39 = vld [vmem:[%s10603_s9 + $0x68] sm:$0xff]  }
 0x16f   : > { %v8991_v32 = vpop.f32.mrb[22].mxu0  ;;  %v1959_v59 = vsel %vm680_vm2, %v1957_v12, %v1958_v13  ;;  %v2277_v24 = vrot.slane %v2161_v5, 1  ;;  %v2410_v49 = vmul.f32 %v8651_v53, %v8868_v28  ;;  %v2411_v0 = vmul.f32 %v8651_v53, %v8871_v10  ;;  %6488 = vmatprep.subr.bf16.mxu0 %v7268_v43 }
 0x170   : > { %v3237_v11 = vpack.c.bf16 %v8991_v32, %v8971_v8  ;;  %v8997_v40 = vpop.f32.mrb[23].mxu0  ;;  %v3251_v34 = vpack.c.bf16 %v8989_v15, %v8981_v51  ;;  %v2039_v50 = vadd.f32 %v1959_v59, %v1791_v17  ;;  %v2112_v45 = vadd.f32 %v2080_v55, %v2040_v16  ;;  %6599 = vmatpush3.bf16.msra.mxu1 %v7277_v1  ;;  %v7274_v59 = vld [vmem:[%s10603_s9 + $0x70] sm:$0xff]  }
 0x171   : > { %v3236_v57 = vpack.c.bf16 %v8997_v40, %v8983_v6  ;;  %v2280_v36 = vrot.slane %v2163_v4, 1  ;;  %v2526_v61 = vrot.slane %v2410_v49, 2  ;;  %v2528_v13 = vrot.slane %v2411_v0, 2  ;;  %6600 = vmatprep.subr.bf16.mxu1 %v7279_v56  ;;  %v7276_v0 = vld [vmem:[%s10603_s9 + $0x30] sm:$0xff]  }
 0x172   : > { %v2111_v58 = vadd.f32 %v2079_v62, %v2039_v50  ;;  %v2647_v31 = vmul.f32 %v8669_v60, %v9029_v2  ;;  %6489 = vmatpush3.bf16.msra.mxu0 %v7269_v18  ;;  %v7272_v62 = vld [vmem:[%s10603_s9 + $0x28] sm:$0xff]   ;;  %v2648_v17 = vmul.f32 %v8669_v60, %v9042_v14  ;;  %v2729_v23 = vmul.f32 %v8679_v27, %v9029_v2 }
 0x173   : > { %3482 = vmatmul.mubr.bf16.gmra.mrb[12].mxu1 %v3233_v20  ;;  %v2278_v20 = vrot.slane %v2162_v63, 1  ;;  %6490 = vmatprep.subr.bf16.mxu0 %v7270_v39  ;;  %v2529_v63 = vsel %vm680_vm2, %v2526_v61, %v2528_v13  ;;  %v2730_v18 = vmul.f32 %v8679_v27, %v9042_v14  ;;  %v2731_v16 = vmul.f32 %v8679_v27, %v9052_v41 }
 0x174   : > { %3489 = vmatprep.mubr.bf16.mxu1 %v3250_v33  ;;  %v2525_v33 = vrot.slane %v2409_v22, 2  ;;  %v2845_v4 = vrot.slane %v2729_v23, 1  ;;  %v2977_v22 = vmul.f32 %v8692_v54, %v9029_v2  ;;  %v2979_v49 = vmul.f32 %v8692_v54, %v9052_v41  ;;  %6601 = vmatpush3.bf16.msra.mxu1 %v7281_v48 }
 0x175   : > { %v9054_v30 = vpop.f32.mrb[24].mxu0  ;;  %v2279_v12 = vsel %vm599_vm1, %v2277_v24, %v2278_v20  ;;  %v2281_v55 = vsel %vm599_vm1, %v2278_v20, %v2280_v36  ;;  %v2846_v24 = vrot.slane %v2730_v18, 1  ;;  %v2978_v20 = vmul.f32 %v8692_v54, %v9042_v14 }
 0x176   : > { %v9059_v7 = vpop.f32.mrb[25].mxu0  ;;  %v2359_v43 = vadd.f32 %v2279_v12, %v2111_v58  ;;  %v2360_v52 = vadd.f32 %v2281_v55, %v2112_v45  ;;  %v2527_v5 = vsel %vm680_vm2, %v2525_v33, %v2526_v61  ;;  %6491 = vmatpush3.bf16.msra.mxu0 %v7272_v62  ;;  %v2848_v58 = vrot.slane %v2731_v16, 1  ;;  %v7278_v33 = vld [vmem:[%s10603_s9 + $0x78] sm:$0xff]  }
 0x177   : > { %v9072_v44 = vpop.f32.mrb[26].mxu0  ;;  %v3093_v45 = vrot.slane %v2977_v22, 2  ;;  %v1513_v36 = vmul.f32 %v8583_v47, %v8861_v9  ;;  %6492 = vmatprep.subr.bf16.mxu0 %v7274_v59  ;;  %v2847_v61 = vsel %vm599_vm1, %v2845_v4, %v2846_v24  ;;  %v3094_v38 = vrot.slane %v2978_v20, 2 }
 0x178   : > { %v9081_v1 = vpop.f32.mrb[27].mxu0  ;;  %v2607_v50 = vadd.f32 %v2527_v5, %v2359_v43  ;;  %v2608_v39 = vadd.f32 %v2529_v63, %v2360_v52  ;;  %v3096_v3 = vrot.slane %v2979_v49, 2  ;;  %v1596_v62 = vmul.f32 %v8594_v19, %v8861_v9 }
 0x179   : > { %v3095_v51 = vsel %vm680_vm2, %v3093_v45, %v3094_v38  ;;  %v1598_v59 = vmul.f32 %v8594_v19, %v8871_v10  ;;  %v1844_v5 = vmul.f32 %v8605_v46, %v8861_v9  ;;  %v1845_v16 = vmul.f32 %v8605_v46, %v8868_v28 }
 0x17a   : > { %v2679_v56 = vadd.f32 %v2647_v31, %v2607_v50  ;;  %v2680_v12 = vadd.f32 %v2648_v17, %v2608_v39  ;;  %v1514_v31 = vmul.f32 %v8583_v47, %v8868_v28  ;;  %v3097_v15 = vsel %vm680_vm2, %v3094_v38, %v3096_v3  ;;  %6493 = vmatpush3.bf16.msra.mxu0 %v7276_v0  ;;  %v7280_v17 = vld [vmem:[%s10603_s9 + $0x38] sm:$0xff]  }
 0x17b   : > { %3490 = vmatmul.mubr.bf16.gmra.mrb[16].mxu1 %v3234_v37  ;;  %v2849_v37 = vsel %vm599_vm1, %v2846_v24, %v2848_v58  ;;  %v1714_v52 = vrot.slane %v1596_v62, 1  ;;  %6494 = vmatprep.subr.bf16.mxu0 %v7278_v33  ;;  %v1846_v4 = vmul.f32 %v8605_v46, %v8871_v10  ;;  %v1717_v24 = vrot.slane %v1598_v59, 1  ;;  %v9168_v59 = vld [vmem:[%s8007_s23 + $0x148] sm:$0x3] }
 0x17c   : > { %3497 = vmatprep.mubr.bf16.mxu1 %v3251_v34  ;;  %v2927_v13 = vadd.f32 %v2847_v61, %v2679_v56  ;;  %v2928_v55 = vadd.f32 %v2849_v37, %v2680_v12  ;;  %v1597_v34 = vmul.f32 %v8594_v19, %v8868_v28  ;;  %v1962_v20 = vrot.slane %v1844_v5, 2  ;;  %v9148_v61 = vld [vmem:[%s8007_s23 + $0x138] sm:$0xff] }
 0x17d   : > { %v9111_v48 = vpop.f32.mrb[28].mxu0  ;;  %v2081_v9 = vmul.f32 %v8624_v26, %v9029_v2  ;;  %v1963_v56 = vrot.slane %v1845_v16, 2  ;;  %v1965_v58 = vrot.slane %v1846_v4, 2  ;;  %v2082_v45 = vmul.f32 %v8624_v26, %v9042_v14 }
 0x17e   : > { %v9117_v43 = vpop.f32.mrb[29].mxu0  ;;  %v3175_v23 = vadd.f32 %v3095_v51, %v2927_v13  ;;  %v3176_v18 = vadd.f32 %v3097_v15, %v2928_v55  ;;  %v1715_v50 = vrot.slane %v1597_v34, 1  ;;  %6495 = vmatpush3.bf16.msra.mxu0 %v7280_v17  ;;  %v2164_v33 = vmul.f32 %v8637_v21, %v9029_v2  ;;  %v9157_v13 = vld [vmem:[%s8007_s23 + $0x140] sm:$0xff] }
 0x17f   : > { %v9126_v63 = vpop.f32.mrb[30].mxu0  ;;  %v1964_v3 = vsel %vm680_vm2, %v1962_v20, %v1963_v56  ;;  %v1966_v29 = vsel %vm680_vm2, %v1963_v56, %v1965_v58  ;;  %v2413_v55 = vmul.f32 %v8651_v53, %v9042_v14  ;;  %v2414_v51 = vmul.f32 %v8651_v53, %v9052_v41 }
 0x180   : > { %v9132_v22 = vpop.f32.mrb[31].mxu0  ;;  %v3214_v39 = vadd.f32 %v8725_v25, %v3175_v23  ;;  %v3215_v49 = vadd.f32 %v8725_v25, %v3176_v18  ;;  %v1716_v0 = vsel %vm599_vm1, %v1714_v52, %v1715_v50  ;;  %v1718_v28 = vsel %vm599_vm1, %v1715_v50, %v1717_v24 }
 0x181   : > { %v1793_v10 = vadd.f32 %v1716_v0, %v1513_v36  ;;  %v1794_v38 = vadd.f32 %v1718_v28, %v1514_v31  ;;  %v2166_v36 = vmul.f32 %v8637_v21, %v9052_v41  ;;  %v2282_v37 = vrot.slane %v2164_v33, 1 }
 0x182   : > { %v3252_v12 = vpack.c.bf16 %v3215_v49, %v3214_v39  ;;  %v2412_v31 = vmul.f32 %v8651_v53, %v9029_v2  ;;  %v2649_v23 = vmul.f32 %v8669_v60, %v9148_v61  ;;  %v2531_v18 = vrot.slane %v2413_v55, 2 }
 0x183   : > { %3498 = vmatmul.mubr.bf16.gmra.mrb[20].mxu1 %v3235_v35  ;;  %v2041_v42 = vadd.f32 %v1964_v3, %v1793_v10  ;;  %v2165_v35 = vmul.f32 %v8637_v21, %v9042_v14  ;;  %v2042_v62 = vadd.f32 %v1966_v29, %v1794_v38  ;;  %v2285_v17 = vrot.slane %v2166_v36, 1 }
 0x184   : > { %3505 = vmatprep.mubr.bf16.mxu1 %v3252_v12  ;;  %v2530_v5 = vrot.slane %v2412_v31, 2  ;;  %v2533_v50 = vrot.slane %v2414_v51, 2  ;;  %v2650_v39 = vmul.f32 %v8669_v60, %v9157_v13  ;;  %v2732_v24 = vmul.f32 %v8679_v27, %v9148_v61 }
 0x185   : > { %v2113_v15 = vadd.f32 %v2081_v9, %v2041_v42  ;;  %v2283_v34 = vrot.slane %v2165_v35, 1  ;;  %v2114_v52 = vadd.f32 %v2082_v45, %v2042_v62  ;;  %v2733_v56 = vmul.f32 %v8679_v27, %v9157_v13 }
 0x186   : > { %v2532_v49 = vsel %vm680_vm2, %v2530_v5, %v2531_v18  ;;  %v2534_v0 = vsel %vm680_vm2, %v2531_v18, %v2533_v50  ;;  %v2734_v58 = vmul.f32 %v8679_v27, %v9168_v59  ;;  %v2850_v28 = vrot.slane %v2732_v24, 1 }
 0x187   : > { %v2284_v16 = vsel %vm599_vm1, %v2282_v37, %v2283_v34  ;;  %v2286_v4 = vsel %vm599_vm1, %v2283_v34, %v2285_v17  ;;  %v2980_v10 = vmul.f32 %v8692_v54, %v9148_v61  ;;  %v2981_v12 = vmul.f32 %v8692_v54, %v9157_v13 }
 0x188   : > { %v2361_v20 = vadd.f32 %v2284_v16, %v2113_v15  ;;  %v2362_v9 = vadd.f32 %v2286_v4, %v2114_v52  ;;  %v2982_v38 = vmul.f32 %v8692_v54, %v9168_v59  ;;  %v2851_v6 = vrot.slane %v2733_v56, 1 }
 0x189   : > { %v2853_v40 = vrot.slane %v2734_v58, 1  ;;  %v3239_v3 = vpack.c.bf16 %v9072_v44, %v9054_v30  ;;  %v3099_v35 = vrot.slane %v2981_v12, 2  ;;  %v3238_v31 = vpack.c.bf16 %v9081_v1, %v9059_v7 }
 0x18a   : > { %v2609_v45 = vadd.f32 %v2532_v49, %v2361_v20  ;;  %v2610_v33 = vadd.f32 %v2534_v0, %v2362_v9  ;;  %v3101_v36 = vrot.slane %v2982_v38, 2  ;;  %v2852_v37 = vsel %vm599_vm1, %v2850_v28, %v2851_v6 }
 0x18b   : > { %3506 = vmatmul.mubr.bf16.gmra.mrb[24].mxu1 %v3236_v57  ;;  %v3098_v57 = vrot.slane %v2980_v10, 2  ;;  %v2854_v62 = vsel %vm599_vm1, %v2851_v6, %v2853_v40  ;;  %v1515_v55 = vmul.f32 %v8583_v47, %v9029_v2  ;;  %v1599_v52 = vmul.f32 %v8594_v19, %v9029_v2  ;;  %v9230_v40 = vld [vmem:[%s8007_s23 + $0x150] sm:$0xff] }
 0x18c   : > { %v2681_v29 = vadd.f32 %v2649_v23, %v2609_v45  ;;  %v2682_v42 = vadd.f32 %v2650_v39, %v2610_v33  ;;  %v3102_v17 = vsel %vm680_vm2, %v3099_v35, %v3101_v36  ;;  %v1516_v23 = vmul.f32 %v8583_v47, %v9042_v14 }
 0x18d   : > { %v3100_v34 = vsel %vm680_vm2, %v3098_v57, %v3099_v35  ;;  %v1600_v5 = vmul.f32 %v8594_v19, %v9042_v14  ;;  %v1601_v18 = vmul.f32 %v8594_v19, %v9052_v41  ;;  %v1847_v4 = vmul.f32 %v8605_v46, %v9029_v2 }
 0x18e   : > { %v2929_v51 = vadd.f32 %v2852_v37, %v2681_v29  ;;  %v2930_v15 = vadd.f32 %v2854_v62, %v2682_v42  ;;  %v1848_v39 = vmul.f32 %v8605_v46, %v9042_v14  ;;  %v1719_v24 = vrot.slane %v1599_v52, 1 }
 0x18f   : > { %v1720_v20 = vrot.slane %v1600_v5, 1  ;;  %v1722_v47 = vrot.slane %v1601_v18, 1  ;;  %v1849_v9 = vmul.f32 %v8605_v46, %v9052_v41  ;;  %v1967_v19 = vrot.slane %v1847_v4, 2 }
 0x190   : > { %v3177_v50 = vadd.f32 %v3100_v34, %v2929_v51  ;;  %v3178_v16 = vadd.f32 %v3102_v17, %v2930_v15  ;;  %v1968_v56 = vrot.slane %v1848_v39, 2  ;;  %v2083_v14 = vmul.f32 %v8624_v26, %v9148_v61  ;;  %v9247_v17 = vld [vmem:[%s8007_s23 + $0x160] sm:$0x3] }
 0x191   : > { %v1721_v58 = vsel %vm599_vm1, %v1719_v24, %v1720_v20  ;;  %v1723_v2 = vsel %vm599_vm1, %v1720_v20, %v1722_v47  ;;  %v1970_v28 = vrot.slane %v1849_v9, 2  ;;  %v2084_v12 = vmul.f32 %v8624_v26, %v9157_v13  ;;  %v9240_v26 = vld [vmem:[%s8007_s23 + $0x158] sm:$0xff] }
 0x192   : > { %v3216_v49 = vadd.f32 %v8725_v25, %v3177_v50  ;;  %v3217_v0 = vadd.f32 %v8725_v25, %v3178_v16  ;;  %v1795_v45 = vadd.f32 %v1721_v58, %v1515_v55  ;;  %v1796_v33 = vadd.f32 %v1723_v2, %v1516_v23 }
 0x193   : > { %v1969_v46 = vsel %vm680_vm2, %v1967_v19, %v1968_v56  ;;  %v1971_v41 = vsel %vm680_vm2, %v1968_v56, %v1970_v28  ;;  %v2167_v38 = vmul.f32 %v8637_v21, %v9148_v61  ;;  %v2168_v6 = vmul.f32 %v8637_v21, %v9157_v13  ;;  %v9272_v28 = vld [vmem:[%s10598_s4] ss:$0 sm:$0xff] }
 0x194   : > { %v3253_v10 = vpack.c.bf16 %v3217_v0, %v3216_v49  ;;  %v2043_v57 = vadd.f32 %v1969_v46, %v1795_v45  ;;  %v2044_v29 = vadd.f32 %v1971_v41, %v1796_v33  ;;  %v2169_v42 = vmul.f32 %v8637_v21, %v9168_v59 }
 0x195   : > { %v2415_v35 = vmul.f32 %v8651_v53, %v9148_v61  ;;  %v2287_v36 = vrot.slane %v2167_v38, 1  ;;  %v2288_v37 = vrot.slane %v2168_v6, 1  ;;  %v2416_v62 = vmul.f32 %v8651_v53, %v9157_v13 }
 0x196   : > { %3513 = vmatprep.mubr.bf16.mxu1 %v3253_v10  ;;  %v2417_v55 = vmul.f32 %v8651_v53, %v9168_v59  ;;  %v2115_v51 = vadd.f32 %v2083_v14, %v2043_v57  ;;  %v2116_v15 = vadd.f32 %v2084_v12, %v2044_v29  ;;  %v2290_v21 = vrot.slane %v2169_v42, 1  ;;  %v9283_v12 = vld [vmem:[%s10598_s4 + $0x1] ss:$0 sm:$0xff] }
 0x197   : > { %3514 = vmatmul.mubr.bf16.gmra.mrb[28].mxu1 %v3237_v11  ;;  %v2535_v34 = vrot.slane %v2415_v35, 2  ;;  %v2289_v23 = vsel %vm599_vm1, %v2287_v36, %v2288_v37  ;;  %v2536_v8 = vrot.slane %v2416_v62, 2  ;;  %v2651_v11 = vmul.f32 %v8669_v60, %v9230_v40  ;;  %v9296_v62 = vld [vmem:[%s10598_s4 + $0x2] ss:$0 sm:$0xff] }
 0x198   : > { %v2538_v32 = vrot.slane %v2417_v55, 2  ;;  %v2291_v52 = vsel %vm599_vm1, %v2288_v37, %v2290_v21  ;;  %v2363_v5 = vadd.f32 %v2289_v23, %v2115_v51  ;;  %v2652_v18 = vmul.f32 %v8669_v60, %v9240_v26  ;;  %v7282_v51 = vld [vmem:[%s10603_s9 + $0xe8] sm:$0xff]  }
 0x199   : > { %v2735_v53 = vmul.f32 %v8679_v27, %v9230_v40  ;;  %v2364_v50 = vadd.f32 %v2291_v52, %v2116_v15  ;;  %v2537_v16 = vsel %vm680_vm2, %v2535_v34, %v2536_v8  ;;  %v2736_v39 = vmul.f32 %v8679_v27, %v9240_v26  ;;  %6602 = vmatprep.subr.bf16.mxu1 %v7282_v51 }
 0x19a   : > { %v2539_v4 = vsel %vm680_vm2, %v2536_v8, %v2538_v32  ;;  %v2611_v24 = vadd.f32 %v2537_v16, %v2363_v5  ;;  %v2737_v20 = vmul.f32 %v8679_v27, %v9247_v17  ;;  %v2983_v9 = vmul.f32 %v8692_v54, %v9230_v40  ;;  %v7286_v16 = vld [vmem:[%s10603_s9 + $0xf0] sm:$0xff]  }
 0x19b   : > { %v2855_v47 = vrot.slane %v2735_v53, 1  ;;  %v2612_v60 = vadd.f32 %v2539_v4, %v2364_v50  ;;  %v2856_v49 = vrot.slane %v2736_v39, 1  ;;  %v2984_v0 = vmul.f32 %v8692_v54, %v9240_v26 }
 0x19c   : > { %v2985_v19 = vmul.f32 %v8692_v54, %v9247_v17  ;;  %v2683_v56 = vadd.f32 %v2651_v11, %v2611_v24  ;;  %v2858_v58 = vrot.slane %v2737_v20, 1  ;;  %v3103_v2 = vrot.slane %v2983_v9, 2  ;;  %v9332_v20 = vld [vmem:[%s10598_s4 + $0x4] ss:$0 sm:$0xff]  ;;  %v9337_v9 = vld [vmem:[%s8007_s23 + $0x168] sm:$0xff] }
 0x19d   : > { %v1517_v27 = vmul.f32 %v9272_v28, %v9148_v61  ;;  %v2684_v14 = vadd.f32 %v2652_v18, %v2612_v60  ;;  %v2857_v10 = vsel %vm599_vm1, %v2855_v47, %v2856_v49  ;;  %v3104_v45 = vrot.slane %v2984_v0, 2 }
 0x19e   : > { %v3106_v33 = vrot.slane %v2985_v19, 2  ;;  %v2859_v46 = vsel %vm599_vm1, %v2856_v49, %v2858_v58  ;;  %v2931_v41 = vadd.f32 %v2857_v10, %v2683_v56  ;;  %v1518_v54 = vmul.f32 %v9272_v28, %v9157_v13  ;;  %v7287_v19 = vld [vmem:[%s10603_s9 + $0xb0] sm:$0xff]  }
 0x19f   : > { %v1602_v38 = vmul.f32 %v9283_v12, %v9148_v61  ;;  %v2932_v6 = vadd.f32 %v2859_v46, %v2684_v14  ;;  %v3105_v57 = vsel %vm680_vm2, %v3103_v2, %v3104_v45  ;;  %v1603_v42 = vmul.f32 %v9283_v12, %v9157_v13  ;;  %v9349_v14 = vld [vmem:[%s8007_s23 + $0x170] sm:$0xff] }
 0x1a0   : > { %v3107_v29 = vsel %vm680_vm2, %v3104_v45, %v3106_v33  ;;  %v3179_v35 = vadd.f32 %v3105_v57, %v2931_v41  ;;  %v1604_v36 = vmul.f32 %v9283_v12, %v9168_v59  ;;  %v1850_v55 = vmul.f32 %v9296_v62, %v9148_v61  ;;  %v9311_v61 = vld [vmem:[%s10598_s4 + $0x3] ss:$0 sm:$0xff]  ;;  %v9354_v45 = vld [vmem:[%s10598_s4 + $0x5] ss:$0 sm:$0xff]  ;;  %v9368_v57 = vld [vmem:[%s10598_s4 + $0x6] ss:$0 sm:$0xff] }
 0x1a1   : > { %v1724_v37 = vrot.slane %v1602_v38, 1  ;;  %v3180_v15 = vadd.f32 %v3107_v29, %v2932_v6  ;;  %v1725_v21 = vrot.slane %v1603_v42, 1  ;;  %v1851_v34 = vmul.f32 %v9296_v62, %v9157_v13  ;;  %v7283_v13 = vld [vmem:[%s10603_s9 + $0xa8] sm:$0xff]   ;;  %v7288_v42 = vld [vmem:[%s10603_s9 + $0xf8] sm:$0xff]  }
 0x1a2   : > { %v1852_v23 = vmul.f32 %v9296_v62, %v9168_v59  ;;  %v3218_v8 = vadd.f32 %v8725_v25, %v3179_v35  ;;  %v1727_v32 = vrot.slane %v1604_v36, 1  ;;  %v1972_v11 = vrot.slane %v1850_v55, 2  ;;  %v7284_v59 = vld [vmem:[%s10603_s9 + $0x140] sm:$0xff]   ;;  %6603 = vmatpush3.bf16.msra.mxu1 %v7283_v13  ;;  %v9376_v35 = vld [vmem:[%s8007_s23 + $0x178] sm:$0x3] }
 0x1a3   : > { %v2085_v52 = vmul.f32 %v9311_v61, %v9230_v40  ;;  %v3219_v5 = vadd.f32 %v8725_v25, %v3180_v15  ;;  %v1726_v18 = vsel %vm599_vm1, %v1724_v37, %v1725_v21  ;;  %v1973_v53 = vrot.slane %v1851_v34, 2  ;;  %6704 = vmatprep.subr.bf16.mxu0 %v7284_v59  ;;  %6604 = vmatprep.subr.bf16.mxu1 %v7286_v16  ;;  %v9385_v15 = vld [vmem:[%s10598_s4 + $0x7] ss:$0 sm:$0xff]  ;;  %v7289_v34 = vld [vmem:[%s10603_s9 + $0xb8] sm:$0xff]  }
 0x1a4   : > { %v1975_v50 = vrot.slane %v1852_v23, 2  ;;  %v1728_v4 = vsel %vm599_vm1, %v1725_v21, %v1727_v32  ;;  %v1797_v39 = vadd.f32 %v1726_v18, %v1517_v27  ;;  %v2086_v24 = vmul.f32 %v9311_v61, %v9240_v26 }
 0x1a5   : > { %v2170_v25 = vmul.f32 %v9332_v20, %v9230_v40  ;;  %v3254_v47 = vpack.c.bf16 %v3219_v5, %v3218_v8  ;;  %v1798_v60 = vadd.f32 %v1728_v4, %v1518_v54  ;;  %v1974_v49 = vsel %vm680_vm2, %v1972_v11, %v1973_v53  ;;  %v9401_v5 = vld [vmem:[%s10598_s4 + $0x8] ss:$0 sm:$0xff] }
 0x1a6   : > { %v1976_v0 = vsel %vm680_vm2, %v1973_v53, %v1975_v50  ;;  %v2045_v56 = vadd.f32 %v1974_v49, %v1797_v39  ;;  %v2171_v58 = vmul.f32 %v9332_v20, %v9240_v26  ;;  %v2172_v2 = vmul.f32 %v9332_v20, %v9247_v17  ;;  %6605 = vmatpush3.bf16.msra.mxu1 %v7287_v19 }
 0x1a7   : > { %v2292_v27 = vrot.slane %v2170_v25, 1  ;;  %3521 = vmatprep.mubr.bf16.mxu1 %v3254_v47  ;;  %v2046_v10 = vadd.f32 %v1976_v0, %v1798_v60  ;;  %v2418_v33 = vmul.f32 %v9354_v45, %v9230_v40  ;;  %v2419_v46 = vmul.f32 %v9354_v45, %v9240_v26  ;;  %6606 = vmatprep.subr.bf16.mxu1 %v7288_v42 }
 0x1a8   : > { %v2420_v41 = vmul.f32 %v9354_v45, %v9247_v17  ;;  %3522 = vmatmul.mubr.bf16.gmra.mrb[32].mxu1 %v3238_v31  ;;  %v2117_v54 = vadd.f32 %v2085_v52, %v2045_v56  ;;  %v2293_v38 = vrot.slane %v2171_v58, 1  ;;  %v2295_v6 = vrot.slane %v2172_v2, 1 }
 0x1a9   : > { %v2653_v29 = vmul.f32 %v9368_v57, %v9337_v9  ;;  %v2118_v36 = vadd.f32 %v2086_v24, %v2046_v10  ;;  %v2540_v7 = vrot.slane %v2418_v33, 2  ;;  %v2541_v1 = vrot.slane %v2419_v46, 2 }
 0x1aa   : > { %v2543_v31 = vrot.slane %v2420_v41, 2  ;;  %v2294_v37 = vsel %vm599_vm1, %v2292_v27, %v2293_v38  ;;  %v2296_v55 = vsel %vm599_vm1, %v2293_v38, %v2295_v6  ;;  %v2654_v51 = vmul.f32 %v9368_v57, %v9349_v14  ;;  %6607 = vmatpush3.bf16.msra.mxu1 %v7289_v34 }
 0x1ab   : > { %v2738_v21 = vmul.f32 %v9385_v15, %v9337_v9  ;;  %v2365_v23 = vadd.f32 %v2294_v37, %v2117_v54  ;;  %v2366_v8 = vadd.f32 %v2296_v55, %v2118_v36  ;;  %v2542_v32 = vsel %vm680_vm2, %v2540_v7, %v2541_v1 }
 0x1ac   : > { %v2544_v11 = vsel %vm680_vm2, %v2541_v1, %v2543_v31  ;;  %v2739_v52 = vmul.f32 %v9385_v15, %v9349_v14  ;;  %v2740_v13 = vmul.f32 %v9385_v15, %v9376_v35  ;;  %v2986_v18 = vmul.f32 %v9401_v5, %v9337_v9 }
 0x1ad   : > { %v2860_v59 = vrot.slane %v2738_v21, 1  ;;  %v2613_v53 = vadd.f32 %v2542_v32, %v2365_v23  ;;  %v2614_v50 = vadd.f32 %v2544_v11, %v2366_v8  ;;  %v2987_v16 = vmul.f32 %v9401_v5, %v9349_v14  ;;  %v9436_v21 = vld [vmem:[%s10599_s5] ss:$0 sm:$0xff] }
 0x1ae   : > { %v2988_v4 = vmul.f32 %v9401_v5, %v9376_v35  ;;  %v2861_v39 = vrot.slane %v2739_v52, 1  ;;  %v2863_v24 = vrot.slane %v2740_v13, 1  ;;  %v3108_v25 = vrot.slane %v2986_v18, 2 }
 0x1af   : > { %v3241_v47 = vpack.c.bf16 %v9126_v63, %v9111_v48  ;;  %v2685_v60 = vadd.f32 %v2653_v29, %v2613_v53  ;;  %v2686_v49 = vadd.f32 %v2654_v51, %v2614_v50  ;;  %v3109_v0 = vrot.slane %v2987_v16, 2  ;;  %v7296_v48 = vld [vmem:[%s10603_s9 + $0x160] sm:$0xff]  }
 0x1b0   : > { %v3111_v19 = vrot.slane %v2988_v4, 2  ;;  %v2862_v56 = vsel %vm599_vm1, %v2860_v59, %v2861_v39  ;;  %v2864_v58 = vsel %vm599_vm1, %v2861_v39, %v2863_v24  ;;  %v3240_v2 = vpack.c.bf16 %v9132_v22, %v9117_v43  ;;  %v9453_v39 = vld [vmem:[%s8007_s23 + $0x180] sm:$0xff] }
 0x1b1   : > { %v1519_v27 = vmul.f32 %v9272_v28, %v9230_v40  ;;  %v2933_v10 = vadd.f32 %v2862_v56, %v2685_v60  ;;  %v2934_v33 = vadd.f32 %v2864_v58, %v2686_v49  ;;  %v3110_v46 = vsel %vm680_vm2, %v3108_v25, %v3109_v0  ;;  %v7298_v63 = vld [vmem:[%s10603_s9 + $0x120] sm:$0xff]  }
 0x1b2   : > { %v3112_v41 = vsel %vm680_vm2, %v3109_v0, %v3111_v19  ;;  %v1520_v54 = vmul.f32 %v9272_v28, %v9240_v26  ;;  %v1605_v38 = vmul.f32 %v9283_v12, %v9230_v40  ;;  %v1606_v6 = vmul.f32 %v9283_v12, %v9240_v26  ;;  %v9463_v0 = vld [vmem:[%s8007_s23 + $0x188] sm:$0xff] }
 0x1b3   : > { %v1607_v29 = vmul.f32 %v9283_v12, %v9247_v17  ;;  %v3181_v42 = vadd.f32 %v3110_v46, %v2933_v10  ;;  %v3182_v36 = vadd.f32 %v3112_v41, %v2934_v33  ;;  %v1853_v7 = vmul.f32 %v9296_v62, %v9230_v40 }
 0x1b4   : > { %v1854_v1 = vmul.f32 %v9296_v62, %v9240_v26  ;;  %v1729_v31 = vrot.slane %v1605_v38, 1  ;;  %v1730_v37 = vrot.slane %v1606_v6, 1  ;;  %v1855_v51 = vmul.f32 %v9296_v62, %v9247_v17 }
 0x1b5   : > { %v1732_v55 = vrot.slane %v1607_v29, 1  ;;  %v3220_v34 = vadd.f32 %v9436_v21, %v3181_v42  ;;  %v3221_v23 = vadd.f32 %v9436_v21, %v3182_v36  ;;  %v1977_v40 = vrot.slane %v1853_v7, 2 }
 0x1b6   : > { %v1978_v8 = vrot.slane %v1854_v1, 2  ;;  %v1731_v26 = vsel %vm599_vm1, %v1729_v31, %v1730_v37  ;;  %v1980_v11 = vrot.slane %v1855_v51, 2  ;;  %v2087_v17 = vmul.f32 %v9311_v61, %v9337_v9 }
 0x1b7   : > { %v1733_v32 = vsel %vm599_vm1, %v1730_v37, %v1732_v55  ;;  %v3255_v52 = vpack.c.bf16 %v3221_v23, %v3220_v34  ;;  %v1799_v13 = vadd.f32 %v1731_v26, %v1519_v27  ;;  %v2088_v50 = vmul.f32 %v9311_v61, %v9349_v14 }
 0x1b8   : > { %v1800_v59 = vadd.f32 %v1733_v32, %v1520_v54  ;;  %v1979_v18 = vsel %vm680_vm2, %v1977_v40, %v1978_v8  ;;  %v1981_v53 = vsel %vm680_vm2, %v1978_v8, %v1980_v11  ;;  %v2173_v16 = vmul.f32 %v9332_v20, %v9337_v9  ;;  %v9470_v54 = vld [vmem:[%s8007_s23 + $0x190] sm:$0x3] }
 0x1b9   : > { %v2174_v4 = vmul.f32 %v9332_v20, %v9349_v14  ;;  %3529 = vmatprep.mubr.bf16.mxu1 %v3255_v52  ;;  %v2047_v24 = vadd.f32 %v1979_v18, %v1799_v13  ;;  %v2175_v60 = vmul.f32 %v9332_v20, %v9376_v35  ;;  %v2421_v49 = vmul.f32 %v9354_v45, %v9337_v9 }
 0x1ba   : > { %v2048_v25 = vadd.f32 %v1981_v53, %v1800_v59  ;;  %3530 = vmatmul.mubr.bf16.gmra.mrb[36].mxu1 %v3239_v3  ;;  %v2297_v19 = vrot.slane %v2173_v16, 1  ;;  %v2422_v58 = vmul.f32 %v9354_v45, %v9349_v14  ;;  %v2423_v27 = vmul.f32 %v9354_v45, %v9376_v35 }
 0x1bb   : > { %v2298_v56 = vrot.slane %v2174_v4, 1  ;;  %v2119_v10 = vadd.f32 %v2087_v17, %v2047_v24  ;;  %v2300_v46 = vrot.slane %v2175_v60, 1  ;;  %v2545_v41 = vrot.slane %v2421_v49, 2 }
 0x1bc   : > { %v2120_v33 = vadd.f32 %v2088_v50, %v2048_v25  ;;  %v2546_v30 = vrot.slane %v2422_v58, 2  ;;  %v2548_v44 = vrot.slane %v2423_v27, 2  ;;  %v2655_v3 = vmul.f32 %v9368_v57, %v9453_v39 }
 0x1bd   : > { %v2299_v38 = vsel %vm599_vm1, %v2297_v19, %v2298_v56  ;;  %v2301_v6 = vsel %vm599_vm1, %v2298_v56, %v2300_v46  ;;  %v2656_v42 = vmul.f32 %v9368_v57, %v9463_v0  ;;  %v2741_v36 = vmul.f32 %v9385_v15, %v9453_v39 }
 0x1be   : > { %v2367_v29 = vadd.f32 %v2299_v38, %v2119_v10  ;;  %v2368_v7 = vadd.f32 %v2301_v6, %v2120_v33  ;;  %v2547_v1 = vsel %vm680_vm2, %v2545_v41, %v2546_v30  ;;  %v2549_v31 = vsel %vm680_vm2, %v2546_v30, %v2548_v44 }
 0x1bf   : > { %v2742_v37 = vmul.f32 %v9385_v15, %v9463_v0  ;;  %v2743_v51 = vmul.f32 %v9385_v15, %v9470_v54  ;;  %v2865_v34 = vrot.slane %v2741_v36, 1  ;;  %v2989_v23 = vmul.f32 %v9401_v5, %v9453_v39 }
 0x1c0   : > { %v2615_v55 = vadd.f32 %v2547_v1, %v2367_v29  ;;  %v2616_v40 = vadd.f32 %v2549_v31, %v2368_v7  ;;  %v2990_v26 = vmul.f32 %v9401_v5, %v9463_v0  ;;  %v2991_v32 = vmul.f32 %v9401_v5, %v9470_v54  ;;  %v1481_v1 = vld [vmem:[%s8007_s23 + $0x198] sm:$0xff] }
 0x1c1   : > { %v2866_v8 = vrot.slane %v2742_v37, 1  ;;  %v2868_v17 = vrot.slane %v2743_v51, 1  ;;  %v3113_v52 = vrot.slane %v2989_v23, 2  ;;  %v1521_v13 = vmul.f32 %v9272_v28, %v9337_v9 }
 0x1c2   : > { %v2687_v11 = vadd.f32 %v2655_v3, %v2615_v55  ;;  %v2688_v59 = vadd.f32 %v2656_v42, %v2616_v40  ;;  %v3114_v53 = vrot.slane %v2990_v26, 2  ;;  %v3116_v50 = vrot.slane %v2991_v32, 2 }
 0x1c3   : > { %v2867_v18 = vsel %vm599_vm1, %v2865_v34, %v2866_v8  ;;  %v2869_v16 = vsel %vm599_vm1, %v2866_v8, %v2868_v17  ;;  %v1522_v24 = vmul.f32 %v9272_v28, %v9349_v14  ;;  %v1608_v25 = vmul.f32 %v9283_v12, %v9337_v9 }
 0x1c4   : > { %v2935_v4 = vadd.f32 %v2867_v18, %v2687_v11  ;;  %v2936_v60 = vadd.f32 %v2869_v16, %v2688_v59  ;;  %v3115_v49 = vsel %vm680_vm2, %v3113_v52, %v3114_v53  ;;  %v3117_v19 = vsel %vm680_vm2, %v3114_v53, %v3116_v50  ;;  %v1483_v59 = vld [vmem:[%s8007_s23 + $0x1a8] sm:$0x3] }
 0x1c5   : > { %v1609_v56 = vmul.f32 %v9283_v12, %v9349_v14  ;;  %v1610_v27 = vmul.f32 %v9283_v12, %v9376_v35  ;;  %v1734_v10 = vrot.slane %v1608_v25, 1  ;;  %v1856_v33 = vmul.f32 %v9296_v62, %v9337_v9 }
 0x1c6   : > { %v3183_v58 = vadd.f32 %v3115_v49, %v2935_v4  ;;  %v3184_v28 = vadd.f32 %v3117_v19, %v2936_v60  ;;  %v1857_v41 = vmul.f32 %v9296_v62, %v9349_v14  ;;  %v1858_v38 = vmul.f32 %v9296_v62, %v9376_v35 }
 0x1c7   : > { %v1735_v46 = vrot.slane %v1609_v56, 1  ;;  %v1737_v44 = vrot.slane %v1610_v27, 1  ;;  %v1982_v3 = vrot.slane %v1856_v33, 2  ;;  %v2089_v12 = vmul.f32 %v9311_v61, %v9453_v39 }
 0x1c8   : > { %v3222_v30 = vadd.f32 %v9436_v21, %v3183_v58  ;;  %v3223_v6 = vadd.f32 %v9436_v21, %v3184_v28  ;;  %v1983_v29 = vrot.slane %v1857_v41, 2  ;;  %v1985_v42 = vrot.slane %v1858_v38, 2 }
 0x1c9   : > { %v1736_v9 = vsel %vm599_vm1, %v1734_v10, %v1735_v46  ;;  %v1738_v36 = vsel %vm599_vm1, %v1735_v46, %v1737_v44  ;;  %v2090_v62 = vmul.f32 %v9311_v61, %v9463_v0  ;;  %v2176_v35 = vmul.f32 %v9332_v20, %v9453_v39  ;;  %v1482_v61 = vld [vmem:[%s8007_s23 + $0x1a0] sm:$0xff] }
 0x1ca   : > { %v1801_v14 = vadd.f32 %v1736_v9, %v1521_v13  ;;  %v3256_v7 = vpack.c.bf16 %v3223_v6, %v3222_v30  ;;  %v1802_v31 = vadd.f32 %v1738_v36, %v1522_v24  ;;  %v1984_v37 = vsel %vm680_vm2, %v1982_v3, %v1983_v29 }
 0x1cb   : > { %v1986_v55 = vsel %vm680_vm2, %v1983_v29, %v1985_v42  ;;  %v2177_v34 = vmul.f32 %v9332_v20, %v9463_v0  ;;  %v2178_v23 = vmul.f32 %v9332_v20, %v9470_v54  ;;  %v2302_v40 = vrot.slane %v2176_v35, 1  ;;  %v7290_v35 = vld [vmem:[%s10603_s9 + $0x148] sm:$0xff]  }
 0x1cc   : > { %v2049_v51 = vadd.f32 %v1984_v37, %v1801_v14  ;;  %3537 = vmatprep.mubr.bf16.mxu1 %v3256_v7  ;;  %v2050_v8 = vadd.f32 %v1986_v55, %v1802_v31  ;;  %v2424_v26 = vmul.f32 %v9354_v45, %v9453_v39  ;;  %v2425_v32 = vmul.f32 %v9354_v45, %v9463_v0  ;;  %v7285_v14 = vld [vmem:[%s10603_s9 + $0x100] sm:$0xff]   ;;  %v7291_v55 = vld [vmem:[%s10603_s9 + $0x108] sm:$0xff]  }
 0x1cd   : > { %v2426_v11 = vmul.f32 %v9354_v45, %v9470_v54  ;;  %3538 = vmatmul.mubr.bf16.gmra.mrb[40].mxu1 %v3240_v2  ;;  %v2303_v52 = vrot.slane %v2177_v34, 1  ;;  %v2305_v20 = vrot.slane %v2178_v23, 1  ;;  %v2657_v13 = vmul.f32 %v9368_v57, %v1481_v1  ;;  %v7297_v31 = vld [vmem:[%s10603_s9 + $0x1c0] sm:$0xff]   ;;  %v7294_v34 = vld [vmem:[%s10603_s9 + $0x158] sm:$0xff]  }
 0x1ce   : > { %v2121_v17 = vadd.f32 %v2089_v12, %v2049_v51  ;;  %v2122_v18 = vadd.f32 %v2090_v62, %v2050_v8  ;;  %v2550_v53 = vrot.slane %v2424_v26, 2  ;;  %v2551_v50 = vrot.slane %v2425_v32, 2  ;;  %6816 = vmatprep.subr.bf16.mxu1 %v7297_v31  ;;  %v7292_v51 = vld [vmem:[%s10603_s9 + $0x150] sm:$0xff]   ;;  %v7295_v23 = vld [vmem:[%s10603_s9 + $0x118] sm:$0xff]   ;;  %v9615_v32 = vld [vmem:[%s10602_s8] ss:$0 sm:$0xff] }
 0x1cf   : > { %v2553_v39 = vrot.slane %v2426_v11, 2  ;;  %v2304_v16 = vsel %vm599_vm1, %v2302_v40, %v2303_v52  ;;  %v2306_v0 = vsel %vm599_vm1, %v2303_v52, %v2305_v20  ;;  %v2658_v45 = vmul.f32 %v9368_v57, %v1482_v61  ;;  %v7302_v40 = vld [vmem:[%s10603_s9 + $0x128] sm:$0xff]   ;;  %v7306_v8 = vld [vmem:[%s10603_s9 + $0x130] sm:$0xff]  }
 0x1d0   : > { %v2744_v54 = vmul.f32 %v9385_v15, %v1481_v1  ;;  %v2369_v43 = vadd.f32 %v2304_v16, %v2121_v17  ;;  %v2370_v22 = vadd.f32 %v2306_v0, %v2122_v18  ;;  %v2552_v2 = vsel %vm680_vm2, %v2550_v53, %v2551_v50 }
 0x1d1   : > { %v2554_v4 = vsel %vm680_vm2, %v2551_v50, %v2553_v39  ;;  %v2745_v24 = vmul.f32 %v9385_v15, %v1482_v61  ;;  %v2746_v25 = vmul.f32 %v9385_v15, %v1483_v59  ;;  %v2992_v49 = vmul.f32 %v9401_v5, %v1481_v1 }
 0x1d2   : > { %v2870_v60 = vrot.slane %v2744_v54, 1  ;;  %v2617_v19 = vadd.f32 %v2552_v2, %v2369_v43  ;;  %v2618_v56 = vadd.f32 %v2554_v4, %v2370_v22  ;;  %v2993_v58 = vmul.f32 %v9401_v5, %v1482_v61  ;;  %v7304_v61 = vld [vmem:[%s10603_s9 + $0x170] sm:$0xff]  }
 0x1d3   : > { %v2994_v57 = vmul.f32 %v9401_v5, %v1483_v59  ;;  %v2871_v27 = vrot.slane %v2745_v24, 1  ;;  %v2873_v10 = vrot.slane %v2746_v25, 1  ;;  %v3118_v33 = vrot.slane %v2992_v49, 2 }
 0x1d4   : > { %v2689_v28 = vadd.f32 %v2657_v13, %v2617_v19  ;;  %v2690_v46 = vadd.f32 %v2658_v45, %v2618_v56  ;;  %v3119_v41 = vrot.slane %v2993_v58, 2  ;;  %v7368_v30 = vmov 0.0|0.0  }
 0x1d5   : > { %v3121_v38 = vrot.slane %v2994_v57, 2  ;;  %4740 = vmatprep.mubr.bf16.mxu0 %v7368_v30  ;;  %v2872_v15 = vsel %vm599_vm1, %v2870_v60, %v2871_v27  ;;  %v2874_v44 = vsel %vm599_vm1, %v2871_v27, %v2873_v10  ;;  %v10610_v9 = vmov 0.0   ;;  %v7299_v57 = vld [vmem:[%s10603_s9 + $0x180] sm:$0xff]  }
 0x1d6   : > { %v2937_v3 = vadd.f32 %v2872_v15, %v2689_v28  ;;  %v2938_v12 = vadd.f32 %v2874_v44, %v2690_v46  ;;  %v3120_v6 = vsel %vm680_vm2, %v3118_v33, %v3119_v41  ;;  %v9558_v29 = vrot.slane %v10610_v9, 7  ;;  %v7301_v33 = vld [vmem:[%s10603_s9 + $0x1c8] sm:$0xff]  }
 0x1d7   : > { %v3122_v5 = vsel %vm680_vm2, %v3119_v41, %v3121_v38  ;;  %v9620_v50 = vrot.slane %v10610_v9, 1  ;;  %v7303_v41 = vld [vmem:[%s10603_s9 + $0x188] sm:$0xff]  }
 0x1d8   : > { %v3185_v42 = vadd.f32 %v3120_v6, %v2937_v3  ;;  %v3186_v36 = vadd.f32 %v3122_v5, %v2938_v12  ;;  %v9565_v62 = vpack.c.bf16 %v9558_v29, %v9558_v29  ;;  %v7305_v5 = vld [vmem:[%s10603_s9 + $0x1d0] sm:$0xff]  }
 0x1d9   : > { %v9628_v2 = vpack.c.bf16 %v9620_v50, %v9620_v50 }
 0x1da   : > { %v3224_v7 = vadd.f32 %v9436_v21, %v3185_v42  ;;  %v3225_v1 = vadd.f32 %v9436_v21, %v3186_v36  ;;  %4741 = vmatmul.mubr.bf16.vlgmr.msra.gmra.mrb[48].mxu0 %v9565_v62  ;;  %v7293_v21 = vld [vmem:[%s10603_s9 + $0x110] sm:$0xff]  }
 0x1db   : > { %6705 = vmatpush3.bf16.msra.mxu0 %v7285_v14 }
 0x1dc   : > { %v3257_v37 = vpack.c.bf16 %v3225_v1, %v3224_v7  ;;  %6706 = vmatprep.subr.bf16.mxu0 %v7290_v35 }
 0x1de   : > { %3545 = vmatprep.mubr.bf16.mxu1 %v3257_v37 }
 0x1df   : > { %3546 = vmatmul.mubr.bf16.gmra.mrb[44].mxu1 %v3241_v47  ;;  %6707 = vmatpush3.bf16.msra.mxu0 %v7291_v55  ;;  %v7300_v47 = vld [vmem:[%s10603_s9 + $0x168] sm:$0xff]  }
 0x1e0   : > { %6708 = vmatprep.subr.bf16.mxu0 %v7292_v51 }
 0x1e3   : > { %6709 = vmatpush3.bf16.msra.mxu0 %v7293_v21 }
 0x1e4   : > { %6710 = vmatprep.subr.bf16.mxu0 %v7294_v34 }
 0x1e7   : > { %6711 = vmatpush3.bf16.msra.mxu0 %v7295_v23 }
 0x1e8   : > { %6712 = vmatprep.subr.bf16.mxu0 %v7296_v48  ;;  %v7307_v48 = vld [vmem:[%s10603_s9 + $0x190] sm:$0xff]  }
 0x1eb   : > { %6713 = vmatpush3.bf16.msra.mxu0 %v7298_v63 }
 0x1ec   : > { %6714 = vmatprep.subr.bf16.mxu0 %v7300_v47 }
 0x1ef   : > { %6715 = vmatpush3.bf16.msra.mxu0 %v7302_v40 }
 0x1f0   : > { %6716 = vmatprep.subr.bf16.mxu0 %v7304_v61 }
 0x1f3   : > { %6717 = vmatpush3.bf16.msra.mxu0 %v7306_v8 }
 0x21e   : > { %v6384_v26 = vpop.f32.mrb[32].mxu0 }
 0x21f   : > { %v6385_v11 = vpop.f32.mrb[33].mxu0 }
 0x220   : > { %v6386_v17 = vadd.f32 %v6385_v11, %v6384_v26  ;;  %v6387_v52 = vpop.f32.mrb[34].mxu0 }
 0x221   : > { %v6388_v20 = vpop.f32.mrb[35].mxu0 }
 0x222   : > { %v3428_v13 = vadd.f32 %v6386_v17, %v9615_v32  ;;  %v6389_v59 = vadd.f32 %v6388_v20, %v6387_v52 }
 0x224   : > { %v3801_v18 = vrot.slane %v3428_v13, 7  ;;  %v3431_v53 = vadd.f32 %v6389_v59, %v9615_v32  ;;  %v3960_v39 = vrot.slane %v3428_v13, 1 }
 0x226   : > { %v3803_v16 = vrot.slane %v3431_v53, 7  ;;  %v3961_v0 = vrot.slane %v3431_v53, 1  ;;  %v6390_v45 = vpop.f32.mrb[36].mxu0  ;;  %v9622_v54 = vpack.c.bf16 %v3431_v53, %v3428_v13  ;;  %v3802_v22 = vsel %vm3794_vm3, %v9558_v29, %v3801_v18 }
 0x227   : > { %v6391_v43 = vpop.f32.mrb[37].mxu0 }
 0x228   : > { %v6392_v4 = vadd.f32 %v6391_v43, %v6390_v45  ;;  %v6393_v24 = vpop.f32.mrb[38].mxu0  ;;  %4748 = vmatprep.mubr.bf16.mxu0 %v9622_v54  ;;  %v3804_v25 = vsel %vm3794_vm3, %v3801_v18, %v3803_v16  ;;  %v3962_v60 = vsel %vm599_vm1, %v3960_v39, %v3961_v0  ;;  %v3964_v49 = vsel %vm599_vm1, %v3961_v0, %v9620_v50 }
 0x229   : > { %v6394_v19 = vpop.f32.mrb[39].mxu0  ;;  %v3908_v56 = vpack.c.bf16 %v3804_v25, %v3802_v22  ;;  %v9635_v58 = vpack.c.bf16 %v3964_v49, %v3962_v60 }
 0x22a   : > { %v3436_v27 = vadd.f32 %v6392_v4, %v9615_v32  ;;  %v6395_v10 = vadd.f32 %v6394_v19, %v6393_v24 }
 0x22b   : > { %4749 = vmatmul.mubr.bf16.gmra.mrb[52].mxu0 %v3908_v56  ;;  %4901 = vmatprep.mubr.bf16.mxu1 %v3908_v56 }
 0x22c   : > { %v3806_v28 = vrot.slane %v3436_v27, 7  ;;  %v3439_v46 = vadd.f32 %v6395_v10, %v9615_v32  ;;  %4902 = vmatmul.mubr.bf16.vlgmr.msra.gmra.mrb[48].mxu1 %v9628_v2  ;;  %v3965_v38 = vrot.slane %v3436_v27, 1 }
 0x22d   : > { %6817 = vmatpush3.bf16.msra.mxu1 %v7299_v57 }
 0x22e   : > { %v3808_v15 = vrot.slane %v3439_v46, 7  ;;  %v3966_v44 = vrot.slane %v3439_v46, 1  ;;  %v6396_v3 = vpop.f32.mrb[40].mxu0  ;;  %v9649_v12 = vpack.c.bf16 %v3439_v46, %v3436_v27  ;;  %v6408_v6 = vpop.f32.mrb[0].mxu1  ;;  %6818 = vmatprep.subr.bf16.mxu1 %v7301_v33  ;;  %v3807_v36 = vsel %vm3794_vm3, %v9558_v29, %v3806_v28 }
 0x22f   : > { %v6397_v42 = vpop.f32.mrb[41].mxu0  ;;  %v6409_v14 = vpop.f32.mrb[1].mxu1 }
 0x230   : > { %v6398_v35 = vadd.f32 %v6397_v42, %v6396_v3  ;;  %v6399_v7 = vpop.f32.mrb[42].mxu0  ;;  %4756 = vmatprep.mubr.bf16.mxu0 %v9649_v12  ;;  %v3809_v1 = vsel %vm3794_vm3, %v3806_v28, %v3808_v15  ;;  %v6410_v31 = vadd.f32 %v6409_v14, %v6408_v6  ;;  %v6411_v37 = vpop.f32.mrb[2].mxu1  ;;  %v3967_v55 = vsel %vm599_vm1, %v3965_v38, %v3966_v44 }
 0x231   : > { %v6400_v51 = vpop.f32.mrb[43].mxu0  ;;  %v9659_v21 = vpack.c.bf16 %v3809_v1, %v3807_v36  ;;  %v6412_v34 = vpop.f32.mrb[3].mxu1  ;;  %v3969_v23 = vsel %vm599_vm1, %v3966_v44, %v9620_v50  ;;  %6819 = vmatpush3.bf16.msra.mxu1 %v7303_v41 }
 0x232   : > { %v3444_v63 = vadd.f32 %v6398_v35, %v9615_v32  ;;  %v6401_v47 = vadd.f32 %v6400_v51, %v6399_v7  ;;  %v3460_v40 = vadd.f32 %v6410_v31, %v9615_v32  ;;  %v6413_v61 = vadd.f32 %v6412_v34, %v6411_v37  ;;  %6820 = vmatprep.subr.bf16.mxu1 %v7305_v5 }
 0x233   : > { %4757 = vmatmul.mubr.bf16.gmra.mrb[56].mxu0 %v9659_v21  ;;  %4909 = vmatprep.mubr.bf16.mxu1 %v9659_v21  ;;  %v9670_v8 = vpack.c.bf16 %v3969_v23, %v3967_v55 }
 0x234   : > { %v3811_v26 = vrot.slane %v3444_v63, 7  ;;  %v3447_v11 = vadd.f32 %v6401_v47, %v9615_v32  ;;  %4910 = vmatmul.mubr.bf16.gmra.mrb[52].mxu1 %v9635_v58  ;;  %v3821_v17 = vrot.slane %v3460_v40, 7  ;;  %v3970_v52 = vrot.slane %v3444_v63, 1  ;;  %v7308_v47 = vld [vmem:[%s10603_s9 + $0x178] sm:$0xff]  }
 0x235   : > { %v3980_v20 = vrot.slane %v3460_v40, 1  ;;  %v3463_v13 = vadd.f32 %v6413_v61, %v9615_v32  ;;  %6821 = vmatpush3.bf16.msra.mxu1 %v7307_v48  ;;  %6718 = vmatprep.subr.bf16.mxu0 %v7308_v47 }
 0x236   : > { %v3813_v59 = vrot.slane %v3447_v11, 7  ;;  %v3971_v18 = vrot.slane %v3447_v11, 1  ;;  %v6402_v53 = vpop.f32.mrb[44].mxu0  ;;  %v6414_v39 = vpop.f32.mrb[4].mxu1  ;;  %v9675_v16 = vpack.c.bf16 %v3447_v11, %v3444_v63  ;;  %v3812_v0 = vsel %vm3794_vm3, %v9558_v29, %v3811_v26 }
 0x237   : > { %v6403_v45 = vpop.f32.mrb[45].mxu0  ;;  %v3823_v43 = vrot.slane %v3463_v13, 7  ;;  %v3981_v22 = vrot.slane %v3463_v13, 1  ;;  %v6415_v4 = vpop.f32.mrb[5].mxu1  ;;  %v9679_v24 = vpack.c.bf16 %v3463_v13, %v3460_v40  ;;  %v3822_v25 = vsel %vm3794_vm3, %v9558_v29, %v3821_v17  ;;  %v7309_v40 = vld [vmem:[%s10603_s9 + $0x1d8] sm:$0xff]  }
 0x238   : > { %v6404_v60 = vadd.f32 %v6403_v45, %v6402_v53  ;;  %v6405_v49 = vpop.f32.mrb[46].mxu0  ;;  %4764 = vmatprep.mubr.bf16.mxu0 %v9675_v16  ;;  %v6416_v19 = vadd.f32 %v6415_v4, %v6414_v39  ;;  %v6417_v56 = vpop.f32.mrb[6].mxu1  ;;  %v3814_v57 = vsel %vm3794_vm3, %v3811_v26, %v3813_v59  ;;  %v3972_v27 = vsel %vm599_vm1, %v3970_v52, %v3971_v18  ;;  %v7310_v4 = vld [vmem:[%s10603_s9 + $0x138] sm:$0xff]  }
 0x239   : > { %v6406_v10 = vpop.f32.mrb[47].mxu0  ;;  %v6418_v33 = vpop.f32.mrb[7].mxu1  ;;  %v9686_v28 = vpack.c.bf16 %v3814_v57, %v3812_v0  ;;  %v3974_v46 = vsel %vm599_vm1, %v3971_v18, %v9620_v50  ;;  %v3824_v41 = vsel %vm3794_vm3, %v3821_v17, %v3823_v43  ;;  %v3982_v38 = vsel %vm599_vm1, %v3980_v20, %v3981_v22  ;;  %6822 = vmatprep.subr.bf16.mxu1 %v7309_v40 }
 0x23a   : > { %v3452_v15 = vadd.f32 %v6404_v60, %v9615_v32  ;;  %v6407_v44 = vadd.f32 %v6406_v10, %v6405_v49  ;;  %v3468_v3 = vadd.f32 %v6416_v19, %v9615_v32  ;;  %v6419_v6 = vadd.f32 %v6418_v33, %v6417_v56  ;;  %v7311_v56 = vld [vmem:[%s10603_s9 + $0x198] sm:$0xff]   ;;  %6719 = vmatpush3.bf16.msra.mxu0 %v7310_v4 }
 0x23b   : > { %4765 = vmatmul.mubr.bf16.gmra.mrb[60].mxu0 %v9686_v28  ;;  %4917 = vmatprep.mubr.bf16.mxu1 %v9686_v28  ;;  %v9696_v5 = vpack.c.bf16 %v3974_v46, %v3972_v27  ;;  %v9698_v42 = vpack.c.bf16 %v3824_v41, %v3822_v25  ;;  %v3984_v36 = vsel %vm599_vm1, %v3981_v22, %v9620_v50  ;;  %v7312_v27 = vld [vmem:[%s10603_s9 + $0x1e0] sm:$0xff]   ;;  %v7319_v4 = vld [vmem:[%s10603_s9 + $0x1f8] sm:$0xff]  }
 0x23c   : > { %v3816_v14 = vrot.slane %v3452_v15, 7  ;;  %v3455_v35 = vadd.f32 %v6407_v44, %v9615_v32  ;;  %v3826_v7 = vrot.slane %v3468_v3, 7  ;;  %4918 = vmatmul.mubr.bf16.gmra.mrb[56].mxu1 %v9670_v8  ;;  %v3975_v1 = vrot.slane %v3452_v15, 1  ;;  %v9756_v41 = vld [vmem:[%s10603_s9 + $0x200] sm:$0xff]  }
 0x23d   : > { %v3985_v31 = vrot.slane %v3468_v3, 1  ;;  %v3471_v37 = vadd.f32 %v6419_v6, %v9615_v32  ;;  %v9705_v55 = vpack.c.bf16 %v3984_v36, %v3982_v38  ;;  %6823 = vmatpush3.bf16.msra.mxu1 %v7311_v56  ;;  %v7313_v36 = vld [vmem:[%s10603_s9 + $0x1a0] sm:$0xff]   ;;  %7035 = vmatprep.subr.bf16.mxu0 %v9756_v41 }
 0x23e   : > { %v3818_v51 = vrot.slane %v3455_v35, 7  ;;  %v3976_v34 = vrot.slane %v3455_v35, 1  ;;  %v9707_v23 = vpack.c.bf16 %v3455_v35, %v3452_v15  ;;  %v3817_v48 = vsel %vm3794_vm3, %v9558_v29, %v3816_v14  ;;  %v6420_v63 = vpop.f32.mrb[8].mxu1  ;;  %6824 = vmatprep.subr.bf16.mxu1 %v7312_v27  ;;  %v7314_v35 = vld [vmem:[%s10603_s9 + $0x1e8] sm:$0xff]  }
 0x23f   : > { %v3828_v61 = vrot.slane %v3471_v37, 7  ;;  %v3986_v26 = vrot.slane %v3471_v37, 1  ;;  %v6421_v11 = vpop.f32.mrb[9].mxu1  ;;  %v9717_v17 = vpack.c.bf16 %v3471_v37, %v3468_v3  ;;  %v3827_v52 = vsel %vm3794_vm3, %v9558_v29, %v3826_v7 }
 0x240   : > { %4772 = vmatprep.mubr.bf16.mxu0 %v9707_v23  ;;  %v3819_v20 = vsel %vm3794_vm3, %v3816_v14, %v3818_v51  ;;  %v6422_v13 = vadd.f32 %v6421_v11, %v6420_v63  ;;  %v6423_v59 = vpop.f32.mrb[10].mxu1  ;;  %v3977_v18 = vsel %vm599_vm1, %v3975_v1, %v3976_v34  ;;  %v3979_v53 = vsel %vm599_vm1, %v3976_v34, %v9620_v50 }
 0x241   : > { %v9726_v39 = vpack.c.bf16 %v3819_v20, %v3817_v48  ;;  %v6424_v0 = vpop.f32.mrb[11].mxu1  ;;  %v9728_v45 = vpack.c.bf16 %v3979_v53, %v3977_v18  ;;  %v3829_v43 = vsel %vm3794_vm3, %v3826_v7, %v3828_v61  ;;  %v3987_v22 = vsel %vm599_vm1, %v3985_v31, %v3986_v26  ;;  %6825 = vmatpush3.bf16.msra.mxu1 %v7313_v36  ;;  %v7315_v61 = vld [vmem:[%s10603_s9 + $0x1a8] sm:$0xff]  }
 0x242   : > { %v3476_v25 = vadd.f32 %v6422_v13, %v9615_v32  ;;  %v6425_v60 = vadd.f32 %v6424_v0, %v6423_v59  ;;  %v9736_v49 = vpack.c.bf16 %v3829_v43, %v3827_v52  ;;  %v3989_v19 = vsel %vm599_vm1, %v3986_v26, %v9620_v50  ;;  %6826 = vmatprep.subr.bf16.mxu1 %v7314_v35  ;;  %v7317_v26 = vld [vmem:[%s10603_s9 + $0x1f0] sm:$0xff]  }
 0x243   : > { %4773 = vmatmul.mubr.bf16.gmra.mrb[64].mxu0 %v9726_v39  ;;  %4925 = vmatprep.mubr.bf16.mxu1 %v9726_v39  ;;  %v9745_v57 = vpack.c.bf16 %v3989_v19, %v3987_v22  ;;  %v7318_v43 = vld [vmem:[%s10603_s9 + $0x1b0] sm:$0xff]  }
 0x244   : > { %4780 = vmatprep.mubr.bf16.mxu0 %v9679_v24  ;;  %4926 = vmatmul.mubr.bf16.gmra.mrb[60].mxu1 %v9696_v5  ;;  %v3831_v10 = vrot.slane %v3476_v25, 7  ;;  %v3990_v33 = vrot.slane %v3476_v25, 1  ;;  %v3479_v46 = vadd.f32 %v6425_v60, %v9615_v32 }
 0x245   : > { %4933 = vmatprep.mubr.bf16.mxu1 %v9698_v42  ;;  %6827 = vmatpush3.bf16.msra.mxu1 %v7315_v61 }
 0x246   : > { %v3833_v38 = vrot.slane %v3479_v46, 7  ;;  %v3991_v15 = vrot.slane %v3479_v46, 1  ;;  %v6426_v44 = vpop.f32.mrb[12].mxu1  ;;  %v9759_v3 = vpack.c.bf16 %v3479_v46, %v3476_v25  ;;  %v3832_v6 = vsel %vm3794_vm3, %v9558_v29, %v3831_v10  ;;  %6828 = vmatprep.subr.bf16.mxu1 %v7317_v26 }
 0x247   : > { %v6427_v14 = vpop.f32.mrb[13].mxu1 }
 0x248   : > { %v6428_v7 = vadd.f32 %v6427_v14, %v6426_v44  ;;  %v6429_v1 = vpop.f32.mrb[14].mxu1  ;;  %v3834_v31 = vsel %vm3794_vm3, %v3831_v10, %v3833_v38  ;;  %v3992_v37 = vsel %vm599_vm1, %v3990_v33, %v3991_v15  ;;  %v3994_v51 = vsel %vm599_vm1, %v3991_v15, %v9620_v50  ;;  %v7320_v44 = vld [vmem:[%s10603_s9 + $0x1b8] sm:$0xff]  }
 0x249   : > { %v6430_v34 = vpop.f32.mrb[15].mxu1  ;;  %v9774_v48 = vpack.c.bf16 %v3834_v31, %v3832_v6  ;;  %v9776_v63 = vpack.c.bf16 %v3994_v51, %v3992_v37  ;;  %6829 = vmatpush3.bf16.msra.mxu1 %v7318_v43 }
 0x24a   : > { %v3484_v47 = vadd.f32 %v6428_v7, %v9615_v32  ;;  %v6431_v40 = vadd.f32 %v6430_v34, %v6429_v1  ;;  %6830 = vmatprep.subr.bf16.mxu1 %v7319_v4 }
 0x24b   : > { %4781 = vmatmul.mubr.bf16.gmra.mrb[68].mxu0 %v9698_v42 }
 0x24c   : > { %v3836_v11 = vrot.slane %v3484_v47, 7  ;;  %v3995_v52 = vrot.slane %v3484_v47, 1  ;;  %v3487_v20 = vadd.f32 %v6431_v40, %v9615_v32  ;;  %4788 = vmatprep.mubr.bf16.mxu0 %v9717_v17  ;;  %4934 = vmatmul.mubr.bf16.gmra.mrb[64].mxu1 %v9728_v45 }
 0x24d   : > { %4941 = vmatprep.mubr.bf16.mxu1 %v9736_v49  ;;  %6831 = vmatpush3.bf16.msra.mxu1 %v7320_v44 }
 0x24e   : > { %v3838_v13 = vrot.slane %v3487_v20, 7  ;;  %v3996_v59 = vrot.slane %v3487_v20, 1  ;;  %v6432_v18 = vpop.f32.mrb[16].mxu1  ;;  %v9790_v53 = vpack.c.bf16 %v3487_v20, %v3484_v47  ;;  %v3837_v0 = vsel %vm3794_vm3, %v9558_v29, %v3836_v11 }
 0x24f   : > { %v6433_v22 = vpop.f32.mrb[17].mxu1 }
 0x250   : > { %v6434_v25 = vadd.f32 %v6433_v22, %v6432_v18  ;;  %v6435_v60 = vpop.f32.mrb[18].mxu1  ;;  %v3839_v19 = vsel %vm3794_vm3, %v3836_v11, %v3838_v13  ;;  %v3997_v56 = vsel %vm599_vm1, %v3995_v52, %v3996_v59  ;;  %v3999_v27 = vsel %vm599_vm1, %v3996_v59, %v9620_v50 }
 0x251   : > { %v6436_v10 = vpop.f32.mrb[19].mxu1  ;;  %v9804_v33 = vpack.c.bf16 %v3839_v19, %v3837_v0  ;;  %v9806_v46 = vpack.c.bf16 %v3999_v27, %v3997_v56 }
 0x252   : > { %v3492_v38 = vadd.f32 %v6434_v25, %v9615_v32  ;;  %v6437_v15 = vadd.f32 %v6436_v10, %v6435_v60 }
 0x253   : > { %4789 = vmatmul.mubr.bf16.gmra.mrb[72].mxu0 %v9736_v49 }
 0x254   : > { %4796 = vmatprep.mubr.bf16.mxu0 %v9759_v3  ;;  %4942 = vmatmul.mubr.bf16.gmra.mrb[68].mxu1 %v9705_v55  ;;  %v3841_v6 = vrot.slane %v3492_v38, 7  ;;  %v4000_v36 = vrot.slane %v3492_v38, 1  ;;  %v3495_v14 = vadd.f32 %v6437_v15, %v9615_v32 }
 0x255   : > { %4949 = vmatprep.mubr.bf16.mxu1 %v9774_v48 }
 0x256   : > { %v3843_v35 = vrot.slane %v3495_v14, 7  ;;  %v4001_v7 = vrot.slane %v3495_v14, 1  ;;  %v6438_v1 = vpop.f32.mrb[20].mxu1  ;;  %v9817_v31 = vpack.c.bf16 %v3495_v14, %v3492_v38  ;;  %v3842_v37 = vsel %vm3794_vm3, %v9558_v29, %v3841_v6 }
 0x257   : > { %v6439_v51 = vpop.f32.mrb[21].mxu1 }
 0x258   : > { %v6440_v34 = vadd.f32 %v6439_v51, %v6438_v1  ;;  %v6441_v47 = vpop.f32.mrb[22].mxu1  ;;  %v3844_v40 = vsel %vm3794_vm3, %v3841_v6, %v3843_v35  ;;  %v4002_v61 = vsel %vm599_vm1, %v4000_v36, %v4001_v7  ;;  %v4004_v26 = vsel %vm599_vm1, %v4001_v7, %v9620_v50 }
 0x259   : > { %v6442_v11 = vpop.f32.mrb[23].mxu1  ;;  %v9825_v52 = vpack.c.bf16 %v3844_v40, %v3842_v37  ;;  %v9827_v20 = vpack.c.bf16 %v4004_v26, %v4002_v61 }
 0x25a   : > { %v3500_v13 = vadd.f32 %v6440_v34, %v9615_v32  ;;  %v6443_v59 = vadd.f32 %v6442_v11, %v6441_v47 }
 0x25b   : > { %4797 = vmatmul.mubr.bf16.gmra.mrb[76].mxu0 %v9774_v48 }
 0x25c   : > { %v3846_v18 = vrot.slane %v3500_v13, 7  ;;  %v4005_v0 = vrot.slane %v3500_v13, 1  ;;  %v3503_v43 = vadd.f32 %v6443_v59, %v9615_v32  ;;  %4804 = vmatprep.mubr.bf16.mxu0 %v9790_v53  ;;  %4950 = vmatmul.mubr.bf16.gmra.mrb[72].mxu1 %v9745_v57 }
 0x25d   : > { %4957 = vmatprep.mubr.bf16.mxu1 %v9804_v33 }
 0x25e   : > { %v3848_v22 = vrot.slane %v3503_v43, 7  ;;  %v4006_v4 = vrot.slane %v3503_v43, 1  ;;  %v6444_v25 = vpop.f32.mrb[24].mxu1  ;;  %v9835_v60 = vpack.c.bf16 %v3503_v43, %v3500_v13  ;;  %v3847_v19 = vsel %vm3794_vm3, %v9558_v29, %v3846_v18 }
 0x25f   : > { %v6445_v56 = vpop.f32.mrb[25].mxu1 }
 0x260   : > { %v6446_v27 = vadd.f32 %v6445_v56, %v6444_v25  ;;  %v6447_v10 = vpop.f32.mrb[26].mxu1  ;;  %v3849_v38 = vsel %vm3794_vm3, %v3846_v18, %v3848_v22  ;;  %v4007_v15 = vsel %vm599_vm1, %v4005_v0, %v4006_v4  ;;  %v4009_v44 = vsel %vm599_vm1, %v4006_v4, %v9620_v50 }
 0x261   : > { %v6448_v6 = vpop.f32.mrb[27].mxu1  ;;  %v9843_v36 = vpack.c.bf16 %v3849_v38, %v3847_v19  ;;  %v9845_v14 = vpack.c.bf16 %v4009_v44, %v4007_v15 }
 0x262   : > { %v3508_v35 = vadd.f32 %v6446_v27, %v9615_v32  ;;  %v6449_v7 = vadd.f32 %v6448_v6, %v6447_v10 }
 0x263   : > { %4805 = vmatmul.mubr.bf16.gmra.mrb[80].mxu0 %v9804_v33 }
 0x264   : > { %4812 = vmatprep.mubr.bf16.mxu0 %v9817_v31  ;;  %4958 = vmatmul.mubr.bf16.gmra.mrb[76].mxu1 %v9776_v63  ;;  %v3851_v1 = vrot.slane %v3508_v35, 7  ;;  %v4010_v37 = vrot.slane %v3508_v35, 1  ;;  %v3511_v51 = vadd.f32 %v6449_v7, %v9615_v32 }
 0x265   : > { %4965 = vmatprep.mubr.bf16.mxu1 %v9825_v52 }
 0x266   : > { %v3853_v34 = vrot.slane %v3511_v51, 7  ;;  %v4011_v47 = vrot.slane %v3511_v51, 1  ;;  %v9853_v40 = vpack.c.bf16 %v3511_v51, %v3508_v35  ;;  %v3852_v61 = vsel %vm3794_vm3, %v9558_v29, %v3851_v1 }
 0x268   : > { %v3854_v26 = vsel %vm3794_vm3, %v3851_v1, %v3853_v34  ;;  %v4012_v11 = vsel %vm599_vm1, %v4010_v37, %v4011_v47  ;;  %v4014_v13 = vsel %vm599_vm1, %v4011_v47, %v9620_v50 }
 0x269   : > { %v9861_v59 = vpack.c.bf16 %v3854_v26, %v3852_v61  ;;  %v9863_v18 = vpack.c.bf16 %v4014_v13, %v4012_v11 }
 0x26a   : > { %v6450_v0 = vpop.f32.mrb[28].mxu1 }
 0x26b   : > { %4813 = vmatmul.mubr.bf16.gmra.mrb[84].mxu0 %v9825_v52  ;;  %v6451_v43 = vpop.f32.mrb[29].mxu1 }
 0x26c   : > { %4820 = vmatprep.mubr.bf16.mxu0 %v9835_v60  ;;  %4966 = vmatmul.mubr.bf16.gmra.mrb[80].mxu1 %v9806_v46  ;;  %v6452_v22 = vadd.f32 %v6451_v43, %v6450_v0  ;;  %v6453_v4 = vpop.f32.mrb[30].mxu1 }
 0x26d   : > { %4973 = vmatprep.mubr.bf16.mxu1 %v9843_v36  ;;  %v6454_v25 = vpop.f32.mrb[31].mxu1 }
 0x26e   : > { %v3516_v19 = vadd.f32 %v6452_v22, %v9615_v32  ;;  %v6455_v56 = vadd.f32 %v6454_v25, %v6453_v4 }
 0x270   : > { %v3856_v27 = vrot.slane %v3516_v19, 7  ;;  %v4015_v10 = vrot.slane %v3516_v19, 1  ;;  %v3519_v38 = vadd.f32 %v6455_v56, %v9615_v32 }
 0x272   : > { %v3858_v15 = vrot.slane %v3519_v38, 7  ;;  %v4016_v44 = vrot.slane %v3519_v38, 1  ;;  %v9874_v6 = vpack.c.bf16 %v3519_v38, %v3516_v19  ;;  %v3857_v35 = vsel %vm3794_vm3, %v9558_v29, %v3856_v27 }
 0x273   : > { %4821 = vmatmul.mubr.bf16.gmra.mrb[88].mxu0 %v9843_v36 }
 0x274   : > { %4828 = vmatprep.mubr.bf16.mxu0 %v9853_v40  ;;  %4974 = vmatmul.mubr.bf16.gmra.mrb[84].mxu1 %v9827_v20  ;;  %v3859_v7 = vsel %vm3794_vm3, %v3856_v27, %v3858_v15  ;;  %v4017_v1 = vsel %vm599_vm1, %v4015_v10, %v4016_v44  ;;  %v4019_v37 = vsel %vm599_vm1, %v4016_v44, %v9620_v50 }
 0x275   : > { %4981 = vmatprep.mubr.bf16.mxu1 %v9861_v59  ;;  %v9883_v51 = vpack.c.bf16 %v3859_v7, %v3857_v35  ;;  %v9885_v34 = vpack.c.bf16 %v4019_v37, %v4017_v1 }
 0x27b   : > { %4829 = vmatmul.mubr.bf16.gmra.mrb[92].mxu0 %v9861_v59  ;;  %v6456_v47 = vpop.f32.mrb[32].mxu1 }
 0x27c   : > { %4836 = vmatprep.mubr.bf16.mxu0 %v9874_v6  ;;  %4982 = vmatmul.mubr.bf16.gmra.mrb[88].mxu1 %v9845_v14  ;;  %v6457_v61 = vpop.f32.mrb[33].mxu1 }
 0x27d   : > { %4989 = vmatprep.mubr.bf16.mxu1 %v9883_v51  ;;  %v6458_v26 = vadd.f32 %v6457_v61, %v6456_v47  ;;  %v6459_v11 = vpop.f32.mrb[34].mxu1 }
 0x27e   : > { %v6460_v13 = vpop.f32.mrb[35].mxu1 }
 0x27f   : > { %v3524_v0 = vadd.f32 %v6458_v26, %v9615_v32  ;;  %v6461_v43 = vadd.f32 %v6460_v13, %v6459_v11 }
 0x281   : > { %v3861_v22 = vrot.slane %v3524_v0, 7  ;;  %v4020_v4 = vrot.slane %v3524_v0, 1  ;;  %v3527_v25 = vadd.f32 %v6461_v43, %v9615_v32 }
 0x283   : > { %4837 = vmatmul.mubr.bf16.gmra.mrb[96].mxu0 %v9883_v51  ;;  %v3863_v19 = vrot.slane %v3527_v25, 7  ;;  %v4021_v56 = vrot.slane %v3527_v25, 1  ;;  %v9895_v27 = vpack.c.bf16 %v3527_v25, %v3524_v0  ;;  %v3862_v10 = vsel %vm3794_vm3, %v9558_v29, %v3861_v22 }
 0x284   : > { %4990 = vmatmul.mubr.bf16.gmra.mrb[92].mxu1 %v9863_v18 }
 0x285   : > { %4844 = vmatprep.mubr.bf16.mxu0 %v9895_v27  ;;  %v3864_v38 = vsel %vm3794_vm3, %v3861_v22, %v3863_v19  ;;  %v4022_v15 = vsel %vm599_vm1, %v4020_v4, %v4021_v56  ;;  %v4024_v44 = vsel %vm599_vm1, %v4021_v56, %v9620_v50 }
 0x286   : > { %v9904_v35 = vpack.c.bf16 %v3864_v38, %v3862_v10  ;;  %v9906_v7 = vpack.c.bf16 %v4024_v44, %v4022_v15 }
 0x288   : > { %4997 = vmatprep.mubr.bf16.mxu1 %v9904_v35 }
 0x28b   : > { %4845 = vmatmul.mubr.bf16.gmra.mrb[100].mxu0 %v9904_v35 }
 0x28c   : > { %4998 = vmatmul.mubr.bf16.gmra.mrb[96].mxu1 %v9885_v34 }
 0x28d   : > { %v6462_v1 = vpop.f32.mrb[36].mxu1 }
 0x28e   : > { %v6463_v37 = vpop.f32.mrb[37].mxu1 }
 0x28f   : > { %v6464_v47 = vadd.f32 %v6463_v37, %v6462_v1  ;;  %v6465_v61 = vpop.f32.mrb[38].mxu1 }
 0x290   : > { %v6466_v26 = vpop.f32.mrb[39].mxu1 }
 0x291   : > { %v3532_v11 = vadd.f32 %v6464_v47, %v9615_v32  ;;  %v6467_v13 = vadd.f32 %v6466_v26, %v6465_v61 }
 0x293   : > { %v3866_v0 = vrot.slane %v3532_v11, 7  ;;  %v4025_v43 = vrot.slane %v3532_v11, 1  ;;  %v3535_v22 = vadd.f32 %v6467_v13, %v9615_v32 }
 0x295   : > { %v3868_v4 = vrot.slane %v3535_v22, 7  ;;  %v4026_v25 = vrot.slane %v3535_v22, 1  ;;  %v9913_v19 = vpack.c.bf16 %v3535_v22, %v3532_v11  ;;  %v3867_v56 = vsel %vm3794_vm3, %v9558_v29, %v3866_v0 }
 0x297   : > { %4852 = vmatprep.mubr.bf16.mxu0 %v9913_v19  ;;  %v3869_v10 = vsel %vm3794_vm3, %v3866_v0, %v3868_v4  ;;  %v4027_v38 = vsel %vm599_vm1, %v4025_v43, %v4026_v25  ;;  %v4029_v15 = vsel %vm599_vm1, %v4026_v25, %v9620_v50 }
 0x298   : > { %v9922_v44 = vpack.c.bf16 %v3869_v10, %v3867_v56  ;;  %v9924_v1 = vpack.c.bf16 %v4029_v15, %v4027_v38 }
 0x29a   : > { %5005 = vmatprep.mubr.bf16.mxu1 %v9922_v44  ;;  %4853 = vmatmul.mubr.bf16.gmra.mrb[104].mxu0 %v9922_v44 }
 0x29b   : > { %5006 = vmatmul.mubr.bf16.gmra.mrb[100].mxu1 %v9906_v7 }
 0x2a0   : > { %v6468_v37 = vpop.f32.mrb[40].mxu1 }
 0x2a1   : > { %v6469_v47 = vpop.f32.mrb[41].mxu1 }
 0x2a2   : > { %v6470_v61 = vadd.f32 %v6469_v47, %v6468_v37  ;;  %v6471_v26 = vpop.f32.mrb[42].mxu1 }
 0x2a3   : > { %v6472_v11 = vpop.f32.mrb[43].mxu1 }
 0x2a4   : > { %v3540_v13 = vadd.f32 %v6470_v61, %v9615_v32  ;;  %v6473_v0 = vadd.f32 %v6472_v11, %v6471_v26 }
 0x2a6   : > { %v3871_v43 = vrot.slane %v3540_v13, 7  ;;  %v4030_v22 = vrot.slane %v3540_v13, 1  ;;  %v3543_v4 = vadd.f32 %v6473_v0, %v9615_v32 }
 0x2a8   : > { %v3873_v25 = vrot.slane %v3543_v4, 7  ;;  %v4031_v56 = vrot.slane %v3543_v4, 1  ;;  %v9931_v10 = vpack.c.bf16 %v3543_v4, %v3540_v13  ;;  %v3872_v38 = vsel %vm3794_vm3, %v9558_v29, %v3871_v43 }
 0x2aa   : > { %4860 = vmatprep.mubr.bf16.mxu0 %v9931_v10  ;;  %v3874_v15 = vsel %vm3794_vm3, %v3871_v43, %v3873_v25  ;;  %v4032_v37 = vsel %vm599_vm1, %v4030_v22, %v4031_v56  ;;  %v4034_v47 = vsel %vm599_vm1, %v4031_v56, %v9620_v50 }
 0x2ab   : > { %v9940_v61 = vpack.c.bf16 %v3874_v15, %v3872_v38  ;;  %v9942_v26 = vpack.c.bf16 %v4034_v47, %v4032_v37  ;;  %v7321_v38 = vld [vmem:[%s10603_s9 + $0x208] sm:$0xff]  }
 0x2ad   : > { %5013 = vmatprep.mubr.bf16.mxu1 %v9940_v61  ;;  %4861 = vmatmul.mubr.bf16.gmra.mrb[108].mxu0 %v9940_v61  ;;  %v6496_v11 = vpop.f32.mrb[48].mxu0 }
 0x2ae   : > { %5014 = vmatmul.mubr.bf16.gmra.mrb[104].mxu1 %v9924_v1  ;;  %5062 = vmatprep.mubr.bf16.mxu0 %v9635_v58  ;;  %v6497_v13 = vpop.f32.mrb[49].mxu0 }
 0x2af   : > { %v9948_v0 = vadd.f32 %v6497_v13, %v6496_v11  ;;  %v6499_v43 = vpop.f32.mrb[50].mxu0  ;;  %v7322_v11 = vld [vmem:[%s10603_s9 + $0x210] sm:$0xff]  }
 0x2b0   : > { %v6500_v22 = vpop.f32.mrb[51].mxu0 }
 0x2b1   : > { %v9950_v25 = vadd.f32 %v6500_v22, %v6499_v43 }
 0x2b2   : > { %v6474_v4 = vpop.f32.mrb[44].mxu1 }
 0x2b3   : > { %v6475_v56 = vpop.f32.mrb[45].mxu1 }
 0x2b4   : > { %v6476_v15 = vadd.f32 %v6475_v56, %v6474_v4  ;;  %v6477_v37 = vpop.f32.mrb[46].mxu1 }
 0x2b5   : > { %v6478_v47 = vpop.f32.mrb[47].mxu1  ;;  %5063 = vmatmul.mubr.bf16.vlgmr.msra.gmra.mrb[112].mxu0 %v9622_v54 }
 0x2b6   : > { %v3548_v58 = vadd.f32 %v6476_v15, %v9615_v32  ;;  %v6479_v9 = vadd.f32 %v6478_v47, %v6477_v37  ;;  %7036 = vmatpush3.bf16.msra.mxu0 %v9756_v41  ;;  %5070 = vmatprep.mubr.bf16.mxu0 %v9670_v8  ;;  %v7323_v41 = vld [vmem:[%s10603_s9 + $0x218] sm:$0xff]  }
 0x2b7   : > { %7037 = vmatprep.subr.bf16.mxu0 %v7321_v38 }
 0x2b8   : > { %v4087_v13 = vrot.slane %v3548_v58, 7  ;;  %v4096_v43 = vrot.slane %v3548_v58, 1  ;;  %v3551_v22 = vadd.f32 %v6479_v9, %v9615_v32 }
 0x2ba   : > { %v4089_v4 = vrot.slane %v3551_v22, 7  ;;  %v4097_v56 = vrot.slane %v3551_v22, 1  ;;  %v4088_v54 = vsel %vm3794_vm3, %v9558_v29, %v4087_v13  ;;  %7038 = vmatpush3.bf16.msra.mxu0 %v7321_v38  ;;  %v9965_v15 = vpack.c.bf16 %v3551_v22, %v3548_v58  ;;  %v7324_v38 = vld [vmem:[%s10603_s9 + $0x220] sm:$0xff]   ;;  %v7326_v58 = vld [vmem:[%s10603_s9 + $0x230] sm:$0xff]  }
 0x2bb   : > { %7039 = vmatprep.subr.bf16.mxu0 %v7322_v11 }
 0x2bc   : > { %v4090_v37 = vsel %vm3794_vm3, %v4087_v13, %v4089_v4  ;;  %v4098_v47 = vsel %vm599_vm1, %v4096_v43, %v4097_v56  ;;  %v4100_v9 = vsel %vm599_vm1, %v4097_v56, %v9620_v50  ;;  %v7325_v50 = vld [vmem:[%s10603_s9 + $0x228] sm:$0xff]  }
 0x2bd   : > { %v9974_v32 = vpack.c.bf16 %v4090_v37, %v4088_v54  ;;  %5071 = vmatmul.mubr.bf16.gmra.mrb[116].mxu0 %v9649_v12  ;;  %v9977_v29 = vpack.c.bf16 %v4100_v9, %v4098_v47 }
 0x2be   : > { %5078 = vmatprep.mubr.bf16.mxu0 %v9696_v5  ;;  %7040 = vmatpush3.bf16.msra.mxu0 %v7322_v11 }
 0x2bf   : > { %5021 = vmatprep.mubr.bf16.mxu1 %v9974_v32  ;;  %7041 = vmatprep.subr.bf16.mxu0 %v7323_v41 }
 0x2c0   : > { %5022 = vmatmul.mubr.bf16.gmra.mrb[108].mxu1 %v9942_v26 }
 0x2c1   : > { %5223 = vmatprep.mubr.bf16.mxu1 %v9649_v12  ;;  %v7327_v12 = vld [vmem:[%s10603_s9 + $0x238] sm:$0xff]  }
 0x2c2   : > { %7042 = vmatpush3.bf16.msra.mxu0 %v7323_v41 }
 0x2c3   : > { %7043 = vmatprep.subr.bf16.mxu0 %v7324_v38 }
 0x2c5   : > { %5079 = vmatmul.mubr.bf16.gmra.mrb[120].mxu0 %v9675_v16 }
 0x2c6   : > { %5086 = vmatprep.mubr.bf16.mxu0 %v9728_v45  ;;  %7044 = vmatpush3.bf16.msra.mxu0 %v7324_v38 }
 0x2c7   : > { %7045 = vmatprep.subr.bf16.mxu0 %v7325_v50 }
 0x2c8   : > { %5224 = vmatmul.mubr.bf16.vlgmr.msra.gmra.mrb[112].mxu1 %v9659_v21  ;;  %v10027_v21 = vld [vmem:[%s10604_s10] ss:$0 sm:$0xff] }
 0x2c9   : > { %5231 = vmatprep.mubr.bf16.mxu1 %v9675_v16 }
 0x2ca   : > { %7046 = vmatpush3.bf16.msra.mxu0 %v7325_v50 }
 0x2cb   : > { %7047 = vmatprep.subr.bf16.mxu0 %v7326_v58 }
 0x2cd   : > { %5087 = vmatmul.mubr.bf16.gmra.mrb[124].mxu0 %v9707_v23 }
 0x2ce   : > { %5094 = vmatprep.mubr.bf16.mxu0 %v9705_v55  ;;  %7048 = vmatpush3.bf16.msra.mxu0 %v7326_v58 }
 0x2cf   : > { %7049 = vmatprep.subr.bf16.mxu0 %v7327_v12 }
 0x2d0   : > { %5232 = vmatmul.mubr.bf16.gmra.mrb[116].mxu1 %v9686_v28 }
 0x2d1   : > { %5239 = vmatprep.mubr.bf16.mxu1 %v9707_v23 }
 0x2d2   : > { %7050 = vmatpush3.bf16.msra.mxu0 %v7327_v12 }
 0x2d3   : > { %7171 = vmatprep.subr.bf16.mxu0 %v7368_v30 }
 0x2d5   : > { %5095 = vmatmul.mubr.bf16.gmra.mrb[128].mxu0 %v9679_v24 }
 0x2d6   : > { %5102 = vmatprep.mubr.bf16.mxu0 %v9745_v57 }
 0x2d8   : > { %5240 = vmatmul.mubr.bf16.gmra.mrb[120].mxu1 %v9726_v39  ;;  %v4743_v39 = vadd.f32 %v9948_v0, %v10027_v21 }
 0x2d9   : > { %5247 = vmatprep.mubr.bf16.mxu1 %v9679_v24 }
 0x2dd   : > { %5103 = vmatmul.mubr.bf16.gmra.mrb[132].mxu0 %v9717_v17 }
 0x2de   : > { %5110 = vmatprep.mubr.bf16.mxu0 %v9776_v63 }
 0x2e0   : > { %5248 = vmatmul.mubr.bf16.gmra.mrb[124].mxu1 %v9698_v42 }
 0x2e1   : > { %5255 = vmatprep.mubr.bf16.mxu1 %v9717_v17 }
 0x2e5   : > { %5111 = vmatmul.mubr.bf16.gmra.mrb[136].mxu0 %v9759_v3 }
 0x2e6   : > { %5118 = vmatprep.mubr.bf16.mxu0 %v9806_v46 }
 0x2e8   : > { %5256 = vmatmul.mubr.bf16.gmra.mrb[128].mxu1 %v9736_v49 }
 0x2e9   : > { %5263 = vmatprep.mubr.bf16.mxu1 %v9759_v3 }
 0x2ed   : > { %5119 = vmatmul.mubr.bf16.gmra.mrb[140].mxu0 %v9790_v53 }
 0x2ee   : > { %5126 = vmatprep.mubr.bf16.mxu0 %v9827_v20 }
 0x2f0   : > { %5264 = vmatmul.mubr.bf16.gmra.mrb[132].mxu1 %v9774_v48 }
 0x2f1   : > { %5271 = vmatprep.mubr.bf16.mxu1 %v9790_v53 }
 0x2f5   : > { %5127 = vmatmul.mubr.bf16.gmra.mrb[144].mxu0 %v9817_v31 }
 0x2f6   : > { %5134 = vmatprep.mubr.bf16.mxu0 %v9845_v14 }
 0x2f8   : > { %5272 = vmatmul.mubr.bf16.gmra.mrb[136].mxu1 %v9804_v33 }
 0x2f9   : > { %5279 = vmatprep.mubr.bf16.mxu1 %v9817_v31  ;;  %v4746_v31 = vadd.f32 %v9950_v25, %v10027_v21 }
 0x2fd   : > { %5135 = vmatmul.mubr.bf16.gmra.mrb[148].mxu0 %v9835_v60 }
 0x2fe   : > { %v6502_v16 = vpop.f32.mrb[52].mxu0  ;;  %5142 = vmatprep.mubr.bf16.mxu0 %v9863_v18 }
 0x2ff   : > { %v6503_v24 = vpop.f32.mrb[53].mxu0  ;;  %v6608_v28 = vpop.f32.mrb[48].mxu1 }
 0x300   : > { %v6504_v42 = vadd.f32 %v6503_v24, %v6502_v16  ;;  %v6505_v23 = vpop.f32.mrb[54].mxu0  ;;  %v6609_v17 = vpop.f32.mrb[49].mxu1  ;;  %5280 = vmatmul.mubr.bf16.gmra.mrb[140].mxu1 %v9825_v52 }
 0x301   : > { %v6610_v49 = vadd.f32 %v6609_v17, %v6608_v28  ;;  %v6506_v3 = vpop.f32.mrb[55].mxu0  ;;  %v6611_v48 = vpop.f32.mrb[50].mxu1  ;;  %5287 = vmatprep.mubr.bf16.mxu1 %v9835_v60 }
 0x302   : > { %v6507_v53 = vadd.f32 %v6506_v3, %v6505_v23  ;;  %v6612_v33 = vpop.f32.mrb[51].mxu1  ;;  %v4751_v37 = vadd.f32 %v6504_v42, %v10027_v21 }
 0x303   : > { %v10035_v11 = vadd.f32 %v6610_v49, %v4743_v39  ;;  %v6613_v13 = vadd.f32 %v6612_v33, %v6611_v48 }
 0x304   : > { %v4754_v60 = vadd.f32 %v6507_v53, %v10027_v21 }
 0x305   : > { %v10039_v43 = vadd.f32 %v6613_v13, %v4746_v31  ;;  %5143 = vmatmul.mubr.bf16.gmra.mrb[152].mxu0 %v9853_v40 }
 0x306   : > { %v6508_v0 = vpop.f32.mrb[56].mxu0  ;;  %5150 = vmatprep.mubr.bf16.mxu0 %v9885_v34 }
 0x307   : > { %v6509_v22 = vpop.f32.mrb[57].mxu0  ;;  %v6614_v4 = vpop.f32.mrb[52].mxu1 }
 0x308   : > { %v6510_v56 = vadd.f32 %v6509_v22, %v6508_v0  ;;  %v6511_v54 = vpop.f32.mrb[58].mxu0  ;;  %v6615_v41 = vpop.f32.mrb[53].mxu1  ;;  %5288 = vmatmul.mubr.bf16.gmra.mrb[144].mxu1 %v9843_v36 }
 0x309   : > { %v6616_v25 = vadd.f32 %v6615_v41, %v6614_v4  ;;  %v6512_v47 = vpop.f32.mrb[59].mxu0  ;;  %v6617_v9 = vpop.f32.mrb[54].mxu1  ;;  %5295 = vmatprep.mubr.bf16.mxu1 %v9853_v40 }
 0x30a   : > { %v6513_v52 = vadd.f32 %v6512_v47, %v6511_v54  ;;  %v6618_v38 = vpop.f32.mrb[55].mxu1  ;;  %v4759_v39 = vadd.f32 %v6510_v56, %v10027_v21 }
 0x30b   : > { %v10045_v50 = vadd.f32 %v6616_v25, %v4751_v37  ;;  %v6619_v58 = vadd.f32 %v6618_v38, %v6617_v9 }
 0x30c   : > { %v4762_v40 = vadd.f32 %v6513_v52, %v10027_v21 }
 0x30d   : > { %v10049_v12 = vadd.f32 %v6619_v58, %v4754_v60  ;;  %5151 = vmatmul.mubr.bf16.gmra.mrb[156].mxu0 %v9874_v6 }
 0x30e   : > { %v6514_v16 = vpop.f32.mrb[60].mxu0  ;;  %5158 = vmatprep.mubr.bf16.mxu0 %v9906_v7 }
 0x30f   : > { %v6515_v24 = vpop.f32.mrb[61].mxu0  ;;  %v6620_v28 = vpop.f32.mrb[56].mxu1 }
 0x310   : > { %v6516_v42 = vadd.f32 %v6515_v24, %v6514_v16  ;;  %v6517_v23 = vpop.f32.mrb[62].mxu0  ;;  %v6621_v17 = vpop.f32.mrb[57].mxu1  ;;  %5296 = vmatmul.mubr.bf16.gmra.mrb[148].mxu1 %v9861_v59 }
 0x311   : > { %v6622_v49 = vadd.f32 %v6621_v17, %v6620_v28  ;;  %v6518_v3 = vpop.f32.mrb[63].mxu0  ;;  %v6623_v48 = vpop.f32.mrb[58].mxu1  ;;  %5303 = vmatprep.mubr.bf16.mxu1 %v9874_v6 }
 0x312   : > { %v6519_v36 = vadd.f32 %v6518_v3, %v6517_v23  ;;  %v6624_v53 = vpop.f32.mrb[59].mxu1  ;;  %v4767_v37 = vadd.f32 %v6516_v42, %v10027_v21 }
 0x313   : > { %v10055_v33 = vadd.f32 %v6622_v49, %v4759_v39  ;;  %v6625_v31 = vadd.f32 %v6624_v53, %v6623_v48 }
 0x314   : > { %v4770_v6 = vadd.f32 %v6519_v36, %v10027_v21 }
 0x315   : > { %v10059_v13 = vadd.f32 %v6625_v31, %v4762_v40  ;;  %5159 = vmatmul.mubr.bf16.gmra.mrb[160].mxu0 %v9895_v27 }
 0x316   : > { %v6520_v0 = vpop.f32.mrb[64].mxu0  ;;  %5166 = vmatprep.mubr.bf16.mxu0 %v9924_v1 }
 0x317   : > { %v6521_v22 = vpop.f32.mrb[65].mxu0  ;;  %v6626_v4 = vpop.f32.mrb[60].mxu1 }
 0x318   : > { %v6522_v56 = vadd.f32 %v6521_v22, %v6520_v0  ;;  %v6523_v54 = vpop.f32.mrb[66].mxu0  ;;  %v6627_v41 = vpop.f32.mrb[61].mxu1  ;;  %5304 = vmatmul.mubr.bf16.gmra.mrb[152].mxu1 %v9883_v51 }
 0x319   : > { %v6628_v25 = vadd.f32 %v6627_v41, %v6626_v4  ;;  %v6524_v47 = vpop.f32.mrb[67].mxu0  ;;  %v6629_v9 = vpop.f32.mrb[62].mxu1  ;;  %5311 = vmatprep.mubr.bf16.mxu1 %v9895_v27 }
 0x31a   : > { %v6525_v59 = vadd.f32 %v6524_v47, %v6523_v54  ;;  %v6630_v52 = vpop.f32.mrb[63].mxu1  ;;  %v4775_v39 = vadd.f32 %v6522_v56, %v10027_v21 }
 0x31b   : > { %v10065_v38 = vadd.f32 %v6628_v25, %v4767_v37  ;;  %v6631_v60 = vadd.f32 %v6630_v52, %v6629_v9 }
 0x31c   : > { %v4778_v27 = vadd.f32 %v6525_v59, %v10027_v21 }
 0x31d   : > { %v10069_v58 = vadd.f32 %v6631_v60, %v4770_v6  ;;  %5167 = vmatmul.mubr.bf16.gmra.mrb[164].mxu0 %v9913_v19 }
 0x31e   : > { %v6526_v16 = vpop.f32.mrb[68].mxu0  ;;  %5174 = vmatprep.mubr.bf16.mxu0 %v9942_v26 }
 0x31f   : > { %v6527_v24 = vpop.f32.mrb[69].mxu0  ;;  %v6632_v28 = vpop.f32.mrb[64].mxu1 }
 0x320   : > { %v6528_v42 = vadd.f32 %v6527_v24, %v6526_v16  ;;  %v6529_v23 = vpop.f32.mrb[70].mxu0  ;;  %v6633_v17 = vpop.f32.mrb[65].mxu1  ;;  %5312 = vmatmul.mubr.bf16.gmra.mrb[156].mxu1 %v9904_v35 }
 0x321   : > { %v6634_v49 = vadd.f32 %v6633_v17, %v6632_v28  ;;  %v6530_v3 = vpop.f32.mrb[71].mxu0  ;;  %v6635_v48 = vpop.f32.mrb[66].mxu1  ;;  %5319 = vmatprep.mubr.bf16.mxu1 %v9913_v19 }
 0x322   : > { %v6531_v51 = vadd.f32 %v6530_v3, %v6529_v23  ;;  %v6636_v36 = vpop.f32.mrb[67].mxu1  ;;  %v4783_v37 = vadd.f32 %v6528_v42, %v10027_v21 }
 0x323   : > { %v10075_v53 = vadd.f32 %v6634_v49, %v4775_v39  ;;  %v6637_v40 = vadd.f32 %v6636_v36, %v6635_v48 }
 0x324   : > { %v4786_v19 = vadd.f32 %v6531_v51, %v10027_v21 }
 0x325   : > { %v10079_v31 = vadd.f32 %v6637_v40, %v4778_v27  ;;  %5175 = vmatmul.mubr.bf16.gmra.mrb[168].mxu0 %v9931_v10 }
 0x326   : > { %v6532_v0 = vpop.f32.mrb[72].mxu0  ;;  %5182 = vmatprep.mubr.bf16.mxu0 %v9977_v29 }
 0x327   : > { %v6533_v22 = vpop.f32.mrb[73].mxu0  ;;  %v6638_v4 = vpop.f32.mrb[68].mxu1 }
 0x328   : > { %v6534_v56 = vadd.f32 %v6533_v22, %v6532_v0  ;;  %v6535_v54 = vpop.f32.mrb[74].mxu0  ;;  %v6639_v41 = vpop.f32.mrb[69].mxu1  ;;  %5320 = vmatmul.mubr.bf16.gmra.mrb[160].mxu1 %v9922_v44 }
 0x329   : > { %v6640_v25 = vadd.f32 %v6639_v41, %v6638_v4  ;;  %v6536_v47 = vpop.f32.mrb[75].mxu0  ;;  %v6641_v9 = vpop.f32.mrb[70].mxu1  ;;  %5327 = vmatprep.mubr.bf16.mxu1 %v9931_v10 }
 0x32a   : > { %v6537_v35 = vadd.f32 %v6536_v47, %v6535_v54  ;;  %v6642_v59 = vpop.f32.mrb[71].mxu1  ;;  %v4791_v39 = vadd.f32 %v6534_v56, %v10027_v21 }
 0x32b   : > { %v10085_v52 = vadd.f32 %v6640_v25, %v4783_v37  ;;  %v6643_v6 = vadd.f32 %v6642_v59, %v6641_v9 }
 0x32c   : > { %v4794_v10 = vadd.f32 %v6537_v35, %v10027_v21 }
 0x32d   : > { %v10089_v60 = vadd.f32 %v6643_v6, %v4786_v19  ;;  %5183 = vmatmul.mubr.bf16.gmra.mrb[172].mxu0 %v9965_v15 }
 0x32e   : > { %v6538_v16 = vpop.f32.mrb[76].mxu0  ;;  %7051 = vmatprep.mubr.bf16.mxu0 %v9670_v8 }
 0x32f   : > { %v6539_v24 = vpop.f32.mrb[77].mxu0  ;;  %v6644_v28 = vpop.f32.mrb[72].mxu1 }
 0x330   : > { %v6540_v42 = vadd.f32 %v6539_v24, %v6538_v16  ;;  %v6541_v23 = vpop.f32.mrb[78].mxu0  ;;  %v6645_v17 = vpop.f32.mrb[73].mxu1  ;;  %5328 = vmatmul.mubr.bf16.gmra.mrb[164].mxu1 %v9940_v61 }
 0x331   : > { %v6646_v49 = vadd.f32 %v6645_v17, %v6644_v28  ;;  %v6542_v3 = vpop.f32.mrb[79].mxu0  ;;  %v6647_v48 = vpop.f32.mrb[74].mxu1  ;;  %5335 = vmatprep.mubr.bf16.mxu1 %v9965_v15 }
 0x332   : > { %v6543_v44 = vadd.f32 %v6542_v3, %v6541_v23  ;;  %v6648_v51 = vpop.f32.mrb[75].mxu1  ;;  %v4799_v8 = vadd.f32 %v6540_v42, %v10027_v21 }
 0x333   : > { %v10095_v36 = vadd.f32 %v6646_v49, %v4791_v39  ;;  %v6649_v27 = vadd.f32 %v6648_v51, %v6647_v48 }
 0x334   : > { %v4802_v15 = vadd.f32 %v6543_v44, %v10027_v21 }
 0x335   : > { %v10099_v40 = vadd.f32 %v6649_v27, %v4794_v10  ;;  %7052 = vmatmul.mubr.bf16.vlgmr.msra.gmra.mrb[176].mxu0 %v9696_v5 }
 0x336   : > { %v6544_v0 = vpop.f32.mrb[80].mxu0  ;;  %7055 = vmatprep.mubr.bf16.mxu0 %v9728_v45 }
 0x337   : > { %v6545_v22 = vpop.f32.mrb[81].mxu0  ;;  %v6650_v4 = vpop.f32.mrb[76].mxu1 }
 0x338   : > { %v6546_v56 = vadd.f32 %v6545_v22, %v6544_v0  ;;  %v6547_v54 = vpop.f32.mrb[82].mxu0  ;;  %v6651_v41 = vpop.f32.mrb[77].mxu1  ;;  %5336 = vmatmul.mubr.bf16.gmra.mrb[168].mxu1 %v9974_v32 }
 0x339   : > { %v6652_v37 = vadd.f32 %v6651_v41, %v6650_v4  ;;  %v6548_v25 = vpop.f32.mrb[83].mxu0  ;;  %v6653_v47 = vpop.f32.mrb[78].mxu1  ;;  %5343 = vmatprep.mubr.bf16.mxu1 %v7368_v30 }
 0x33a   : > { %v6549_v61 = vadd.f32 %v6548_v25, %v6547_v54  ;;  %v6654_v9 = vpop.f32.mrb[79].mxu1  ;;  %v4807_v45 = vadd.f32 %v6546_v56, %v10027_v21 }
 0x33b   : > { %v10105_v35 = vadd.f32 %v6652_v37, %v4799_v8  ;;  %v6655_v59 = vadd.f32 %v6654_v9, %v6653_v47 }
 0x33c   : > { %v4810_v3 = vadd.f32 %v6549_v61, %v10027_v21 }
 0x33d   : > { %v10109_v19 = vadd.f32 %v6655_v59, %v4802_v15  ;;  %7056 = vmatmul.mubr.bf16.gmra.mrb[180].mxu0 %v9705_v55 }
 0x33e   : > { %v6550_v5 = vpop.f32.mrb[84].mxu0  ;;  %7059 = vmatprep.mubr.bf16.mxu0 %v9745_v57 }
 0x33f   : > { %v6551_v6 = vpop.f32.mrb[85].mxu0  ;;  %v6656_v16 = vpop.f32.mrb[80].mxu1 }
 0x340   : > { %v6552_v24 = vadd.f32 %v6551_v6, %v6550_v5  ;;  %v6553_v28 = vpop.f32.mrb[86].mxu0  ;;  %v6657_v42 = vpop.f32.mrb[81].mxu1  ;;  %5344 = vmatmul.mubr.bf16.gmra.mrb[172].mxu1 %v9565_v62 }
 0x341   : > { %v6658_v23 = vadd.f32 %v6657_v42, %v6656_v16  ;;  %v6554_v17 = vpop.f32.mrb[87].mxu0  ;;  %v6659_v39 = vpop.f32.mrb[82].mxu1 }
 0x342   : > { %v6555_v32 = vadd.f32 %v6554_v17, %v6553_v28  ;;  %v6660_v49 = vpop.f32.mrb[83].mxu1  ;;  %v4815_v57 = vadd.f32 %v6552_v24, %v10027_v21 }
 0x343   : > { %v10115_v48 = vadd.f32 %v6658_v23, %v4807_v45  ;;  %v6661_v44 = vadd.f32 %v6660_v49, %v6659_v39 }
 0x344   : > { %v4818_v62 = vadd.f32 %v6555_v32, %v10027_v21 }
 0x345   : > { %v10118_v51 = vadd.f32 %v6661_v44, %v4810_v3  ;;  %7060 = vmatmul.mubr.bf16.gmra.mrb[184].mxu0 %v9776_v63 }
 0x346   : > { %v6556_v10 = vpop.f32.mrb[88].mxu0  ;;  %7063 = vmatprep.mubr.bf16.mxu0 %v9806_v46 }
 0x347   : > { %v6557_v55 = vpop.f32.mrb[89].mxu0  ;;  %v6662_v27 = vpop.f32.mrb[84].mxu1 }
 0x348   : > { %v6558_v0 = vadd.f32 %v6557_v55, %v6556_v10  ;;  %v6559_v22 = vpop.f32.mrb[90].mxu0  ;;  %v6663_v4 = vpop.f32.mrb[85].mxu1 }
 0x349   : > { %v6664_v56 = vadd.f32 %v6663_v4, %v6662_v27  ;;  %v6560_v54 = vpop.f32.mrb[91].mxu0  ;;  %v6665_v41 = vpop.f32.mrb[86].mxu1 }
 0x34a   : > { %v6561_v8 = vadd.f32 %v6560_v54, %v6559_v22  ;;  %v6666_v37 = vpop.f32.mrb[87].mxu1  ;;  %v4823_v16 = vadd.f32 %v6558_v0, %v10027_v21 }
 0x34b   : > { %v10124_v25 = vadd.f32 %v6664_v56, %v4815_v57  ;;  %v6667_v47 = vadd.f32 %v6666_v37, %v6665_v41 }
 0x34c   : > { %v4826_v23 = vadd.f32 %v6561_v8, %v10027_v21 }
 0x34d   : > { %v10126_v61 = vadd.f32 %v6667_v47, %v4818_v62  ;;  %7064 = vmatmul.mubr.bf16.gmra.mrb[188].mxu0 %v9827_v20 }
 0x34e   : > { %v6562_v9 = vpop.f32.mrb[92].mxu0  ;;  %7067 = vmatprep.mubr.bf16.mxu0 %v9845_v14 }
 0x34f   : > { %v6563_v15 = vpop.f32.mrb[93].mxu0  ;;  %v6668_v59 = vpop.f32.mrb[88].mxu1 }
 0x350   : > { %v6564_v63 = vadd.f32 %v6563_v15, %v6562_v9  ;;  %v6565_v5 = vpop.f32.mrb[94].mxu0  ;;  %v6669_v6 = vpop.f32.mrb[89].mxu1 }
 0x351   : > { %v6670_v46 = vadd.f32 %v6669_v6, %v6668_v59  ;;  %v6566_v24 = vpop.f32.mrb[95].mxu0  ;;  %v6671_v28 = vpop.f32.mrb[90].mxu1 }
 0x352   : > { %v6567_v42 = vadd.f32 %v6566_v24, %v6565_v5  ;;  %v6672_v45 = vpop.f32.mrb[91].mxu1  ;;  %v4831_v27 = vadd.f32 %v6564_v63, %v10027_v21 }
 0x353   : > { %v10132_v17 = vadd.f32 %v6670_v46, %v4823_v16  ;;  %v6673_v39 = vadd.f32 %v6672_v45, %v6671_v28 }
 0x354   : > { %v4834_v56 = vadd.f32 %v6567_v42, %v10027_v21 }
 0x355   : > { %v10134_v32 = vadd.f32 %v6673_v39, %v4826_v23  ;;  %7068 = vmatmul.mubr.bf16.gmra.mrb[192].mxu0 %v9863_v18 }
 0x356   : > { %v6568_v49 = vpop.f32.mrb[96].mxu0  ;;  %7071 = vmatprep.mubr.bf16.mxu0 %v9885_v34 }
 0x357   : > { %v6569_v3 = vpop.f32.mrb[97].mxu0  ;;  %v6674_v44 = vpop.f32.mrb[92].mxu1 }
 0x358   : > { %v6570_v20 = vadd.f32 %v6569_v3, %v6568_v49  ;;  %v6571_v10 = vpop.f32.mrb[98].mxu0  ;;  %v6675_v55 = vpop.f32.mrb[93].mxu1 }
 0x359   : > { %v6676_v14 = vadd.f32 %v6675_v55, %v6674_v44  ;;  %v6572_v0 = vpop.f32.mrb[99].mxu0  ;;  %v6677_v22 = vpop.f32.mrb[94].mxu1 }
 0x35a   : > { %v6573_v4 = vadd.f32 %v6572_v0, %v6571_v10  ;;  %v6678_v57 = vpop.f32.mrb[95].mxu1  ;;  %v4839_v34 = vadd.f32 %v6570_v20, %v10027_v21 }
 0x35b   : > { %v10140_v54 = vadd.f32 %v6676_v14, %v4831_v27  ;;  %v6679_v41 = vadd.f32 %v6678_v57, %v6677_v22 }
 0x35c   : > { %v4842_v46 = vadd.f32 %v6573_v4, %v10027_v21 }
 0x35d   : > { %v10142_v8 = vadd.f32 %v6679_v41, %v4834_v56  ;;  %7072 = vmatmul.mubr.bf16.gmra.mrb[196].mxu0 %v9906_v7 }
 0x35e   : > { %v6574_v37 = vpop.f32.mrb[100].mxu0  ;;  %7075 = vmatprep.mubr.bf16.mxu0 %v9924_v1 }
 0x35f   : > { %v6575_v62 = vpop.f32.mrb[101].mxu0  ;;  %v6680_v47 = vpop.f32.mrb[96].mxu1 }
 0x360   : > { %v6576_v18 = vadd.f32 %v6575_v62, %v6574_v37  ;;  %v6577_v9 = vpop.f32.mrb[102].mxu0  ;;  %v6681_v15 = vpop.f32.mrb[97].mxu1 }
 0x361   : > { %v6682_v59 = vadd.f32 %v6681_v15, %v6680_v47  ;;  %v6578_v63 = vpop.f32.mrb[103].mxu0  ;;  %v6683_v5 = vpop.f32.mrb[98].mxu1 }
 0x362   : > { %v6579_v6 = vadd.f32 %v6578_v63, %v6577_v9  ;;  %v6684_v16 = vpop.f32.mrb[99].mxu1  ;;  %v4847_v3 = vadd.f32 %v6576_v18, %v10027_v21 }
 0x363   : > { %v10148_v24 = vadd.f32 %v6682_v59, %v4839_v34  ;;  %v6685_v28 = vadd.f32 %v6684_v16, %v6683_v5 }
 0x364   : > { %v4850_v14 = vadd.f32 %v6579_v6, %v10027_v21 }
 0x365   : > { %v10150_v42 = vadd.f32 %v6685_v28, %v4842_v46  ;;  %7076 = vmatmul.mubr.bf16.gmra.mrb[200].mxu0 %v9942_v26 }
 0x366   : > { %7079 = vmatprep.mubr.bf16.mxu0 %v9977_v29 }
 0x36d   : > { %7080 = vmatmul.mubr.bf16.gmra.mrb[204].mxu0 %v9628_v2  ;;  %v6580_v7 = vpop.f32.mrb[104].mxu0 }
 0x36e   : > { %v6581_v1 = vpop.f32.mrb[105].mxu0  ;;  %v6686_v45 = vpop.f32.mrb[100].mxu1 }
 0x36f   : > { %v6582_v23 = vadd.f32 %v6581_v1, %v6580_v7  ;;  %v6583_v39 = vpop.f32.mrb[106].mxu0  ;;  %v6687_v49 = vpop.f32.mrb[101].mxu1 }
 0x370   : > { %v6688_v44 = vadd.f32 %v6687_v49, %v6686_v45  ;;  %v6584_v20 = vpop.f32.mrb[107].mxu0  ;;  %v6689_v10 = vpop.f32.mrb[102].mxu1 }
 0x371   : > { %v6585_v55 = vadd.f32 %v6584_v20, %v6583_v39  ;;  %v6690_v27 = vpop.f32.mrb[103].mxu1  ;;  %v4855_v37 = vadd.f32 %v6582_v23, %v10027_v21 }
 0x372   : > { %v10157_v26 = vadd.f32 %v6688_v44, %v4847_v3  ;;  %v6691_v29 = vadd.f32 %v6690_v27, %v6689_v10 }
 0x373   : > { %v4858_v34 = vadd.f32 %v6585_v55, %v10027_v21 }
 0x374   : > { %v10159_v0 = vadd.f32 %v6691_v29, %v4850_v14 }
 0x380   : > { %v6586_v2 = vpop.f32.mrb[108].mxu0 }
 0x381   : > { %v6587_v22 = vpop.f32.mrb[109].mxu0  ;;  %v6692_v4 = vpop.f32.mrb[104].mxu1 }
 0x382   : > { %v6588_v57 = vadd.f32 %v6587_v22, %v6586_v2  ;;  %v6589_v56 = vpop.f32.mrb[110].mxu0  ;;  %v6693_v41 = vpop.f32.mrb[105].mxu1 }
 0x383   : > { %v6694_v62 = vadd.f32 %v6693_v41, %v6692_v4  ;;  %v6590_v47 = vpop.f32.mrb[111].mxu0  ;;  %v6695_v18 = vpop.f32.mrb[106].mxu1 }
 0x384   : > { %v6591_v9 = vadd.f32 %v6590_v47, %v6589_v56  ;;  %v6696_v15 = vpop.f32.mrb[107].mxu1  ;;  %v4863_v29 = vadd.f32 %v6588_v57, %v10027_v21 }
 0x385   : > { %v10163_v59 = vadd.f32 %v6694_v62, %v4855_v37  ;;  %v6697_v63 = vadd.f32 %v6696_v15, %v6695_v18 }
 0x386   : > { %v4866_v56 = vadd.f32 %v6591_v9, %v10027_v21  ;;  %v5553_v21 = vld [vmem:[%s10605_s11 + $0x8] sm:$0xff] }
 0x387   : > { %v10165_v5 = vadd.f32 %v6697_v63, %v4858_v34 }
 0x388   : > { %v6720_v6 = vpop.f32.mrb[112].mxu0 }
 0x389   : > { %v6721_v16 = vpop.f32.mrb[113].mxu0 }
 0x38a   : > { %v6722_v46 = vadd.f32 %v6721_v16, %v6720_v6  ;;  %v6723_v28 = vpop.f32.mrb[114].mxu0 }
 0x38b   : > { %v6724_v7 = vpop.f32.mrb[115].mxu0 }
 0x38c   : > { %v5065_v1 = vadd.f32 %v6722_v46, %v10035_v11  ;;  %v6725_v45 = vadd.f32 %v6724_v7, %v6723_v28 }
 0x38e   : > { %v5068_v23 = vadd.f32 %v6725_v45, %v10039_v43 }
 0x390   : > { %v6726_v39 = vpop.f32.mrb[116].mxu0 }
 0x391   : > { %v6727_v49 = vpop.f32.mrb[117].mxu0 }
 0x392   : > { %v6728_v3 = vadd.f32 %v6727_v49, %v6726_v39  ;;  %v6729_v44 = vpop.f32.mrb[118].mxu0 }
 0x393   : > { %v6698_v20 = vpop.f32.mrb[108].mxu1  ;;  %v6730_v10 = vpop.f32.mrb[119].mxu0 }
 0x394   : > { %v6699_v55 = vpop.f32.mrb[109].mxu1  ;;  %v5073_v27 = vadd.f32 %v6728_v3, %v10045_v50  ;;  %v6731_v14 = vadd.f32 %v6730_v10, %v6729_v44 }
 0x395   : > { %v6700_v2 = vadd.f32 %v6699_v55, %v6698_v20  ;;  %v6701_v22 = vpop.f32.mrb[110].mxu1 }
 0x396   : > { %v6702_v4 = vpop.f32.mrb[111].mxu1  ;;  %v5076_v11 = vadd.f32 %v6731_v14, %v10049_v12  ;;  %v5552_v12 = vld [vmem:[%s10605_s11] sm:$0xff] }
 0x397   : > { %v10173_v43 = vadd.f32 %v6700_v2, %v4863_v29  ;;  %v6703_v41 = vadd.f32 %v6702_v4, %v6701_v22  ;;  %v7172_v46 = vpack.c.bf16 %v5553_v21, %v5552_v12 }
 0x398   : > { %v6732_v37 = vpop.f32.mrb[120].mxu0 }
 0x399   : > { %v10175_v62 = vadd.f32 %v6703_v41, %v4866_v56  ;;  %v6733_v47 = vpop.f32.mrb[121].mxu0  ;;  %7173 = vmatpush3.bf16.msra.mxu0 %v7172_v46 }
 0x39a   : > { %v6734_v18 = vadd.f32 %v6733_v47, %v6732_v37  ;;  %v6735_v15 = vpop.f32.mrb[122].mxu0  ;;  %7174 = vmatprep.subr.bf16.mxu0 %v7368_v30 }
 0x39b   : > { %v6832_v50 = vpop.f32.mrb[112].mxu1  ;;  %v6736_v34 = vpop.f32.mrb[123].mxu0 }
 0x39c   : > { %v6833_v63 = vpop.f32.mrb[113].mxu1  ;;  %v5081_v57 = vadd.f32 %v6734_v18, %v10055_v33  ;;  %v6737_v6 = vadd.f32 %v6736_v34, %v6735_v15 }
 0x39d   : > { %v6834_v9 = vadd.f32 %v6833_v63, %v6832_v50  ;;  %v6835_v16 = vpop.f32.mrb[114].mxu1 }
 0x39e   : > { %v6836_v28 = vpop.f32.mrb[115].mxu1  ;;  %v5084_v7 = vadd.f32 %v6737_v6, %v10059_v13  ;;  %v5554_v13 = vld [vmem:[%s10605_s11 + $0x10] sm:$0xff] }
 0x39f   : > { %v6837_v45 = vadd.f32 %v6836_v28, %v6835_v16  ;;  %v10185_v39 = vadd.f32 %v6834_v9, %v5065_v1  ;;  %v5555_v1 = vld [vmem:[%s10605_s11 + $0x18] sm:$0xff] }
 0x3a0   : > { %v6738_v33 = vpop.f32.mrb[124].mxu0 }
 0x3a1   : > { %v6739_v49 = vpop.f32.mrb[125].mxu0  ;;  %v10188_v3 = vadd.f32 %v6837_v45, %v5068_v23  ;;  %v7175_v23 = vpack.c.bf16 %v5555_v1, %v5554_v13 }
 0x3a2   : > { %v6740_v44 = vadd.f32 %v6739_v49, %v6738_v33  ;;  %v6741_v20 = vpop.f32.mrb[126].mxu0 }
 0x3a3   : > { %v6838_v10 = vpop.f32.mrb[116].mxu1  ;;  %v6742_v55 = vpop.f32.mrb[127].mxu0  ;;  %7176 = vmatpush3.bf16.msra.mxu0 %v7175_v23 }
 0x3a4   : > { %v6839_v14 = vpop.f32.mrb[117].mxu1  ;;  %v5089_v29 = vadd.f32 %v6740_v44, %v10065_v38  ;;  %v6743_v2 = vadd.f32 %v6742_v55, %v6741_v20  ;;  %7177 = vmatprep.subr.bf16.mxu0 %v7368_v30 }
 0x3a5   : > { %v6840_v22 = vadd.f32 %v6839_v14, %v6838_v10  ;;  %v6841_v4 = vpop.f32.mrb[118].mxu1 }
 0x3a6   : > { %v6842_v56 = vpop.f32.mrb[119].mxu1  ;;  %v5092_v41 = vadd.f32 %v6743_v2, %v10069_v58  ;;  %v5556_v58 = vld [vmem:[%s10605_s11 + $0x20] sm:$0xff] }
 0x3a7   : > { %v6843_v37 = vadd.f32 %v6842_v56, %v6841_v4  ;;  %v10198_v47 = vadd.f32 %v6840_v22, %v5073_v27  ;;  %v5557_v27 = vld [vmem:[%s10605_s11 + $0x28] sm:$0xff] }
 0x3a8   : > { %v6744_v38 = vpop.f32.mrb[128].mxu0 }
 0x3a9   : > { %v6745_v18 = vpop.f32.mrb[129].mxu0  ;;  %v10201_v15 = vadd.f32 %v6843_v37, %v5076_v11  ;;  %v7178_v11 = vpack.c.bf16 %v5557_v27, %v5556_v58 }
 0x3aa   : > { %v6746_v50 = vadd.f32 %v6745_v18, %v6744_v38  ;;  %v6747_v34 = vpop.f32.mrb[130].mxu0 }
 0x3ab   : > { %v6844_v63 = vpop.f32.mrb[120].mxu1  ;;  %v6748_v6 = vpop.f32.mrb[131].mxu0  ;;  %7179 = vmatpush3.bf16.msra.mxu0 %v7178_v11 }
 0x3ac   : > { %v6845_v12 = vpop.f32.mrb[121].mxu1  ;;  %v5097_v21 = vadd.f32 %v6746_v50, %v10075_v53  ;;  %v6749_v9 = vadd.f32 %v6748_v6, %v6747_v34  ;;  %7180 = vmatprep.subr.bf16.mxu0 %v7368_v30 }
 0x3ad   : > { %v6846_v16 = vadd.f32 %v6845_v12, %v6844_v63  ;;  %v6847_v46 = vpop.f32.mrb[122].mxu1 }
 0x3ae   : > { %v6848_v28 = vpop.f32.mrb[123].mxu1  ;;  %v5100_v45 = vadd.f32 %v6749_v9, %v10079_v31  ;;  %v5558_v31 = vld [vmem:[%s10605_s11 + $0x30] sm:$0xff] }
 0x3af   : > { %v6849_v33 = vadd.f32 %v6848_v28, %v6847_v46  ;;  %v10211_v49 = vadd.f32 %v6846_v16, %v5081_v57  ;;  %v5559_v57 = vld [vmem:[%s10605_s11 + $0x38] sm:$0xff] }
 0x3b0   : > { %v6750_v53 = vpop.f32.mrb[132].mxu0 }
 0x3b1   : > { %v6751_v44 = vpop.f32.mrb[133].mxu0  ;;  %v10214_v20 = vadd.f32 %v6849_v33, %v5084_v7  ;;  %v7181_v7 = vpack.c.bf16 %v5559_v57, %v5558_v31 }
 0x3b2   : > { %v6752_v10 = vadd.f32 %v6751_v44, %v6750_v53  ;;  %v6753_v55 = vpop.f32.mrb[134].mxu0 }
 0x3b3   : > { %v6850_v14 = vpop.f32.mrb[124].mxu1  ;;  %v6754_v2 = vpop.f32.mrb[135].mxu0  ;;  %7182 = vmatpush3.bf16.msra.mxu0 %v7181_v7 }
 0x3b4   : > { %v6851_v13 = vpop.f32.mrb[125].mxu1  ;;  %v5105_v1 = vadd.f32 %v6752_v10, %v10085_v52  ;;  %v6755_v22 = vadd.f32 %v6754_v2, %v6753_v55  ;;  %7183 = vmatprep.subr.bf16.mxu0 %v7368_v30 }
 0x3b5   : > { %v6852_v4 = vadd.f32 %v6851_v13, %v6850_v14  ;;  %v6853_v23 = vpop.f32.mrb[126].mxu1 }
 0x3b6   : > { %v6854_v56 = vpop.f32.mrb[127].mxu1  ;;  %v5108_v37 = vadd.f32 %v6755_v22, %v10089_v60  ;;  %v5560_v60 = vld [vmem:[%s10605_s11 + $0x40] sm:$0xff] }
 0x3b7   : > { %v6855_v38 = vadd.f32 %v6854_v56, %v6853_v23  ;;  %v10224_v18 = vadd.f32 %v6852_v4, %v5089_v29  ;;  %v5561_v29 = vld [vmem:[%s10605_s11 + $0x48] sm:$0xff] }
 0x3b8   : > { %v6756_v52 = vpop.f32.mrb[136].mxu0 }
 0x3b9   : > { %v6757_v50 = vpop.f32.mrb[137].mxu0  ;;  %v10227_v34 = vadd.f32 %v6855_v38, %v5092_v41  ;;  %v7184_v41 = vpack.c.bf16 %v5561_v29, %v5560_v60 }
 0x3ba   : > { %v6758_v63 = vadd.f32 %v6757_v50, %v6756_v52  ;;  %v6759_v6 = vpop.f32.mrb[138].mxu0 }
 0x3bb   : > { %v6856_v12 = vpop.f32.mrb[128].mxu1  ;;  %v6760_v9 = vpop.f32.mrb[139].mxu0  ;;  %7185 = vmatpush3.bf16.msra.mxu0 %v7184_v41 }
 0x3bc   : > { %v6857_v58 = vpop.f32.mrb[129].mxu1  ;;  %v5113_v27 = vadd.f32 %v6758_v63, %v10095_v36  ;;  %v6761_v16 = vadd.f32 %v6760_v9, %v6759_v6  ;;  %7186 = vmatprep.subr.bf16.mxu0 %v7368_v30 }
 0x3bd   : > { %v6858_v46 = vadd.f32 %v6857_v58, %v6856_v12  ;;  %v6859_v11 = vpop.f32.mrb[130].mxu1 }
 0x3be   : > { %v6860_v28 = vpop.f32.mrb[131].mxu1  ;;  %v5116_v33 = vadd.f32 %v6761_v16, %v10099_v40  ;;  %v5562_v40 = vld [vmem:[%s10605_s11 + $0x50] sm:$0xff] }
 0x3bf   : > { %v6861_v53 = vadd.f32 %v6860_v28, %v6859_v11  ;;  %v10237_v44 = vadd.f32 %v6858_v46, %v5097_v21  ;;  %v5563_v21 = vld [vmem:[%s10605_s11 + $0x58] sm:$0xff] }
 0x3c0   : > { %v6762_v36 = vpop.f32.mrb[140].mxu0 }
 0x3c1   : > { %v6763_v10 = vpop.f32.mrb[141].mxu0  ;;  %v10240_v55 = vadd.f32 %v6861_v53, %v5100_v45  ;;  %v7187_v45 = vpack.c.bf16 %v5563_v21, %v5562_v40  ;;  %v5564_v40 = vld [vmem:[%s10605_s11 + $0x60] sm:$0xff] }
 0x3c2   : > { %v6764_v14 = vadd.f32 %v6763_v10, %v6762_v36  ;;  %v6765_v2 = vpop.f32.mrb[142].mxu0 }
 0x3c3   : > { %v6862_v13 = vpop.f32.mrb[132].mxu1  ;;  %v6766_v22 = vpop.f32.mrb[143].mxu0  ;;  %7188 = vmatpush3.bf16.msra.mxu0 %v7187_v45 }
 0x3c4   : > { %v6863_v31 = vpop.f32.mrb[133].mxu1  ;;  %v5121_v57 = vadd.f32 %v6764_v14, %v10105_v35  ;;  %v6767_v4 = vadd.f32 %v6766_v22, %v6765_v2  ;;  %7189 = vmatprep.subr.bf16.mxu0 %v7368_v30 }
 0x3c5   : > { %v6864_v23 = vadd.f32 %v6863_v31, %v6862_v13  ;;  %v6865_v7 = vpop.f32.mrb[134].mxu1 }
 0x3c6   : > { %v6866_v56 = vpop.f32.mrb[135].mxu1  ;;  %v5124_v38 = vadd.f32 %v6767_v4, %v10109_v19 }
 0x3c7   : > { %v6867_v52 = vadd.f32 %v6866_v56, %v6865_v7  ;;  %v10250_v50 = vadd.f32 %v6864_v23, %v5105_v1  ;;  %v10612_v7 = vmov 0.0  }
 0x3c8   : > { %v6768_v35 = vpop.f32.mrb[144].mxu0  ;;  %7115 = vmatprep.mubr.msk.f32.mxu0 %vm7370_vm4, %v10612_v7 }
 0x3c9   : > { %v6769_v63 = vpop.f32.mrb[145].mxu0  ;;  %v10253_v6 = vadd.f32 %v6867_v52, %v5108_v37 }
 0x3ca   : > { %v6770_v12 = vadd.f32 %v6769_v63, %v6768_v35  ;;  %v6771_v9 = vpop.f32.mrb[146].mxu0 }
 0x3cb   : > { %v6868_v58 = vpop.f32.mrb[136].mxu1  ;;  %v6772_v16 = vpop.f32.mrb[147].mxu0 }
 0x3cc   : > { %v6869_v60 = vpop.f32.mrb[137].mxu1  ;;  %v5129_v29 = vadd.f32 %v6770_v12, %v10115_v48  ;;  %v6773_v46 = vadd.f32 %v6772_v16, %v6771_v9 }
 0x3cd   : > { %v6870_v11 = vadd.f32 %v6869_v60, %v6868_v58  ;;  %v6871_v19 = vpop.f32.mrb[138].mxu1 }
 0x3ce   : > { %v6872_v41 = vpop.f32.mrb[139].mxu1  ;;  %v5132_v1 = vadd.f32 %v6773_v46, %v10118_v51  ;;  %v5565_v51 = vld [vmem:[%s10605_s11 + $0x68] sm:$0xff] }
 0x3cf   : > { %v6873_v28 = vadd.f32 %v6872_v41, %v6871_v19  ;;  %v10257_v53 = vadd.f32 %v6870_v11, %v5113_v27  ;;  %v5566_v27 = vld [vmem:[%s10605_s11 + $0x70] sm:$0xff]  ;;  %v7190_v23 = vpack.c.bf16 %v5565_v51, %v5564_v40 }
 0x3d0   : > { %v6774_v36 = vpop.f32.mrb[148].mxu0 }
 0x3d1   : > { %v6775_v10 = vpop.f32.mrb[149].mxu0  ;;  %v10259_v37 = vadd.f32 %v6873_v28, %v5116_v33  ;;  %7191 = vmatpush3.bf16.msra.mxu0 %v7190_v23 }
 0x3d2   : > { %v6776_v14 = vadd.f32 %v6775_v10, %v6774_v36  ;;  %v6777_v2 = vpop.f32.mrb[150].mxu0  ;;  %7192 = vmatprep.subr.bf16.mxu0 %v7368_v30 }
 0x3d3   : > { %v6874_v13 = vpop.f32.mrb[140].mxu1  ;;  %v6778_v22 = vpop.f32.mrb[151].mxu0 }
 0x3d4   : > { %v6875_v31 = vpop.f32.mrb[141].mxu1  ;;  %v5137_v48 = vadd.f32 %v6776_v14, %v10124_v25  ;;  %v6779_v4 = vadd.f32 %v6778_v22, %v6777_v2  ;;  %v5567_v25 = vld [vmem:[%s10605_s11 + $0x78] sm:$0xff] }
 0x3d5   : > { %v6876_v33 = vadd.f32 %v6875_v31, %v6874_v13  ;;  %v6877_v21 = vpop.f32.mrb[142].mxu1  ;;  %v7193_v63 = vpack.c.bf16 %v5567_v25, %v5566_v27 }
 0x3d6   : > { %v6878_v45 = vpop.f32.mrb[143].mxu1  ;;  %v5140_v56 = vadd.f32 %v6779_v4, %v10126_v61 }
 0x3d7   : > { %v6879_v52 = vadd.f32 %v6878_v45, %v6877_v21  ;;  %v10277_v35 = vadd.f32 %v6876_v33, %v5121_v57  ;;  %7194 = vmatpush3.bf16.msra.mxu0 %v7193_v63 }
 0x3d8   : > { %v6780_v12 = vpop.f32.mrb[152].mxu0  ;;  %7118 = vmatprep.subr.mxu0 %v10612_v7 }
 0x3d9   : > { %v6781_v9 = vpop.f32.mrb[153].mxu0  ;;  %v10280_v58 = vadd.f32 %v6879_v52, %v5124_v38 }
 0x3da   : > { %v6782_v16 = vadd.f32 %v6781_v9, %v6780_v12  ;;  %v6783_v60 = vpop.f32.mrb[154].mxu0 }
 0x3db   : > { %v6880_v46 = vpop.f32.mrb[144].mxu1  ;;  %v6784_v11 = vpop.f32.mrb[155].mxu0 }
 0x3dc   : > { %v6881_v19 = vpop.f32.mrb[145].mxu1  ;;  %v5145_v41 = vadd.f32 %v6782_v16, %v10132_v17  ;;  %v6785_v61 = vadd.f32 %v6784_v11, %v6783_v60 }
 0x3dd   : > { %v6882_v57 = vadd.f32 %v6881_v19, %v6880_v46  ;;  %v6883_v28 = vpop.f32.mrb[146].mxu1 }
 0x3de   : > { %v6884_v36 = vpop.f32.mrb[147].mxu1  ;;  %v5148_v10 = vadd.f32 %v6785_v61, %v10134_v32 }
 0x3df   : > { %v6885_v30 = vadd.f32 %v6884_v36, %v6883_v28  ;;  %v10285_v14 = vadd.f32 %v6882_v57, %v5129_v29 }
 0x3e0   : > { %v6786_v38 = vpop.f32.mrb[156].mxu0 }
 0x3e1   : > { %v6787_v2 = vpop.f32.mrb[157].mxu0  ;;  %v10287_v13 = vadd.f32 %v6885_v30, %v5132_v1 }
 0x3e2   : > { %v6788_v22 = vadd.f32 %v6787_v2, %v6786_v38  ;;  %v6789_v31 = vpop.f32.mrb[158].mxu0 }
 0x3e3   : > { %v6886_v4 = vpop.f32.mrb[148].mxu1  ;;  %v6790_v40 = vpop.f32.mrb[159].mxu0 }
 0x3e4   : > { %v6887_v17 = vpop.f32.mrb[149].mxu1  ;;  %v5153_v51 = vadd.f32 %v6788_v22, %v10140_v54  ;;  %v6791_v27 = vadd.f32 %v6790_v40, %v6789_v31 }
 0x3e5   : > { %v6888_v33 = vadd.f32 %v6887_v17, %v6886_v4  ;;  %v6889_v21 = vpop.f32.mrb[150].mxu1 }
 0x3e6   : > { %v6890_v23 = vpop.f32.mrb[151].mxu1  ;;  %v5156_v32 = vadd.f32 %v6791_v27, %v10142_v8 }
 0x3e7   : > { %v6891_v25 = vadd.f32 %v6890_v23, %v6889_v21  ;;  %v10291_v29 = vadd.f32 %v6888_v33, %v5137_v48 }
 0x3e8   : > { %v6792_v45 = vpop.f32.mrb[160].mxu0 }
 0x3e9   : > { %v6793_v52 = vpop.f32.mrb[161].mxu0  ;;  %v10293_v1 = vadd.f32 %v6891_v25, %v5140_v56 }
 0x3ea   : > { %v6794_v63 = vadd.f32 %v6793_v52, %v6792_v45  ;;  %v6795_v12 = vpop.f32.mrb[162].mxu0 }
 0x3eb   : > { %v6892_v9 = vpop.f32.mrb[152].mxu1  ;;  %v6796_v16 = vpop.f32.mrb[163].mxu0 }
 0x3ec   : > { %v6893_v60 = vpop.f32.mrb[153].mxu1  ;;  %v5161_v54 = vadd.f32 %v6794_v63, %v10148_v24  ;;  %v6797_v46 = vadd.f32 %v6796_v16, %v6795_v12 }
 0x3ed   : > { %v6894_v11 = vadd.f32 %v6893_v60, %v6892_v9  ;;  %v6895_v19 = vpop.f32.mrb[154].mxu1 }
 0x3ee   : > { %v6896_v61 = vpop.f32.mrb[155].mxu1  ;;  %v5164_v8 = vadd.f32 %v6797_v46, %v10150_v42 }
 0x3ef   : > { %v6897_v57 = vadd.f32 %v6896_v61, %v6895_v19  ;;  %v10297_v48 = vadd.f32 %v6894_v11, %v5145_v41 }
 0x3f0   : > { %v6798_v28 = vpop.f32.mrb[164].mxu0 }
 0x3f1   : > { %v6799_v36 = vpop.f32.mrb[165].mxu0  ;;  %v10299_v56 = vadd.f32 %v6897_v57, %v5148_v10 }
 0x3f2   : > { %v6800_v30 = vadd.f32 %v6799_v36, %v6798_v28  ;;  %v6801_v38 = vpop.f32.mrb[166].mxu0 }
 0x3f3   : > { %v6898_v2 = vpop.f32.mrb[156].mxu1  ;;  %v6802_v22 = vpop.f32.mrb[167].mxu0 }
 0x3f4   : > { %v6899_v31 = vpop.f32.mrb[157].mxu1  ;;  %v5169_v24 = vadd.f32 %v6800_v30, %v10157_v26  ;;  %v6803_v4 = vadd.f32 %v6802_v22, %v6801_v38 }
 0x3f5   : > { %v6900_v40 = vadd.f32 %v6899_v31, %v6898_v2  ;;  %v6901_v17 = vpop.f32.mrb[158].mxu1 }
 0x3f6   : > { %v6902_v27 = vpop.f32.mrb[159].mxu1  ;;  %v5172_v42 = vadd.f32 %v6803_v4, %v10159_v0 }
 0x3f7   : > { %v6903_v33 = vadd.f32 %v6902_v27, %v6901_v17  ;;  %v10303_v41 = vadd.f32 %v6900_v40, %v5153_v51 }
 0x3f8   : > { %v6804_v21 = vpop.f32.mrb[168].mxu0 }
 0x3f9   : > { %v6805_v23 = vpop.f32.mrb[169].mxu0  ;;  %v10305_v10 = vadd.f32 %v6903_v33, %v5156_v32 }
 0x3fa   : > { %v6806_v25 = vadd.f32 %v6805_v23, %v6804_v21  ;;  %v6807_v45 = vpop.f32.mrb[170].mxu0 }
 0x3fb   : > { %v6904_v52 = vpop.f32.mrb[160].mxu1  ;;  %v6808_v63 = vpop.f32.mrb[171].mxu0 }
 0x3fc   : > { %v6905_v12 = vpop.f32.mrb[161].mxu1  ;;  %v5177_v26 = vadd.f32 %v6806_v25, %v10163_v59  ;;  %v6809_v9 = vadd.f32 %v6808_v63, %v6807_v45 }
 0x3fd   : > { %v6906_v16 = vadd.f32 %v6905_v12, %v6904_v52  ;;  %v6907_v60 = vpop.f32.mrb[162].mxu1 }
 0x3fe   : > { %v6908_v46 = vpop.f32.mrb[163].mxu1  ;;  %v5180_v0 = vadd.f32 %v6809_v9, %v10165_v5 }
 0x3ff   : > { %v6909_v11 = vadd.f32 %v6908_v46, %v6907_v60  ;;  %v10309_v51 = vadd.f32 %v6906_v16, %v5161_v54 }
 0x400   : > { %v6810_v19 = vpop.f32.mrb[172].mxu0 }
 0x401   : > { %v6811_v61 = vpop.f32.mrb[173].mxu0  ;;  %v10311_v32 = vadd.f32 %v6909_v11, %v5164_v8 }
 0x402   : > { %v6812_v57 = vadd.f32 %v6811_v61, %v6810_v19  ;;  %v6813_v28 = vpop.f32.mrb[174].mxu0 }
 0x403   : > { %v6910_v36 = vpop.f32.mrb[164].mxu1  ;;  %v6814_v30 = vpop.f32.mrb[175].mxu0 }
 0x404   : > { %v6911_v38 = vpop.f32.mrb[165].mxu1  ;;  %v5185_v59 = vadd.f32 %v6812_v57, %v10173_v43  ;;  %v6815_v2 = vadd.f32 %v6814_v30, %v6813_v28 }
 0x405   : > { %v6912_v22 = vadd.f32 %v6911_v38, %v6910_v36  ;;  %v6913_v31 = vpop.f32.mrb[166].mxu1 }
 0x406   : > { %v6914_v4 = vpop.f32.mrb[167].mxu1  ;;  %v5188_v5 = vadd.f32 %v6815_v2, %v10175_v62 }
 0x407   : > { %v6915_v40 = vadd.f32 %v6914_v4, %v6913_v31  ;;  %v10315_v54 = vadd.f32 %v6912_v22, %v5169_v24 }
 0x408   : > { %v7053_v17 = vpop.f32.mrb[176].mxu0 }
 0x409   : > { %v10318_v8 = vadd.f32 %v7053_v17, %v10198_v47  ;;  %v5386_v27 = vpop.f32.mrb[177].mxu0  ;;  %v10320_v33 = vadd.f32 %v6915_v40, %v5172_v42 }
 0x40a   : > { %v10323_v21 = vadd.f32 %v5386_v27, %v10185_v39  ;;  %v7054_v43 = vpop.f32.mrb[178].mxu0 }
 0x40b   : > { %v6916_v23 = vpop.f32.mrb[168].mxu1  ;;  %v10326_v25 = vadd.f32 %v7054_v43, %v10201_v15  ;;  %v5389_v45 = vpop.f32.mrb[179].mxu0 }
 0x40c   : > { %v6917_v62 = vpop.f32.mrb[169].mxu1  ;;  %v10329_v24 = vadd.f32 %v5389_v45, %v10188_v3 }
 0x40d   : > { %v6918_v52 = vadd.f32 %v6917_v62, %v6916_v23  ;;  %v6919_v63 = vpop.f32.mrb[170].mxu1 }
 0x40e   : > { %v6920_v47 = vpop.f32.mrb[171].mxu1  ;;  %v5513_v42 = vadd.f32 %v10329_v24, %v10323_v21 }
 0x40f   : > { %v6921_v12 = vadd.f32 %v6920_v47, %v6919_v63  ;;  %v10333_v9 = vadd.f32 %v6918_v52, %v5177_v26 }
 0x410   : > { %v5514_v39 = vadd.f32 %v5513_v42, %v10318_v8  ;;  %v7057_v16 = vpop.f32.mrb[180].mxu0 }
 0x411   : > { %v10337_v15 = vadd.f32 %v7057_v16, %v10224_v18  ;;  %v5402_v60 = vpop.f32.mrb[181].mxu0  ;;  %v10339_v46 = vadd.f32 %v6921_v12, %v5180_v0 }
 0x412   : > { %v10342_v3 = vadd.f32 %v5402_v60, %v10211_v49  ;;  %v5515_v11 = vadd.f32 %v5514_v39, %v10326_v25  ;;  %v7058_v19 = vpop.f32.mrb[182].mxu0 }
 0x413   : > { %v6922_v61 = vpop.f32.mrb[172].mxu1  ;;  %v10346_v57 = vadd.f32 %v7058_v19, %v10227_v34  ;;  %v5405_v26 = vpop.f32.mrb[183].mxu0 }
 0x414   : > { %v6923_v28 = vpop.f32.mrb[173].mxu1  ;;  %v5516_v36 = vadd.f32 %v5515_v11, %v10342_v3  ;;  %v10350_v18 = vadd.f32 %v5405_v26, %v10214_v20 }
 0x415   : > { %v6924_v30 = vadd.f32 %v6923_v28, %v6922_v61  ;;  %v6925_v0 = vpop.f32.mrb[174].mxu1 }
 0x416   : > { %v6926_v38 = vpop.f32.mrb[175].mxu1  ;;  %v5517_v49 = vadd.f32 %v5516_v36, %v10350_v18 }
 0x417   : > { %v6927_v2 = vadd.f32 %v6926_v38, %v6925_v0  ;;  %v10353_v22 = vadd.f32 %v6924_v30, %v5185_v59 }
 0x418   : > { %v5518_v31 = vadd.f32 %v5517_v49, %v10337_v15  ;;  %v7061_v4 = vpop.f32.mrb[184].mxu0 }
 0x419   : > { %v10357_v34 = vadd.f32 %v7061_v4, %v10250_v50  ;;  %v5418_v40 = vpop.f32.mrb[185].mxu0  ;;  %v10359_v17 = vadd.f32 %v6927_v2, %v5188_v5 }
 0x41a   : > { %v10362_v20 = vadd.f32 %v5418_v40, %v10237_v44  ;;  %v5519_v27 = vadd.f32 %v5518_v31, %v10346_v57  ;;  %v7062_v43 = vpop.f32.mrb[186].mxu0 }
 0x41b   : > { %v10366_v23 = vadd.f32 %v7062_v43, %v10253_v6  ;;  %v5421_v59 = vpop.f32.mrb[187].mxu0 }
 0x41c   : > { %v5520_v45 = vadd.f32 %v5519_v27, %v10362_v20  ;;  %v10370_v62 = vadd.f32 %v5421_v59, %v10240_v55 }
 0x41e   : > { %v5521_v50 = vadd.f32 %v5520_v45, %v10370_v62 }
 0x420   : > { %v5522_v5 = vadd.f32 %v5521_v50, %v10357_v34  ;;  %v7065_v52 = vpop.f32.mrb[188].mxu0 }
 0x421   : > { %v10375_v44 = vadd.f32 %v7065_v52, %v10277_v35  ;;  %v5434_v63 = vpop.f32.mrb[189].mxu0 }
 0x422   : > { %v10378_v47 = vadd.f32 %v5434_v63, %v10257_v53  ;;  %v5523_v6 = vadd.f32 %v5522_v5, %v10366_v23  ;;  %v7066_v42 = vpop.f32.mrb[190].mxu0 }
 0x423   : > { %v10382_v12 = vadd.f32 %v7066_v42, %v10280_v58  ;;  %v5437_v55 = vpop.f32.mrb[191].mxu0 }
 0x424   : > { %v5524_v39 = vadd.f32 %v5523_v6, %v10378_v47  ;;  %v10386_v16 = vadd.f32 %v5437_v55, %v10259_v37 }
 0x426   : > { %v5525_v60 = vadd.f32 %v5524_v39, %v10386_v16 }
 0x428   : > { %v5526_v35 = vadd.f32 %v5525_v60, %v10375_v44  ;;  %v7069_v11 = vpop.f32.mrb[192].mxu0 }
 0x429   : > { %v10391_v53 = vadd.f32 %v7069_v11, %v10291_v29  ;;  %v5450_v19 = vpop.f32.mrb[193].mxu0 }
 0x42a   : > { %v10394_v61 = vadd.f32 %v5450_v19, %v10285_v14  ;;  %v5527_v58 = vadd.f32 %v5526_v35, %v10382_v12  ;;  %v7070_v26 = vpop.f32.mrb[194].mxu0 }
 0x42b   : > { %v10398_v28 = vadd.f32 %v7070_v26, %v10293_v1  ;;  %v5453_v37 = vpop.f32.mrb[195].mxu0 }
 0x42c   : > { %v5528_v36 = vadd.f32 %v5527_v58, %v10394_v61  ;;  %v10402_v30 = vadd.f32 %v5453_v37, %v10287_v13 }
 0x42e   : > { %v5529_v0 = vadd.f32 %v5528_v36, %v10402_v30 }
 0x430   : > { %v5530_v29 = vadd.f32 %v5529_v0, %v10391_v53  ;;  %v7073_v38 = vpop.f32.mrb[196].mxu0 }
 0x431   : > { %v10407_v14 = vadd.f32 %v7073_v38, %v10303_v41  ;;  %v5466_v49 = vpop.f32.mrb[197].mxu0 }
 0x432   : > { %v10410_v2 = vadd.f32 %v5466_v49, %v10297_v48  ;;  %v5531_v1 = vadd.f32 %v5530_v29, %v10398_v28  ;;  %v7074_v31 = vpop.f32.mrb[198].mxu0 }
 0x433   : > { %v10414_v4 = vadd.f32 %v7074_v31, %v10305_v10  ;;  %v5469_v13 = vpop.f32.mrb[199].mxu0  ;;  %v7329_v31 = vld [vmem:[%s10607_s13 + $0x8] sm:$0xff]  }
 0x434   : > { %v5532_v40 = vadd.f32 %v5531_v1, %v10410_v2  ;;  %v10418_v27 = vadd.f32 %v5469_v13, %v10299_v56  ;;  %v5639_v1 = vld [vmem:[%s10606_s12] sm:$0xff]  ;;  %v7330_v13 = vld [vmem:[%s10607_s13 + $0x10] sm:$0xff]  }
 0x436   : > { %v5533_v43 = vadd.f32 %v5532_v40, %v10418_v27  ;;  %v7332_v40 = vld [vmem:[%s10607_s13 + $0x20] sm:$0xff]  }
 0x438   : > { %v5534_v41 = vadd.f32 %v5533_v43, %v10407_v14  ;;  %v7077_v59 = vpop.f32.mrb[200].mxu0  ;;  %v7333_v43 = vld [vmem:[%s10607_s13 + $0x28] sm:$0xff]  }
 0x439   : > { %v10423_v48 = vadd.f32 %v7077_v59, %v10315_v54  ;;  %v5482_v45 = vpop.f32.mrb[201].mxu0 }
 0x43a   : > { %v10426_v50 = vadd.f32 %v5482_v45, %v10309_v51  ;;  %v5535_v10 = vadd.f32 %v5534_v41, %v10414_v4  ;;  %v7078_v5 = vpop.f32.mrb[202].mxu0 }
 0x43b   : > { %v10430_v52 = vadd.f32 %v7078_v5, %v10320_v33  ;;  %v5485_v56 = vpop.f32.mrb[203].mxu0  ;;  %v7335_v5 = vld [vmem:[%s10607_s13 + $0x38] sm:$0xff]  }
 0x43c   : > { %v5536_v63 = vadd.f32 %v5535_v10, %v10426_v50  ;;  %v10434_v6 = vadd.f32 %v5485_v56, %v10311_v32  ;;  %v7334_v10 = vld [vmem:[%s10607_s13 + $0x30] sm:$0xff]  }
 0x43e   : > { %v5537_v42 = vadd.f32 %v5536_v63, %v10434_v6 }
 0x440   : > { %v5538_v54 = vadd.f32 %v5537_v42, %v10423_v48  ;;  %v7081_v55 = vpop.f32.mrb[204].mxu0 }
 0x441   : > { %v10439_v51 = vadd.f32 %v7081_v55, %v10353_v22  ;;  %v5498_v39 = vpop.f32.mrb[205].mxu0 }
 0x442   : > { %v10442_v60 = vadd.f32 %v5498_v39, %v10333_v9  ;;  %v5539_v33 = vadd.f32 %v5538_v54, %v10430_v52  ;;  %v7082_v35 = vpop.f32.mrb[206].mxu0  ;;  %v5720_v39 = vlaneseq }
 0x443   : > { %v10446_v11 = vadd.f32 %v7082_v35, %v10359_v17  ;;  %v5501_v32 = vpop.f32.mrb[207].mxu0 }
 0x444   : > { %v5540_v19 = vadd.f32 %v5539_v33, %v10442_v60  ;;  %v10450_v58 = vadd.f32 %v5501_v32, %v10339_v46  ;;  %v7328_v46 = vld [vmem:[%s10607_s13] sm:$0xff]   ;;  %v5721_v33 = vshrl.u32 %v5720_v39, 7 }
 0x445   : > { %7123 = vmatprep.subr.bf16.mxu1 %v7328_v46 }
 0x446   : > { %v5541_v26 = vadd.f32 %v5540_v19, %v10450_v58  ;;  %7124 = vmatpush3.bf16.msra.mxu1 %v7328_v46  ;;  %v5722_v35 = vsub.s32 0, %v5721_v33 }
 0x447   : > { %7125 = vmatprep.subr.bf16.mxu1 %v7329_v31 }
 0x448   : > { %v5542_v22 = vadd.f32 %v5541_v26, %v10439_v51 }
 0x44a   : > { %v5543_v37 = vadd.f32 %v5542_v22, %v10446_v11  ;;  %7126 = vmatpush3.bf16.msra.mxu1 %v7329_v31 }
 0x44b   : > { %7127 = vmatprep.subr.bf16.mxu1 %v7330_v13 }
 0x44c   : > { %v5544_v9 = vrot.slane %v5543_v37, 4 }
 0x44e   : > { %v5545_v36 = vadd.f32 %v5544_v9, %v5543_v37  ;;  %7128 = vmatpush3.bf16.msra.mxu1 %v7330_v13 }
 0x450   : > { %v5546_v0 = vrot.slane %v5545_v36, 2 }
 0x452   : > { %v5547_v29 = vadd.f32 %v5546_v0, %v5545_v36 }
 0x454   : > { %v5548_v38 = vrot.slane %v5547_v29, 1 }
 0x456   : > { %v5549_v49 = vadd.f32 %v5548_v38, %v5547_v29 }
 0x458   : > { %v5551_v17 = vmul.f32 0.00390625, %v5549_v49 }
 0x45a   : > { %7116 = vmatmul.mubr.f32.vlgmr.msra.gmra.mrb[208].mxu0 %v5551_v17 }
 0x45b   : > { %7119 = vmatpush3.msra.mxu0 %v5639_v1  ;;  %7120 = vmatprep.mubr.msk.f32.mxu0 %vm7370_vm4, %v10612_v7  ;;  %v7331_v7 = vld [vmem:[%s10607_s13 + $0x18] sm:$0xff]  }
 0x45c   : > { %7129 = vmatprep.subr.bf16.mxu1 %v7331_v7 }
 0x45d   : > { %7130 = vmatpush3.bf16.msra.mxu1 %v7331_v7 }
 0x45e   : > { %7131 = vmatprep.subr.bf16.mxu1 %v7332_v40 }
 0x461   : > { %7132 = vmatpush3.bf16.msra.mxu1 %v7332_v40 }
 0x462   : > { %7133 = vmatprep.subr.bf16.mxu1 %v7333_v43 }
 0x465   : > { %7134 = vmatpush3.bf16.msra.mxu1 %v7333_v43 }
 0x466   : > { %7135 = vmatprep.subr.bf16.mxu1 %v7334_v10 }
 0x469   : > { %7136 = vmatpush3.bf16.msra.mxu1 %v7334_v10 }
 0x46a   : > { %7137 = vmatprep.subr.bf16.mxu1 %v7335_v5 }
 0x46d   : > { %7138 = vmatpush3.bf16.msra.mxu1 %v7335_v5 }
 0x52d   : > { %v5634_v41 = vpop.f32.mrb[208].mxu0 }
 0x52e   : > { %v5638_v59 = vmax.f32 %v5634_v41, 0.0  ;;  %v7117_v45 = vpop.f32.mrb[209].mxu0 }
 0x530   : > { %7121 = vmatmul.mubr.msk.f32.vlgmr.msra.gmra.mrb[210].mxu0 %vm5640_vm5, %v5638_v59 }
 0x603   : > { %v5710_v56 = vpop.f32.mrb[210].mxu0 }
 0x604   : > { %v6335_v63 = vmul.f32 -1.442695, %v5710_v56  ;;  %v7122_v42 = vpop.f32.mrb[211].mxu0 }
 0x606   : > { %7336 = vpow2.f32 %v6335_v63 }
 0x610   : > { %v7337_v54 = vpop.eup %7336 }
 0x611   : > { %v5717_v55 = vadd.f32 1.0, %v7337_v54 }
 0x613   : > { %7338 = vrcp.f32 %v5717_v55 }
 0x61d   : > { %v7339_v32 = vpop.eup %7338 }
 0x61e   : > { %v5723_v19 = vrot.slane %v7339_v32, %v5722_v35 }
 0x620   : > { %v5724_v26 = vmul.f32 %v5723_v19, %v10323_v21  ;;  %v5725_v22 = vmul.f32 %v5723_v19, %v10329_v24  ;;  %v5726_v37 = vmul.f32 %v5723_v19, %v10318_v8  ;;  %v5727_v9 = vmul.f32 %v5723_v19, %v10326_v25 }
 0x621   : > { %v5728_v36 = vmul.f32 %v5723_v19, %v10342_v3  ;;  %v5729_v0 = vmul.f32 %v5723_v19, %v10350_v18  ;;  %v5730_v17 = vmul.f32 %v5723_v19, %v10337_v15  ;;  %v5731_v21 = vmul.f32 %v5723_v19, %v10346_v57 }
 0x622   : > { %v5757_v29 = vpack.c.bf16 %v5727_v9, %v5726_v37  ;;  %v5756_v38 = vpack.c.bf16 %v5725_v22, %v5724_v26  ;;  %v5732_v24 = vmul.f32 %v5723_v19, %v10362_v20  ;;  %v5733_v8 = vmul.f32 %v5723_v19, %v10370_v62 }
 0x623   : > { %v5758_v49 = vpack.c.bf16 %v5729_v0, %v5728_v36  ;;  %v5759_v1 = vpack.c.bf16 %v5731_v21, %v5730_v17  ;;  %v5734_v3 = vmul.f32 %v5723_v19, %v10357_v34  ;;  %v5735_v18 = vmul.f32 %v5723_v19, %v10366_v23 }
 0x624   : > { %7139 = vmatprep.mubr.bf16.mxu1 %v5756_v38  ;;  %v5760_v25 = vpack.c.bf16 %v5733_v8, %v5732_v24  ;;  %v5736_v46 = vmul.f32 %v5723_v19, %v10378_v47  ;;  %v5737_v31 = vmul.f32 %v5723_v19, %v10386_v16  ;;  %v5738_v57 = vmul.f32 %v5723_v19, %v10375_v44 }
 0x625   : > { %7140 = vmatmul.mubr.bf16.vlgmr.msra.gmra.mrb[176].mxu1 %v5757_v29  ;;  %v5761_v13 = vpack.c.bf16 %v5735_v18, %v5734_v3  ;;  %v5739_v20 = vmul.f32 %v5723_v19, %v10382_v12  ;;  %v5740_v62 = vmul.f32 %v5723_v19, %v10394_v61  ;;  %v5741_v7 = vmul.f32 %v5723_v19, %v10402_v30 }
 0x626   : > { %7143 = vmatprep.mubr.bf16.mxu1 %v5758_v49  ;;  %v5762_v15 = vpack.c.bf16 %v5737_v31, %v5736_v46  ;;  %v5742_v23 = vmul.f32 %v5723_v19, %v10391_v53  ;;  %v5743_v47 = vmul.f32 %v5723_v19, %v10398_v28  ;;  %v5744_v16 = vmul.f32 %v5723_v19, %v10410_v2 }
 0x627   : > { %v5763_v40 = vpack.c.bf16 %v5739_v20, %v5738_v57  ;;  %v5764_v34 = vpack.c.bf16 %v5741_v7, %v5740_v62  ;;  %v5745_v43 = vmul.f32 %v5723_v19, %v10418_v27  ;;  %v5746_v12 = vmul.f32 %v5723_v19, %v10407_v14 }
 0x628   : > { %v5765_v41 = vpack.c.bf16 %v5743_v47, %v5742_v23  ;;  %v5747_v61 = vmul.f32 %v5723_v19, %v10414_v4  ;;  %v5748_v30 = vmul.f32 %v5723_v19, %v10426_v50  ;;  %v5749_v59 = vmul.f32 %v5723_v19, %v10434_v6 }
 0x629   : > { %v5766_v44 = vpack.c.bf16 %v5745_v43, %v5744_v16  ;;  %v5750_v28 = vmul.f32 %v5723_v19, %v10423_v48  ;;  %v5751_v2 = vmul.f32 %v5723_v19, %v10430_v52  ;;  %v5752_v27 = vmul.f32 %v5723_v19, %v10442_v60  ;;  %v10519_v48 = vld [vmem:[%s10608_s14] ss:$0 sm:$0xff] }
 0x62a   : > { %v5767_v45 = vpack.c.bf16 %v5747_v61, %v5746_v12  ;;  %v5768_v53 = vpack.c.bf16 %v5749_v59, %v5748_v30  ;;  %v5753_v10 = vmul.f32 %v5723_v19, %v10450_v58  ;;  %v5754_v4 = vmul.f32 %v5723_v19, %v10439_v51 }
 0x62b   : > { %v5769_v5 = vpack.c.bf16 %v5751_v2, %v5750_v28  ;;  %v5755_v50 = vmul.f32 %v5723_v19, %v10446_v11 }
 0x62c   : > { %v5770_v14 = vpack.c.bf16 %v5753_v10, %v5752_v27 }
 0x62d   : > { %7144 = vmatmul.mubr.bf16.gmra.mrb[180].mxu1 %v5759_v1  ;;  %v5771_v6 = vpack.c.bf16 %v5755_v50, %v5754_v4 }
 0x62e   : > { %7147 = vmatprep.mubr.bf16.mxu1 %v5760_v25 }
 0x635   : > { %7148 = vmatmul.mubr.bf16.gmra.mrb[184].mxu1 %v5761_v13 }
 0x636   : > { %7151 = vmatprep.mubr.bf16.mxu1 %v5762_v15 }
 0x63d   : > { %7152 = vmatmul.mubr.bf16.gmra.mrb[188].mxu1 %v5763_v40 }
 0x63e   : > { %7155 = vmatprep.mubr.bf16.mxu1 %v5764_v34 }
 0x645   : > { %7156 = vmatmul.mubr.bf16.gmra.mrb[192].mxu1 %v5765_v41 }
 0x646   : > { %7159 = vmatprep.mubr.bf16.mxu1 %v5766_v44 }
 0x64d   : > { %7160 = vmatmul.mubr.bf16.gmra.mrb[196].mxu1 %v5767_v45 }
 0x64e   : > { %7163 = vmatprep.mubr.bf16.mxu1 %v5768_v53 }
 0x655   : > { %7164 = vmatmul.mubr.bf16.gmra.mrb[200].mxu1 %v5769_v5 }
 0x656   : > { %7167 = vmatprep.mubr.bf16.mxu1 %v5770_v14 }
 0x65d   : > { %7168 = vmatmul.mubr.bf16.gmra.mrb[204].mxu1 %v5771_v6 }
 0x6f8   : > { %v7141_v52 = vpop.f32.mrb[176].mxu1 }
 0x6f9   : > { %v5877_v56 = vpop.f32.mrb[177].mxu1  ;;  %v5886_v11 = vadd.f32 %v7141_v52, %v10519_v48 }
 0x6fa   : > { %v7142_v60 = vpop.f32.mrb[178].mxu1  ;;  %v5878_v58 = vadd.f32 %v10519_v48, %v5877_v56 }
 0x6fb   : > { %v5880_v63 = vpop.f32.mrb[179].mxu1  ;;  %v5889_v33 = vadd.f32 %v7142_v60, %v10519_v48 }
 0x6fc   : > { %6004 = vxpose.xlu0.b32.start [1/16] %v5878_v58, 128  ;;  %v5881_v42 = vadd.f32 %v10519_v48, %v5880_v63 }
 0x700   : > { %v7145_v54 = vpop.f32.mrb[180].mxu1  ;;  %6005 = vxpose.xlu0.b32.cont [2/16] %v5881_v42, 128 }
 0x701   : > { %v5893_v51 = vpop.f32.mrb[181].mxu1  ;;  %v5902_v0 = vadd.f32 %v7145_v54, %v10519_v48 }
 0x702   : > { %v7146_v55 = vpop.f32.mrb[182].mxu1  ;;  %v5894_v19 = vadd.f32 %v10519_v48, %v5893_v51 }
 0x703   : > { %v5896_v39 = vpop.f32.mrb[183].mxu1  ;;  %v5905_v49 = vadd.f32 %v7146_v55, %v10519_v48 }
 0x704   : > { %6006 = vxpose.xlu0.b32.cont [3/16] %v5886_v11, 128  ;;  %v5897_v37 = vadd.f32 %v10519_v48, %v5896_v39 }
 0x708   : > { %v7149_v35 = vpop.f32.mrb[184].mxu1  ;;  %6007 = vxpose.xlu0.b32.cont [4/16] %v5889_v33, 128 }
 0x709   : > { %v5909_v32 = vpop.f32.mrb[185].mxu1  ;;  %v5918_v13 = vadd.f32 %v7149_v35, %v10519_v48 }
 0x70a   : > { %v7150_v26 = vpop.f32.mrb[186].mxu1  ;;  %v5910_v24 = vadd.f32 %v10519_v48, %v5909_v32 }
 0x70b   : > { %v5912_v22 = vpop.f32.mrb[187].mxu1  ;;  %v5921_v62 = vadd.f32 %v7150_v26, %v10519_v48 }
 0x70c   : > { %6008 = vxpose.xlu0.b32.cont [5/16] %v5894_v19, 128  ;;  %v5913_v3 = vadd.f32 %v10519_v48, %v5912_v22 }
 0x710   : > { %v7153_v9 = vpop.f32.mrb[188].mxu1  ;;  %6009 = vxpose.xlu0.b32.cont [6/16] %v5897_v37, 128 }
 0x711   : > { %v5925_v36 = vpop.f32.mrb[189].mxu1  ;;  %v5934_v2 = vadd.f32 %v7153_v9, %v10519_v48 }
 0x712   : > { %v7154_v29 = vpop.f32.mrb[190].mxu1  ;;  %v5926_v47 = vadd.f32 %v10519_v48, %v5925_v36 }
 0x713   : > { %v5928_v38 = vpop.f32.mrb[191].mxu1  ;;  %v5937_v6 = vadd.f32 %v7154_v29, %v10519_v48 }
 0x714   : > { %6010 = vxpose.xlu0.b32.cont [7/16] %v5902_v0, 128  ;;  %v5929_v30 = vadd.f32 %v10519_v48, %v5928_v38 }
 0x718   : > { %v7157_v17 = vpop.f32.mrb[192].mxu1  ;;  %6011 = vxpose.xlu0.b32.cont [8/16] %v5905_v49, 128 }
 0x719   : > { %v5941_v21 = vpop.f32.mrb[193].mxu1  ;;  %v5950_v15 = vadd.f32 %v7157_v17, %v10519_v48 }
 0x71a   : > { %v7158_v8 = vpop.f32.mrb[194].mxu1  ;;  %v5942_v1 = vadd.f32 %v10519_v48, %v5941_v21 }
 0x71b   : > { %v5944_v25 = vpop.f32.mrb[195].mxu1  ;;  %v5953_v7 = vadd.f32 %v7158_v8, %v10519_v48 }
 0x71c   : > { %6036 = vxpose.xlu1.b32.start [1/16] %v5942_v1, 128  ;;  %6012 = vxpose.xlu0.b32.cont [9/16] %v5910_v24, 128  ;;  %v5945_v18 = vadd.f32 %v10519_v48, %v5944_v25 }
 0x720   : > { %v7161_v46 = vpop.f32.mrb[196].mxu1  ;;  %6037 = vxpose.xlu1.b32.cont [2/16] %v5945_v18, 128  ;;  %6013 = vxpose.xlu0.b32.cont [10/16] %v5913_v3, 128 }
 0x721   : > { %v5957_v31 = vpop.f32.mrb[197].mxu1  ;;  %v5966_v27 = vadd.f32 %v7161_v46, %v10519_v48 }
 0x722   : > { %v7162_v57 = vpop.f32.mrb[198].mxu1  ;;  %v5958_v16 = vadd.f32 %v10519_v48, %v5957_v31 }
 0x723   : > { %v5960_v20 = vpop.f32.mrb[199].mxu1  ;;  %v5969_v52 = vadd.f32 %v7162_v57, %v10519_v48 }
 0x724   : > { %6038 = vxpose.xlu1.b32.cont [3/16] %v5950_v15, 128  ;;  %6014 = vxpose.xlu0.b32.cont [11/16] %v5918_v13, 128  ;;  %v5961_v59 = vadd.f32 %v10519_v48, %v5960_v20 }
 0x728   : > { %v7165_v40 = vpop.f32.mrb[200].mxu1  ;;  %6039 = vxpose.xlu1.b32.cont [4/16] %v5953_v7, 128  ;;  %6015 = vxpose.xlu0.b32.cont [12/16] %v5921_v62, 128 }
 0x729   : > { %v5982_v34 = vadd.f32 %v7165_v40, %v10519_v48  ;;  %v5973_v23 = vpop.f32.mrb[201].mxu1 }
 0x72a   : > { %v5974_v43 = vadd.f32 %v10519_v48, %v5973_v23  ;;  %v7166_v41 = vpop.f32.mrb[202].mxu1 }
 0x72b   : > { %v5985_v44 = vadd.f32 %v7166_v41, %v10519_v48  ;;  %v5976_v12 = vpop.f32.mrb[203].mxu1 }
 0x72c   : > { %v5977_v61 = vadd.f32 %v10519_v48, %v5976_v12  ;;  %6040 = vxpose.xlu1.b32.cont [5/16] %v5958_v16, 128  ;;  %6016 = vxpose.xlu0.b32.cont [13/16] %v5926_v47, 128 }
 0x730   : > { %v7169_v45 = vpop.f32.mrb[204].mxu1  ;;  %6041 = vxpose.xlu1.b32.cont [6/16] %v5961_v59, 128  ;;  %6017 = vxpose.xlu0.b32.cont [14/16] %v5929_v30, 128 }
 0x731   : > { %v5998_v53 = vadd.f32 %v7169_v45, %v10519_v48  ;;  %v5989_v28 = vpop.f32.mrb[205].mxu1 }
 0x732   : > { %v5990_v10 = vadd.f32 %v10519_v48, %v5989_v28  ;;  %v7170_v5 = vpop.f32.mrb[206].mxu1 }
 0x733   : > { %v6001_v14 = vadd.f32 %v7170_v5, %v10519_v48  ;;  %v5992_v4 = vpop.f32.mrb[207].mxu1 }
 0x734   : > { %v5993_v50 = vadd.f32 %v10519_v48, %v5992_v4  ;;  %6042 = vxpose.xlu1.b32.cont [7/16] %v5966_v27, 128  ;;  %6018 = vxpose.xlu0.b32.cont [15/16] %v5934_v2, 128 }
 0x738   : > { %6043 = vxpose.xlu1.b32.cont [8/16] %v5969_v52, 128  ;;  %6019 = vxpose.xlu0.b32.end [16/16] %v5937_v6, 128 }
 0x73c   : > { %6044 = vxpose.xlu1.b32.cont [9/16] %v5974_v43, 128 }
 0x740   : > { %6045 = vxpose.xlu1.b32.cont [10/16] %v5977_v61, 128 }
 0x744   : > { %6046 = vxpose.xlu1.b32.cont [11/16] %v5982_v34, 128 }
 0x748   : > { %6047 = vxpose.xlu1.b32.cont [12/16] %v5985_v44, 128 }
 0x74c   : > { %6048 = vxpose.xlu1.b32.cont [13/16] %v5990_v10, 128 }
 0x750   : > { %6049 = vxpose.xlu1.b32.cont [14/16] %v5993_v50, 128 }
 0x754   : > { %6050 = vxpose.xlu1.b32.cont [15/16] %v5998_v53, 128 }
 0x758   : > { %6051 = vxpose.xlu1.b32.end [16/16] %v6001_v14, 128 }
 0x77c   : > { %v6020_v48 = vpop.trf.xlu0 }
 0x77d   : > { %6068 = vst [vmem:[%s10557_s24] sm:$0xff] %v6020_v48 }
 0x780   : > { %v6021_v56 = vpop.trf.xlu0 }
 0x781   : > { %6070 = vst [vmem:[%s10557_s24 + $0x10] sm:$0xff] %v6021_v56 }
 0x784   : > { %v6022_v60 = vpop.trf.xlu0 }
 0x785   : > { %6072 = vst [vmem:[%s10557_s24 + $0x20] sm:$0xff] %v6022_v60 }
 0x788   : > { %v6023_v58 = vpop.trf.xlu0 }
 0x789   : > { %6074 = vst [vmem:[%s10557_s24 + $0x30] sm:$0xff] %v6023_v58 }
 0x78c   : > { %v6024_v63 = vpop.trf.xlu0 }
 0x78d   : > { %6076 = vst [vmem:[%s10557_s24 + $0x40] sm:$0xff] %v6024_v63 }
 0x790   : > { %v6025_v42 = vpop.trf.xlu0 }
 0x791   : > { %6078 = vst [vmem:[%s10557_s24 + $0x50] sm:$0xff] %v6025_v42 }
 0x794   : > { %v6026_v54 = vpop.trf.xlu0 }
 0x795   : > { %6080 = vst [vmem:[%s10557_s24 + $0x60] sm:$0xff] %v6026_v54 }
 0x798   : > { %v6027_v51 = vpop.trf.xlu0 }
 0x799   : > { %6082 = vst [vmem:[%s10557_s24 + $0x70] sm:$0xff] %v6027_v51 }
 0x79c   : > { %v6052_v11 = vpop.trf.xlu1  ;;  %v6028_v55 = vpop.trf.xlu0 }
 0x79d   : > { %6069 = vst [vmem:[%s10557_s24 + $0x8] sm:$0xff] %v6052_v11  ;;  %6084 = vst [vmem:[%s10557_s24 + $0x80] sm:$0xff] %v6028_v55 }
 0x7a0   : > { %v6053_v39 = vpop.trf.xlu1  ;;  %v6029_v33 = vpop.trf.xlu0 }
 0x7a1   : > { %6071 = vst [vmem:[%s10557_s24 + $0x18] sm:$0xff] %v6053_v39  ;;  %6086 = vst [vmem:[%s10557_s24 + $0x90] sm:$0xff] %v6029_v33 }
 0x7a4   : > { %v6054_v35 = vpop.trf.xlu1  ;;  %v6030_v32 = vpop.trf.xlu0 }
 0x7a5   : > { %6073 = vst [vmem:[%s10557_s24 + $0x28] sm:$0xff] %v6054_v35  ;;  %6088 = vst [vmem:[%s10557_s24 + $0xa0] sm:$0xff] %v6030_v32 }
 0x7a8   : > { %v6055_v19 = vpop.trf.xlu1  ;;  %v6031_v26 = vpop.trf.xlu0 }
 0x7a9   : > { %6075 = vst [vmem:[%s10557_s24 + $0x38] sm:$0xff] %v6055_v19  ;;  %6090 = vst [vmem:[%s10557_s24 + $0xb0] sm:$0xff] %v6031_v26 }
 0x7ac   : > { %v6056_v22 = vpop.trf.xlu1  ;;  %v6032_v37 = vpop.trf.xlu0 }
 0x7ad   : > { %6077 = vst [vmem:[%s10557_s24 + $0x48] sm:$0xff] %v6056_v22  ;;  %6092 = vst [vmem:[%s10557_s24 + $0xc0] sm:$0xff] %v6032_v37 }
 0x7b0   : > { %v6057_v9 = vpop.trf.xlu1  ;;  %v6033_v36 = vpop.trf.xlu0 }
 0x7b1   : > { %6079 = vst [vmem:[%s10557_s24 + $0x58] sm:$0xff] %v6057_v9  ;;  %6094 = vst [vmem:[%s10557_s24 + $0xd0] sm:$0xff] %v6033_v36 }
 0x7b4   : > { %v6058_v0 = vpop.trf.xlu1  ;;  %v6034_v29 = vpop.trf.xlu0 }
 0x7b5   : > { %6081 = vst [vmem:[%s10557_s24 + $0x68] sm:$0xff] %v6058_v0  ;;  %6096 = vst [vmem:[%s10557_s24 + $0xe0] sm:$0xff] %v6034_v29 }
 0x7b8   : > { %v6059_v38 = vpop.trf.xlu1  ;;  %v6035_v49 = vpop.trf.xlu0 }
 0x7b9   : > { %6083 = vst [vmem:[%s10557_s24 + $0x78] sm:$0xff] %v6059_v38  ;;  %6098 = vst [vmem:[%s10557_s24 + $0xf0] sm:$0xff] %v6035_v49 }
 0x7bc   : > { %v6060_v17 = vpop.trf.xlu1 }
 0x7bd   : > { %6085 = vst [vmem:[%s10557_s24 + $0x88] sm:$0xff] %v6060_v17 }
 0x7c0   : > { %v6061_v21 = vpop.trf.xlu1 }
 0x7c1   : > { %6087 = vst [vmem:[%s10557_s24 + $0x98] sm:$0xff] %v6061_v21 }
 0x7c4   : > { %v6062_v24 = vpop.trf.xlu1 }
 0x7c5   : > { %6089 = vst [vmem:[%s10557_s24 + $0xa8] sm:$0xff] %v6062_v24 }
 0x7c8   : > { %v6063_v8 = vpop.trf.xlu1 }
 0x7c9   : > { %6091 = vst [vmem:[%s10557_s24 + $0xb8] sm:$0xff] %v6063_v8 }
 0x7cc   : > { %v6064_v1 = vpop.trf.xlu1 }
 0x7cd   : > { %6093 = vst [vmem:[%s10557_s24 + $0xc8] sm:$0xff] %v6064_v1 }
 0x7d0   : > { %v6065_v25 = vpop.trf.xlu1 }
 0x7d1   : > { %6095 = vst [vmem:[%s10557_s24 + $0xd8] sm:$0xff] %v6065_v25 }
 0x7d4   : > { %v6066_v3 = vpop.trf.xlu1 }
 0x7d5   : > { %6097 = vst [vmem:[%s10557_s24 + $0xe8] sm:$0xff] %v6066_v3 }
 0x7d8   : > { %v6067_v18 = vpop.trf.xlu1 }
 0x7d9   : > { %6099 = vst [vmem:[%s10557_s24 + $0xf8] sm:$0xff] %v6067_v18 }
 0x7da PF: > { %s25_s18 = sadd.s32 1, %s7366_s18  }
 0x7db   : > { %p22_p4 = scmp.ge.s32.totalorder %s25_s18, 4  }
 0x7dd   :  { %24 = sbr.rel (!%p22_p4) target bundleno = 1 (0x1), region = 145 }

</bundles_post_ra>
